<compile_context>
chip_gen: v7x
topology: tpu7x:2x2x1
jax: 0.10.0
libtpu: 0.0.40
codegen_flags: <defaults>
</compile_context>

<pallas_src>
from functools import partial

import jax
import jax.numpy as jnp
from jax import lax
from jax.experimental import pallas as pl
from jax.experimental.pallas import tpu as pltpu

NEG_INF = -1e30          # finite "minus infinity" (avoids inf - inf NaNs)
LEAKY_SLOPE = 0.01       # F.leaky_relu default negative slope
LANE = 128


# --------------------------------------------------------------------------- #
# Kernel
# --------------------------------------------------------------------------- #
def gat_kernel(s_dst_ref, s_src_ref, z_ref, adj_ref, o_ref,
               m_sc, l_sc, acc_sc, *, apply_elu):
    """One grid step = (destination-node tile i, source-node tile s).

    All heads are batched on the leading axis. The source axis is a streaming
    reduction: online masked softmax with running max / denom / accumulator
    kept in VMEM scratch across source tiles.
    """
    s = pl.program_id(1)

    @pl.when(s == 0)
    def _init():
        m_sc[...] = jnp.full(m_sc.shape, NEG_INF, m_sc.dtype)
        l_sc[...] = jnp.zeros(l_sc.shape, l_sc.dtype)
        acc_sc[...] = jnp.zeros(acc_sc.shape, acc_sc.dtype)

    # e[h, i, j] = leaky_relu(a_dst_h . z_i + a_src_h . z_j) for edge j -> i
    e = s_dst_ref[...][:, :, None] + s_src_ref[...][:, None, :]      # (H, tq, ts)
    e = jnp.maximum(e, LEAKY_SLOPE * e)                              # leaky_relu
    mask = adj_ref[...] != 0                                         # (tq, ts)
    e = jnp.where(mask[None, :, :], e, NEG_INF)

    # streaming (online) masked softmax; normalization delayed to the last tile
    m_prev = m_sc[...]
    m_new = jnp.maximum(m_prev, jnp.max(e, axis=-1, keepdims=True))  # (H, tq, 1)
    corr = jnp.exp(m_prev - m_new)
    p = jnp.exp(e - m_new)                                           # masked -> 0
    l_sc[...] = corr * l_sc[...] + jnp.sum(p, axis=-1, keepdims=True)
    # aggregation on the MXU: bf16 x bf16 -> f32 accumulate
    acc_sc[...] = corr * acc_sc[...] + jnp.einsum(
        'hqs,hsd->hqd', p.astype(z_ref.dtype), z_ref[...],
        preferred_element_type=jnp.float32)
    m_sc[...] = m_new

    @pl.when(s == pl.num_programs(1) - 1)
    def _finalize():
        # delayed normalization; approximate reciprocal runs on the EUP
        hout = acc_sc[...] * pl.reciprocal(l_sc[...], approx=True)
        # destination rows with no incoming edge -> 0 (masked-softmax semantics)
        hout = jnp.where(m_sc[...] > 0.5 * NEG_INF, hout, 0.0)
        if apply_elu:
            # ELU(alpha=1); applied per head when num_heads > 1
            hout = jnp.where(hout > 0.0, hout,
                             jnp.exp(jnp.minimum(hout, 0.0)) - 1.0)
        # TODO(synk): F.dropout on alpha / head outputs skipped (eval mode).
        o_ref[...] = hout.astype(o_ref.dtype)


# --------------------------------------------------------------------------- #
# VMEM-aware tiling helpers
# --------------------------------------------------------------------------- #
def _vmem_capacity_bytes():
    try:
        return int(pltpu.get_tpu_info().vmem_capacity_bytes)
    except Exception:
        return 64 * 1024 * 1024       # conservative lower bound (v7x per-core)


def _step_vmem_bytes(tile_n, tile_s, num_heads, d_out):
    """Rough per-step VMEM footprint: pipelined blocks + elementwise temps."""
    d_pad = max(d_out, LANE)
    adj_b = 3 * tile_n * tile_s                           # int8, up to 3 buffers
    z_b = 2 * num_heads * tile_s * d_pad * 2              # bf16, double-buffered
    s_b = 2 * num_heads * (tile_n + tile_s) * 4           # score rows
    out_b = 2 * num_heads * tile_n * d_pad * 4
    scr_b = num_heads * tile_n * (d_pad + 2 * LANE) * 4   # acc + m + l scratch
    tmp_b = 3 * num_heads * tile_n * tile_s * 4           # e / p / select temps
    return adj_b + z_b + s_b + out_b + scr_b + tmp_b


def _pick_tiles(n_pad, num_heads, d_out, budget_bytes):
    """Largest (dst, src) tiles (multiples of 128 dividing n_pad) within budget."""
    cands = sorted({t for t in (n_pad, 4096, 2048, 1024, 512, 256, 128)
                    if t <= n_pad and n_pad % t == 0}, reverse=True)
    for tn in cands:
        for ts in cands:
            if _step_vmem_bytes(tn, ts, num_heads, d_out) <= budget_bytes:
                return tn, ts
    return cands[-1], cands[-1]


# --------------------------------------------------------------------------- #
# Wrapper
# --------------------------------------------------------------------------- #
def gat_layer_forward(h, adj, fc_w, attn_w, threshold, num_heads):
    """Pallas implementation of GATLayer.forward (merge == 'cat', eval mode).

    h      : (N, Din) float32     node features
    adj    : (N, N)               adj[i, j] != 0 iff edge j -> i (row = dest)
    fc_w   : (H, Dout, Din)       per-head fc weight (PyTorch Linear layout)
    attn_w : (H, 1, 2*Dout)       per-head attn_fc weight [src_half | dst_half]
    """
    n, d_in = h.shape
    num_h, d_out, d_in2 = fc_w.shape
    assert num_h == num_heads and d_in2 == d_in
    hi = lax.Precision.HIGHEST

    # SparseLinear(x, threshold): definition not provided in the module snippet --
    # approximated as magnitude pruning of the weights at `threshold`.
    # TODO(synk): replace with exact SparseLinear semantics if available.
    fc_w_m = fc_w * (jnp.abs(fc_w) > threshold).astype(fc_w.dtype)
    attn_w_m = attn_w * (jnp.abs(attn_w) > threshold).astype(attn_w.dtype)
    a_src = attn_w_m[:, 0, :d_out]          # (H, Dout) -- multiplies source z
    a_dst = attn_w_m[:, 0, d_out:]          # (H, Dout) -- multiplies destination z

    # Pad the node axis to a multiple of 128. Padded sources have no edges
    # (masked out); padded destination rows are sliced off afterwards.
    n_pad = ((n + LANE - 1) // LANE) * LANE
    pad = n_pad - n
    h_p = jnp.pad(h, ((0, pad), (0, 0))) if pad else h
    adj_p = jnp.pad(adj, ((0, pad), (0, pad))) if pad else adj

    # ---- Hoisted tile-invariant projections (run once under XLA) --------------
    z = jnp.einsum('nk,hdk->hnd', h_p, fc_w_m, precision=hi)       # (H, Np, Dout)
    s_src = jnp.einsum('hnd,hd->hn', z, a_src, precision=hi)       # (H, Np) f32
    s_dst = jnp.einsum('hnd,hd->hn', z, a_dst, precision=hi)       # (H, Np) f32
    z_bf16 = z.astype(jnp.bfloat16)                                # MXU operand
    adj_i8 = (adj_p != 0).astype(jnp.int8)                         # 1 B / edge

    # ---- Tiling / VMEM budgeting ----------------------------------------------
    vmem_cap = _vmem_capacity_bytes()
    vmem_limit = min(int(vmem_cap * 7 // 8), 112 * 1024 * 1024)
    tile_n, tile_s = _pick_tiles(n_pad, num_heads, d_out, (vmem_limit * 3) // 4)
    n_dst_tiles = n_pad // tile_n
    n_src_tiles = n_pad // tile_s

    # adjacency is the dominant HBM stream -> deepen buffering when it is tiled
    if n_src_tiles >= 3:
        adj_spec = pl.BlockSpec((tile_n, tile_s), lambda i, s: (i, s),
                                pipeline_mode=pl.Buffered(3))
    else:
        adj_spec = pl.BlockSpec((tile_n, tile_s), lambda i, s: (i, s))

    cost = pl.CostEstimate(
        flops=int(2 * num_heads * n_pad * n_pad * (d_out + 4)),
        transcendentals=int(num_heads * n_pad * n_pad),
        bytes_accessed=int(n_pad * n_pad
                           + n_dst_tiles * num_heads * n_pad * (2 * d_out + 4)
                           + num_heads * n_pad * (4 + 4 * d_out)),
    )

    kernel = partial(gat_kernel, apply_elu=(num_heads != 1))

    out_hnd = pl.pallas_call(
        kernel,
        out_shape=jax.ShapeDtypeStruct((num_heads, n_pad, d_out), jnp.float32),
        grid_spec=pltpu.PrefetchScalarGridSpec(
            num_scalar_prefetch=0,
            grid=(n_dst_tiles, n_src_tiles),
            in_specs=[
                pl.BlockSpec((num_heads, tile_n), lambda i, s: (0, i)),   # dst scores
                pl.BlockSpec((num_heads, tile_s), lambda i, s: (0, s)),   # src scores
                pl.BlockSpec((num_heads, tile_s, d_out),
                             lambda i, s: (0, s, 0)),                     # z (bf16)
                adj_spec,                                                 # adjacency
            ],
            out_specs=pl.BlockSpec((num_heads, tile_n, d_out),
                                   lambda i, s: (0, i, 0)),
            scratch_shapes=[
                pltpu.VMEM((num_heads, tile_n, 1), jnp.float32),      # running max
                pltpu.VMEM((num_heads, tile_n, 1), jnp.float32),      # running denom
                pltpu.VMEM((num_heads, tile_n, d_out), jnp.float32),  # accumulator
            ],
        ),
        compiler_params=pltpu.CompilerParams(
            dimension_semantics=("parallel", "arbitrary"),
            vmem_limit_bytes=vmem_limit,
        ),
        cost_estimate=cost,
    )(s_dst, s_src, z_bf16, adj_i8)

    # 'cat' merge: (H, N, Dout) -> (N, H*Dout). Tiny wrapper-side layout plumbing
    # (H*N*Dout*4 B) compared with the N^2 adjacency stream; keeps the kernel's
    # store a single full-block write per destination tile.
    out = jnp.transpose(out_hnd[:, :n, :], (1, 0, 2)).reshape(n, num_heads * d_out)
    return out


# --------------------------------------------------------------------------- #
# Pure-JAX reference (mirrors the PyTorch/DGL semantics, eval mode)
# --------------------------------------------------------------------------- #
def ref_forward(h, adj, fc_w, attn_w, threshold, num_heads):
    hi = lax.Precision.HIGHEST
    fc_w = fc_w * (jnp.abs(fc_w) > threshold).astype(fc_w.dtype)
    attn_w = attn_w * (jnp.abs(attn_w) > threshold).astype(attn_w.dtype)
    d_out = fc_w.shape[1]
    outs = []
    for hd in range(num_heads):
        z = jnp.dot(h, fc_w[hd].T, precision=hi)
        a_src = attn_w[hd, 0, :d_out]
        a_dst = attn_w[hd, 0, d_out:]
        s_src = jnp.dot(z, a_src, precision=hi)
        s_dst = jnp.dot(z, a_dst, precision=hi)
        e = s_dst[:, None] + s_src[None, :]
        e = jnp.where(e > 0, e, LEAKY_SLOPE * e)
        e = jnp.where(adj != 0, e, -jnp.inf)
        alpha = jax.nn.softmax(e, axis=-1)
        alpha = jnp.where(adj != 0, alpha, 0.0)
        hh = jnp.dot(alpha, z, precision=hi)
        if num_heads != 1:
            hh = jnp.where(hh > 0, hh, jnp.exp(hh) - 1.0)
        outs.append(hh)
    return jnp.concatenate(outs, axis=1)


if __name__ == "__main__":
    # Small shapes consistent with the module.
    N = 64          # number of graph nodes
    IN_DIM = 32
    OUT_DIM = 16
    NUM_HEADS = 2
    THRESHOLD = 0.05

    key = jax.random.PRNGKey(0)
    k_h, k_adj, k_fc, k_attn = jax.random.split(key, 4)

    h = jax.random.normal(k_h, (N, IN_DIM), dtype=jnp.float32)

    # Random sparse directed graph + self-loops (row = destination, col = source).
    adj = (jax.random.uniform(k_adj, (N, N)) < 0.15).astype(jnp.float32)
    adj = jnp.maximum(adj, jnp.eye(N, dtype=jnp.float32))

    # PyTorch Linear weight layouts, no bias.
    fc_w = 0.3 * jax.random.normal(k_fc, (NUM_HEADS, OUT_DIM, IN_DIM),
                                   dtype=jnp.float32)
    attn_w = 0.3 * jax.random.normal(k_attn, (NUM_HEADS, 1, 2 * OUT_DIM),
                                     dtype=jnp.float32)

    fwd = jax.jit(gat_layer_forward, static_argnames=("num_heads",))
    out = fwd(h, adj, fc_w, attn_w, THRESHOLD, num_heads=NUM_HEADS)
    out = jax.block_until_ready(out)

    ref = ref_forward(h, adj, fc_w, attn_w, THRESHOLD, NUM_HEADS)
    assert out.shape == (N, NUM_HEADS * OUT_DIM), out.shape
    max_err = float(jnp.max(jnp.abs(out - ref)))
    # Tolerance covers bf16 MXU aggregation + EUP approximate reciprocal in-kernel.
    assert jnp.allclose(out, ref, atol=2e-2, rtol=2e-2), max_err

    print("KERNEL_OK")
</pallas_src>

<mosaic_0001>
module attributes {stable_mosaic.version = 11 : i64} {
  func.func @gat_kernel(%arg0: i32, %arg1: i32, %arg2: memref<2x128xf32, #tpu.memory_space<vmem>>, %arg3: memref<2x128xf32, #tpu.memory_space<vmem>>, %arg4: memref<2x128x16xbf16, #tpu.memory_space<vmem>>, %arg5: memref<128x128xi8, #tpu.memory_space<vmem>>, %arg6: memref<2x128x16xf32, #tpu.memory_space<vmem>>, %arg7: memref<2x128x1xf32, #tpu.memory_space<vmem>>, %arg8: memref<2x128x1xf32, #tpu.memory_space<vmem>>, %arg9: memref<2x128x16xf32, #tpu.memory_space<vmem>>) attributes {dimension_semantics = [#tpu.dimension_semantics<parallel>, #tpu.dimension_semantics<arbitrary>], iteration_bounds = array<i64: 1, 1>, scalar_prefetch = 0 : i64, scratch_operands = 3 : i64, tpu.core_type = #tpu.core_type<tc>, window_params = [{transform_indices = @transform_0, window_bounds = array<i64: 2, 128>}, {transform_indices = @transform_1, window_bounds = array<i64: 2, 128>}, {transform_indices = @transform_2, window_bounds = array<i64: 2, 128, 16>}, {transform_indices = @transform_3, window_bounds = array<i64: 128, 128>}, {transform_indices = @transform_4, window_bounds = array<i64: 2, 128, 16>}]} {
    %c0_i32 = arith.constant 0 : i32
    %0 = arith.cmpi eq, %arg1, %c0_i32 : i32
    %1 = arith.extui %0 : i1 to i32
    %c0_i32_0 = arith.constant 0 : i32
    %2 = arith.cmpi ne, %1, %c0_i32_0 : i32
    scf.if %2 {
      %cst_33 = arith.constant -1.000000e+30 : f32
      %48 = vector.broadcast %cst_33 : f32 to vector<2x128x1xf32>
      %c0_34 = arith.constant 0 : index
      %c0_35 = arith.constant 0 : index
      %c0_36 = arith.constant 0 : index
      %49 = vector.load %arg7[%c0_34, %c0_35, %c0_36] : memref<2x128x1xf32, #tpu.memory_space<vmem>>, vector<2x128x1xf32>
      tpu.vector_store %arg7[%c0_34, %c0_35, %c0_36], %48 {strides = array<i32>} : memref<2x128x1xf32, #tpu.memory_space<vmem>>, vector<2x128x1xf32>,
      %cst_37 = arith.constant 0.000000e+00 : f32
      %50 = vector.broadcast %cst_37 : f32 to vector<2x128x1xf32>
      %c0_38 = arith.constant 0 : index
      %c0_39 = arith.constant 0 : index
      %c0_40 = arith.constant 0 : index
      %51 = vector.load %arg8[%c0_38, %c0_39, %c0_40] : memref<2x128x1xf32, #tpu.memory_space<vmem>>, vector<2x128x1xf32>
      tpu.vector_store %arg8[%c0_38, %c0_39, %c0_40], %50 {strides = array<i32>} : memref<2x128x1xf32, #tpu.memory_space<vmem>>, vector<2x128x1xf32>,
      %cst_41 = arith.constant 0.000000e+00 : f32
      %52 = vector.broadcast %cst_41 : f32 to vector<2x128x16xf32>
      %c0_42 = arith.constant 0 : index
      %c0_43 = arith.constant 0 : index
      %c0_44 = arith.constant 0 : index
      %53 = vector.load %arg9[%c0_42, %c0_43, %c0_44] : memref<2x128x16xf32, #tpu.memory_space<vmem>>, vector<2x128x16xf32>
      tpu.vector_store %arg9[%c0_42, %c0_43, %c0_44], %52 {strides = array<i32>} : memref<2x128x16xf32, #tpu.memory_space<vmem>>, vector<2x128x16xf32>,
    } else {
    }
    %c0 = arith.constant 0 : index
    %c0_1 = arith.constant 0 : index
    %3 = vector.load %arg2[%c0, %c0_1] : memref<2x128xf32, #tpu.memory_space<vmem>>, vector<2x128xf32>
    %4 = vector.shape_cast %3 : vector<2x128xf32> to vector<2x128x1xf32>
    %c0_2 = arith.constant 0 : index
    %c0_3 = arith.constant 0 : index
    %5 = vector.load %arg3[%c0_2, %c0_3] : memref<2x128xf32, #tpu.memory_space<vmem>>, vector<2x128xf32>
    %6 = vector.shape_cast %5 : vector<2x128xf32> to vector<2x1x128xf32>
    %7 = vector.broadcast %4 : vector<2x128x1xf32> to vector<2x128x128xf32>
    %8 = vector.broadcast %6 : vector<2x1x128xf32> to vector<2x128x128xf32>
    %9 = arith.addf %7, %8 : vector<2x128x128xf32>
    %cst = arith.constant 0.00999999977 : f32
    %10 = vector.broadcast %cst : f32 to vector<2x128x128xf32>
    %11 = arith.mulf %10, %9 : vector<2x128x128xf32>
    %12 = arith.maximumf %9, %11 : vector<2x128x128xf32>
    %c0_4 = arith.constant 0 : index
    %c0_5 = arith.constant 0 : index
    %13 = vector.load %arg5[%c0_4, %c0_5] : memref<128x128xi8, #tpu.memory_space<vmem>>, vector<128x128xi8>
    %c0_i8 = arith.constant 0 : i8
    %14 = vector.broadcast %c0_i8 : i8 to vector<128x128xi8>
    %15 = arith.cmpi ne, %13, %14 : vector<128x128xi8>
    %16 = vector.shape_cast %15 : vector<128x128xi1> to vector<1x128x128xi1>
    %cst_6 = arith.constant -1.000000e+30 : f32
    %17 = vector.shape_cast %16 : vector<1x128x128xi1> to vector<1x128x128xi1>
    %18 = vector.broadcast %17 : vector<1x128x128xi1> to vector<2x128x128xi1>
    %19 = vector.broadcast %cst_6 : f32 to vector<2x128x128xf32>
    %20 = arith.select %18, %12, %19 : vector<2x128x128xi1>, vector<2x128x128xf32>
    %c0_7 = arith.constant 0 : index
    %c0_8 = arith.constant 0 : index
    %c0_9 = arith.constant 0 : index
    %21 = vector.load %arg7[%c0_7, %c0_8, %c0_9] : memref<2x128x1xf32, #tpu.memory_space<vmem>>, vector<2x128x1xf32>
    %cst_10 = arith.constant dense<0xFF800000> : vector<2x128xf32>
    %22 = vector.multi_reduction <maximumf>, %20, %cst_10 [2] : vector<2x128x128xf32> to vector<2x128xf32>
    %23 = vector.shape_cast %22 : vector<2x128xf32> to vector<2x128x1xf32>
    %24 = arith.maximumf %21, %23 : vector<2x128x1xf32>
    %25 = arith.subf %21, %24 : vector<2x128x1xf32>
    %26 = math.exp %25 : vector<2x128x1xf32>
    %27 = vector.broadcast %24 : vector<2x128x1xf32> to vector<2x128x128xf32>
    %28 = arith.subf %20, %27 : vector<2x128x128xf32>
    %29 = math.exp %28 : vector<2x128x128xf32>
    %c0_11 = arith.constant 0 : index
    %c0_12 = arith.constant 0 : index
    %c0_13 = arith.constant 0 : index
    %30 = vector.load %arg8[%c0_11, %c0_12, %c0_13] : memref<2x128x1xf32, #tpu.memory_space<vmem>>, vector<2x128x1xf32>
    %31 = arith.mulf %26, %30 : vector<2x128x1xf32>
    %cst_14 = arith.constant dense<0.000000e+00> : vector<2x128xf32>
    %32 = vector.multi_reduction <add>, %29, %cst_14 [2] : vector<2x128x128xf32> to vector<2x128xf32>
    %33 = vector.shape_cast %32 : vector<2x128xf32> to vector<2x128x1xf32>
    %34 = arith.addf %31, %33 : vector<2x128x1xf32>
    %c0_15 = arith.constant 0 : index
    %c0_16 = arith.constant 0 : index
    %c0_17 = arith.constant 0 : index
    %35 = vector.load %arg8[%c0_15, %c0_16, %c0_17] : memref<2x128x1xf32, #tpu.memory_space<vmem>>, vector<2x128x1xf32>
    tpu.vector_store %arg8[%c0_15, %c0_16, %c0_17], %34 {strides = array<i32>} : memref<2x128x1xf32, #tpu.memory_space<vmem>>, vector<2x128x1xf32>,
    %c0_18 = arith.constant 0 : index
    %c0_19 = arith.constant 0 : index
    %c0_20 = arith.constant 0 : index
    %36 = vector.load %arg9[%c0_18, %c0_19, %c0_20] : memref<2x128x16xf32, #tpu.memory_space<vmem>>, vector<2x128x16xf32>
    %37 = vector.broadcast %26 : vector<2x128x1xf32> to vector<2x128x16xf32>
    %38 = arith.mulf %37, %36 : vector<2x128x16xf32>
    %39 = arith.truncf %29 : vector<2x128x128xf32> to vector<2x128x128xbf16>
    %c0_21 = arith.constant 0 : index
    %c0_22 = arith.constant 0 : index
    %c0_23 = arith.constant 0 : index
    %40 = vector.load %arg4[%c0_21, %c0_22, %c0_23] : memref<2x128x16xbf16, #tpu.memory_space<vmem>>, vector<2x128x16xbf16>
    "tpu.trace_start"() <{level = 10 : i32, message = "hqs,hsd->hqd"}> : () -> ()
    %cst_24 = arith.constant dense<0.000000e+00> : vector<2x128x16xf32>
    %41 = tpu.matmul %39, %40, %cst_24 {dimension_numbers = #tpu.dot_dimension_numbers<[2], [1], [1], [2], [0, 0, 0, 1, 1, 2], [0], [0]>} : vector<2x128x128xbf16>, vector<2x128x16xbf16>, vector<2x128x16xf32> -> vector<2x128x16xf32>
    "tpu.trace_stop"() : () -> ()
    %42 = arith.addf %38, %41 : vector<2x128x16xf32>
    %c0_25 = arith.constant 0 : index
    %c0_26 = arith.constant 0 : index
    %c0_27 = arith.constant 0 : index
    %43 = vector.load %arg9[%c0_25, %c0_26, %c0_27] : memref<2x128x16xf32, #tpu.memory_space<vmem>>, vector<2x128x16xf32>
    tpu.vector_store %arg9[%c0_25, %c0_26, %c0_27], %42 {strides = array<i32>} : memref<2x128x16xf32, #tpu.memory_space<vmem>>, vector<2x128x16xf32>,
    %c0_28 = arith.constant 0 : index
    %c0_29 = arith.constant 0 : index
    %c0_30 = arith.constant 0 : index
    %44 = vector.load %arg7[%c0_28, %c0_29, %c0_30] : memref<2x128x1xf32, #tpu.memory_space<vmem>>, vector<2x128x1xf32>
    tpu.vector_store %arg7[%c0_28, %c0_29, %c0_30], %24 {strides = array<i32>} : memref<2x128x1xf32, #tpu.memory_space<vmem>>, vector<2x128x1xf32>,
    %c0_i32_31 = arith.constant 0 : i32
    %45 = arith.cmpi eq, %arg1, %c0_i32_31 : i32
    %46 = arith.extui %45 : i1 to i32
    %c0_i32_32 = arith.constant 0 : i32
    %47 = arith.cmpi ne, %46, %c0_i32_32 : i32
    scf.if %47 {
      %c0_33 = arith.constant 0 : index
      %c0_34 = arith.constant 0 : index
      %c0_35 = arith.constant 0 : index
      %48 = vector.load %arg9[%c0_33, %c0_34, %c0_35] : memref<2x128x16xf32, #tpu.memory_space<vmem>>, vector<2x128x16xf32>
      %c0_36 = arith.constant 0 : index
      %c0_37 = arith.constant 0 : index
      %c0_38 = arith.constant 0 : index
      %49 = vector.load %arg8[%c0_36, %c0_37, %c0_38] : memref<2x128x1xf32, #tpu.memory_space<vmem>>, vector<2x128x1xf32>
      %50 = tpu.reciprocal %49 {approx = true} : vector<2x128x1xf32> -> vector<2x128x1xf32>
      %51 = vector.broadcast %50 : vector<2x128x1xf32> to vector<2x128x16xf32>
      %52 = arith.mulf %48, %51 : vector<2x128x16xf32>
      %c0_39 = arith.constant 0 : index
      %c0_40 = arith.constant 0 : index
      %c0_41 = arith.constant 0 : index
      %53 = vector.load %arg7[%c0_39, %c0_40, %c0_41] : memref<2x128x1xf32, #tpu.memory_space<vmem>>, vector<2x128x1xf32>
      %cst_42 = arith.constant -5.000000e+29 : f32
      %54 = vector.broadcast %cst_42 : f32 to vector<2x128x1xf32>
      %55 = arith.cmpf ogt, %53, %54 : vector<2x128x1xf32>
      %cst_43 = arith.constant 0.000000e+00 : f32
      %56 = vector.shape_cast %55 : vector<2x128x1xi1> to vector<2x128x1xi1>
      %57 = vector.broadcast %56 : vector<2x128x1xi1> to vector<2x128x16xi1>
      %58 = vector.broadcast %cst_43 : f32 to vector<2x128x16xf32>
      %59 = arith.select %57, %52, %58 : vector<2x128x16xi1>, vector<2x128x16xf32>
      %cst_44 = arith.constant 0.000000e+00 : f32
      %60 = vector.broadcast %cst_44 : f32 to vector<2x128x16xf32>
      %61 = arith.cmpf ogt, %59, %60 : vector<2x128x16xf32>
      %cst_45 = arith.constant 0.000000e+00 : f32
      %62 = vector.broadcast %cst_45 : f32 to vector<2x128x16xf32>
      %63 = arith.minimumf %59, %62 : vector<2x128x16xf32>
      %64 = math.exp %63 : vector<2x128x16xf32>
      %cst_46 = arith.constant 1.000000e+00 : f32
      %65 = vector.broadcast %cst_46 : f32 to vector<2x128x16xf32>
      %66 = arith.subf %64, %65 : vector<2x128x16xf32>
      %67 = arith.select %61, %59, %66 : vector<2x128x16xi1>, vector<2x128x16xf32>
      %c0_47 = arith.constant 0 : index
      %c0_48 = arith.constant 0 : index
      %c0_49 = arith.constant 0 : index
      %68 = vector.load %arg6[%c0_47, %c0_48, %c0_49] : memref<2x128x16xf32, #tpu.memory_space<vmem>>, vector<2x128x16xf32>
      tpu.vector_store %arg6[%c0_47, %c0_48, %c0_49], %67 {strides = array<i32>} : memref<2x128x16xf32, #tpu.memory_space<vmem>>, vector<2x128x16xf32>,
    } else {
    }
    return
  }
  func.func @transform_0(%arg0: i32, %arg1: i32) -> (i32, i32) {
    %c0_i32 = arith.constant 0 : i32
    %c0_i32_0 = arith.constant 0 : i32
    return %c0_i32, %arg0 : i32, i32
  }
  func.func @transform_1(%arg0: i32, %arg1: i32) -> (i32, i32) {
    %c0_i32 = arith.constant 0 : i32
    %c0_i32_0 = arith.constant 0 : i32
    return %c0_i32, %arg1 : i32, i32
  }
  func.func @transform_2(%arg0: i32, %arg1: i32) -> (i32, i32, i32) {
    %c0_i32 = arith.constant 0 : i32
    %c0_i32_0 = arith.constant 0 : i32
    %c0_i32_1 = arith.constant 0 : i32
    return %c0_i32, %arg1, %c0_i32_0 : i32, i32, i32
  }
  func.func @transform_3(%arg0: i32, %arg1: i32) -> (i32, i32) {
    %c0_i32 = arith.constant 0 : i32
    return %arg0, %arg1 : i32, i32
  }
  func.func @transform_4(%arg0: i32, %arg1: i32) -> (i32, i32, i32) {
    %c0_i32 = arith.constant 0 : i32
    %c0_i32_0 = arith.constant 0 : i32
    %c0_i32_1 = arith.constant 0 : i32
    return %c0_i32, %arg0, %c0_i32_0 : i32, i32, i32
  }
}

</mosaic_0001>

<bundles_post_ra>
// kernel: gat_layer_forward.1
= control target key start
LH: loop header
LB: loop body
LE: loop exit
PB: predicated region body
PF: predicated region fallthrough
CT: control target
= control target key end

     0   :  { %v123_v0 = vlaneseq  ;;  %v3105_v1 = vmov 1966171168   ;;  %v4830_v3 = vmov 0   ;;  %vm4822_vm0 = vcmask 7168   ;;  %s4817_s0 = inlined_call_operand.vmem [shape: f32[2,128], index: 0, kind: input, shape index: {}]   ;;  %s4818_s1 = inlined_call_operand.vmem [shape: f32[2,128], index: 1, kind: input, shape index: {}]   ;;  %s4819_s3 = inlined_call_operand.vmem [shape: s8[128,128], index: 3, kind: input, shape index: {}]   ;;  %s4820_s2 = inlined_call_operand.vmem [shape: bf16[2,128,16], index: 2, kind: input, shape index: {}]   ;;  %s4821_s4 = inlined_call_operand.vmem [shape: f32[2,128,16], index: 4, kind: output, shape index: {}]  }
   0x1   :  { %v268_v2 = vunpack.c.l.s4 %v3105_v1  ;;  %2831 = vset.pattern.permute.xlu1 %v4830_v3  ;;  %2832 = vset.pattern.permute.xlu0 %v4830_v3  ;;  %v122_v5 = vld [vmem:[%s4817_s0] sm:$0x3]  ;;  %v3107_v18 = vmov -1e+30   ;;  %v388_v20 = vld [vmem:[%s4819_s3 + $0x8] sm:$0xff]  ;;  %v389_v27 = vld [vmem:[%s4819_s3 + $0x10] sm:$0xff] }
   0x2   :  { %v124_v4 = vshrl.u32 %v123_v0, 7  ;;  %v2682_v8 = vld.sshfl [vmem:[%s4818_s1] sm:$0x11 pattern:$0x75316420]  ;;  %25 = vst.msk [vmem:[#allocation2] sm:$0xff] %vm4822_vm0, %v3107_v18  ;;  %vm392_vm2 = vnez %v388_v20  ;;  %vm393_vm3 = vnez %v389_v27 }
   0x3   :  { %v269_v6 = vunpack.c.0.s8 %v268_v2  ;;  %v266_v13 = vcombine.high %v2682_v8, %v2682_v8  ;;  %26 = vst.msk [vmem:[#allocation2 + $0x8] sm:$0xff] %vm4822_vm0, %v3107_v18  ;;  %27 = vst.msk [vmem:[#allocation2 + $0x10] sm:$0xff] %vm4822_vm0, %v3107_v18  ;;  %v387_v19 = vld [vmem:[%s4819_s3] sm:$0xff]  ;;  %v396_v25 = vsel %vm392_vm2, 16843009, %v4830_v3  ;;  %v390_v47 = vld [vmem:[%s4819_s3 + $0x18] sm:$0xff] }
   0x4   :  { %v125_v7 = vsub.s32 0, %v124_v4  ;;  %v192_v16 = vsub.s32 1, %v124_v4  ;;  %28 = vst.msk [vmem:[#allocation2 + $0x18] sm:$0xff] %vm4822_vm0, %v3107_v18  ;;  %29 = vst.msk [vmem:[#allocation2 + $0x20] sm:$0xff] %vm4822_vm0, %v3107_v18  ;;  %vm391_vm1 = vnez %v387_v19  ;;  %v403_v30 = vunpack.c.0.s8 %v396_v25 }
   0x5   :  { %v272_v9 = vsub.s32 %v269_v6, %v124_v4  ;;  %30 = vst.msk [vmem:[#allocation2 + $0x28] sm:$0xff] %vm4822_vm0, %v3107_v18  ;;  %31 = vst.msk [vmem:[#allocation2 + $0x30] sm:$0xff] %vm4822_vm0, %v3107_v18  ;;  %v395_v21 = vsel %vm391_vm1, 16843009, %v4830_v3  ;;  %v404_v32 = vunpack.c.1.s8 %v396_v25  ;;  %v405_v34 = vunpack.c.2.s8 %v396_v25 }
   0x6   :  { %v126_v10 = vrot.slane %v122_v5, %v125_v7  ;;  %v193_v17 = vrot.slane %v122_v5, %v192_v16  ;;  %32 = vst.msk [vmem:[#allocation2 + $0x38] sm:$0xff] %vm4822_vm0, %v3107_v18  ;;  %33 = vst.msk [vmem:[#allocation2 + $0x40] sm:$0xff] %vm4822_vm0, %v3107_v18  ;;  %v399_v22 = vunpack.c.0.s8 %v395_v21  ;;  %v401_v23 = vunpack.c.2.s8 %v395_v21 }
   0x7   :  { %v273_v11 = vrot.slane %v2682_v8, %v272_v9  ;;  %v280_v14 = vrot.slane %v266_v13, %v272_v9  ;;  %34 = vst.msk [vmem:[#allocation2 + $0x48] sm:$0xff] %vm4822_vm0, %v3107_v18  ;;  %35 = vst.msk [vmem:[#allocation2 + $0x50] sm:$0xff] %vm4822_vm0, %v3107_v18  ;;  %v400_v24 = vunpack.c.1.s8 %v395_v21  ;;  %v402_v26 = vunpack.c.3.s8 %v395_v21 }
   0x8   :  { %128 = vbcast.lane.b32.xlu0 %v126_v10, 256  ;;  %136 = vbcast.lane.b32.xlu1 %v126_v10, 272  ;;  %36 = vst.msk [vmem:[#allocation2 + $0x58] sm:$0xff] %vm4822_vm0, %v3107_v18  ;;  %37 = vst.msk [vmem:[#allocation2 + $0x60] sm:$0xff] %vm4822_vm0, %v3107_v18  ;;  %v415_v28 = vpack.c.b16 %v399_v22, %v399_v22  ;;  %v419_v29 = vpack.c.b16 %v401_v23, %v401_v23  ;;  %v397_v40 = vsel %vm393_vm3, 16843009, %v4830_v3 }
   0x9   :  { %v3142_v12 = vrot.slane %v273_v11, %v125_v7  ;;  %v3144_v15 = vrot.slane %v280_v14, %v125_v7  ;;  %38 = vst.msk [vmem:[#allocation2 + $0x68] sm:$0xff] %vm4822_vm0, %v3107_v18  ;;  %39 = vst.msk [vmem:[#allocation2 + $0x70] sm:$0xff] %vm4822_vm0, %v3107_v18  ;;  %v417_v31 = vpack.c.b16 %v400_v24, %v400_v24  ;;  %v407_v44 = vunpack.c.0.s8 %v397_v40 }
   0xa   :  { %40 = vst.msk [vmem:[#allocation2 + $0x78] sm:$0xff] %vm4822_vm0, %v3107_v18  ;;  %41 = vst.msk [vmem:[#allocation2 + $0x80] sm:$0xff] %vm4822_vm0, %v3107_v18  ;;  %v421_v33 = vpack.c.b16 %v402_v26, %v402_v26  ;;  %v416_v35 = vpack.c.b8 %v415_v28, %v415_v28  ;;  %v420_v36 = vpack.c.b8 %v419_v29, %v419_v29  ;;  %v406_v46 = vunpack.c.3.s8 %v396_v25 }
   0xb   :  { %42 = vst.msk [vmem:[#allocation2 + $0x88] sm:$0xff] %vm4822_vm0, %v3107_v18  ;;  %43 = vst.msk [vmem:[#allocation2 + $0x90] sm:$0xff] %vm4822_vm0, %v3107_v18  ;;  %v423_v37 = vpack.c.b16 %v403_v30, %v403_v30  ;;  %v418_v38 = vpack.c.b8 %v417_v31, %v417_v31  ;;  %v425_v39 = vpack.c.b16 %v404_v32, %v404_v32  ;;  %v409_v53 = vunpack.c.2.s8 %v397_v40 }
   0xc   :  { %132 = vbcast.lane.b32.xlu0 %v126_v10, 264  ;;  %140 = vbcast.lane.b32.xlu1 %v126_v10, 280  ;;  %44 = vst.msk [vmem:[#allocation2 + $0x98] sm:$0xff] %vm4822_vm0, %v3107_v18  ;;  %45 = vst.msk [vmem:[#allocation2 + $0xa0] sm:$0xff] %vm4822_vm0, %v3107_v18  ;;  %v422_v41 = vpack.c.b8 %v421_v33, %v421_v33  ;;  %v427_v42 = vpack.c.b16 %v405_v34, %v405_v34  ;;  %vm447_vm4 = vnez %v416_v35 }
   0xd   :  { %46 = vst.msk [vmem:[#allocation2 + $0xa8] sm:$0xff] %vm4822_vm0, %v3107_v18  ;;  %47 = vst.msk [vmem:[#allocation2 + $0xb0] sm:$0xff] %vm4822_vm0, %v3107_v18  ;;  %vm449_vm5 = vnez %v420_v36  ;;  %v424_v43 = vpack.c.b8 %v423_v37, %v423_v37  ;;  %vm448_vm6 = vnez %v418_v38  ;;  %v426_v45 = vpack.c.b8 %v425_v39, %v425_v39 }
   0xe   :  { %48 = vst.msk [vmem:[#allocation2 + $0xb8] sm:$0xff] %vm4822_vm0, %v3107_v18  ;;  %49 = vst.msk [vmem:[#allocation2 + $0xc0] sm:$0xff] %vm4822_vm0, %v3107_v18  ;;  %v463_v48 = vsel %vm447_vm4, 16843009, %v4830_v3  ;;  %v465_v49 = vsel %vm449_vm5, 16843009, %v4830_v3  ;;  %vm450_vm7 = vnez %v422_v41  ;;  %v428_v50 = vpack.c.b8 %v427_v42, %v427_v42 }
   0xf   :  { %50 = vst.msk [vmem:[#allocation2 + $0xc8] sm:$0xff] %vm4822_vm0, %v3107_v18  ;;  %51 = vst.msk [vmem:[#allocation2 + $0xd0] sm:$0xff] %vm4822_vm0, %v3107_v18  ;;  %v464_v51 = vsel %vm448_vm6, 16843009, %v4830_v3  ;;  %vm451_vm8 = vnez %v424_v43  ;;  %v431_v52 = vpack.c.b16 %v407_v44, %v407_v44  ;;  %vm452_vm9 = vnez %v426_v45 }
  0x10   :  { %144 = vbcast.lane.b32.xlu0 %v126_v10, 288  ;;  %148 = vbcast.lane.b32.xlu1 %v126_v10, 296  ;;  %52 = vst.msk [vmem:[#allocation2 + $0xd8] sm:$0xff] %vm4822_vm0, %v3107_v18  ;;  %53 = vst.msk [vmem:[#allocation2 + $0xe0] sm:$0xff] %vm4822_vm0, %v3107_v18  ;;  %v429_v54 = vpack.c.b16 %v406_v46, %v406_v46  ;;  %vm394_vm10 = vnez %v390_v47  ;;  %v408_v55 = vunpack.c.1.s8 %v397_v40  ;;  %v479_v56 = vunpack.c.0.s8 %v463_v48 }
  0x11   :  { %54 = vst.msk [vmem:[#allocation2 + $0xe8] sm:$0xff] %vm4822_vm0, %v3107_v18  ;;  %55 = vst.msk [vmem:[#allocation2 + $0xf0] sm:$0xff] %vm4822_vm0, %v3107_v18  ;;  %v466_v57 = vsel %vm450_vm7, 16843009, %v4830_v3  ;;  %v481_v58 = vunpack.c.0.s8 %v465_v49  ;;  %v480_v59 = vunpack.c.0.s8 %v464_v51  ;;  %v467_v60 = vsel %vm451_vm8, 16843009, %v4830_v3 }
  0x12   :  { %56 = vst.msk [vmem:[#allocation2 + $0xf8] sm:$0xff] %vm4822_vm0, %v3107_v18  ;;  %vm453_vm11 = vnez %v428_v50  ;;  %v468_v61 = vsel %vm452_vm9, 16843009, %v4830_v3  ;;  %v432_v62 = vpack.c.b8 %v431_v52, %v431_v52  ;;  %v435_v63 = vpack.c.b16 %v409_v53, %v409_v53 }
  0x13   :  { %v3200_v0 = vsel %vm394_vm10, 16843009, %v4830_v3  ;;  %v482_v1 = vunpack.c.0.s8 %v466_v57  ;;  %v430_v2 = vpack.c.b8 %v429_v54, %v429_v54  ;;  %v433_v4 = vpack.c.b16 %v408_v55, %v408_v55 }
  0x14   :  { %152 = vbcast.lane.b32.xlu0 %v126_v10, 304  ;;  %156 = vbcast.lane.b32.xlu1 %v126_v10, 312  ;;  %vm3202_vm12 = vcmp.ne.s32.totalorder %v479_v56, 0  ;;  %v483_v8 = vunpack.c.0.s8 %v467_v60  ;;  %v469_v9 = vsel %vm453_vm11, 16843009, %v4830_v3  ;;  %v484_v14 = vunpack.c.0.s8 %v468_v61 }
  0x15   :  { %v411_v16 = vunpack.c.0.s8 %v3200_v0  ;;  %vm3210_vm13 = vcmp.ne.s32.totalorder %v481_v58, 0  ;;  %vm3214_vm14 = vcmp.ne.s32.totalorder %v480_v59, 0  ;;  %vm3218_vm15 = vnez %v432_v62 }
  0x16   :  { %v436_v20 = vpack.c.b8 %v435_v63, %v435_v63  ;;  %vm3222_vm1 = vcmp.ne.s32.totalorder %v482_v1, 0  ;;  %vm3226_vm2 = vnez %v430_v2  ;;  %v434_v25 = vpack.c.b8 %v433_v4, %v433_v4 }
  0x17   :  { %vm3230_vm3 = vcmp.ne.s32.totalorder %v483_v8, 0  ;;  %v485_v29 = vunpack.c.0.s8 %v469_v9  ;;  %v413_v30 = vunpack.c.2.s8 %v3200_v0  ;;  %v412_v32 = vunpack.c.1.s8 %v3200_v0 }
  0x18   :  { %160 = vbcast.lane.b32.xlu0 %v126_v10, 320  ;;  %164 = vbcast.lane.b32.xlu1 %v126_v10, 328  ;;  %vm3238_vm4 = vcmp.ne.s32.totalorder %v484_v14, 0  ;;  %v439_v37 = vpack.c.b16 %v411_v16, %v411_v16  ;;  %v471_v39 = vsel %vm3218_vm15, 16843009, %v4830_v3  ;;  %vm3245_vm5 = vnez %v436_v20 }
  0x19   :  { %v470_v41 = vsel %vm3226_vm2, 16843009, %v4830_v3  ;;  %vm3256_vm6 = vnez %v434_v25  ;;  %vm3261_vm7 = vcmp.ne.s32.totalorder %v485_v29, 0  ;;  %v443_v49 = vpack.c.b16 %v413_v30, %v413_v30 }
  0x1a   :  { %v441_v51 = vpack.c.b16 %v412_v32, %v412_v32  ;;  %v414_v52 = vunpack.c.3.s8 %v3200_v0  ;;  %v487_v56 = vunpack.c.0.s8 %v471_v39  ;;  %v486_v59 = vunpack.c.0.s8 %v470_v41 }
  0x1b   :  { %v472_v60 = vsel %vm3256_vm6, 16843009, %v4830_v3  ;;  %v440_v0 = vpack.c.b8 %v439_v37, %v439_v37  ;;  %v473_v4 = vsel %vm3245_vm5, 16843009, %v4830_v3  ;;  %v4895_v16 = vmov 0 }
  0x1c   :  { %168 = vbcast.lane.b32.xlu0 %v126_v10, 336  ;;  %172 = vbcast.lane.b32.xlu1 %v126_v10, 344  ;;  %v445_v8 = vpack.c.b16 %v414_v52, %v414_v52  ;;  %vm3294_vm9 = vcmp.ne.s32.totalorder %v486_v59, 0  ;;  %v444_v19 = vpack.c.b8 %v443_v49, %v443_v49  ;;  %v488_v20 = vunpack.c.0.s8 %v472_v60 }
  0x1d   :  { %v4896_v16 = vsel %vm3294_vm9, 4294967295, %v4895_v16  ;;  %vm459_vm10 = vnez %v440_v0  ;;  %vm3317_vm15 = vcmp.ne.s32.totalorder %v487_v56, 0  ;;  %v4901_v37 = vmov 0 }
  0x1e   :  { %v4902_v37 = vsel %vm3317_vm15, 4294967295, %v4901_v37  ;;  %v475_v39 = vsel %vm459_vm10, 16843009, %v4830_v3  ;;  %vm3322_vm2 = vcmp.ne.s32.totalorder %v488_v20, 0  ;;  %vm461_vm5 = vnez %v444_v19 }
  0x1f   :  { %v4909_v56 = vmov 0  ;;  %v4919_v30 = vmov 0 }
  0x20   :  { %176 = vbcast.lane.b32.xlu0 %v126_v10, 352  ;;  %180 = vbcast.lane.b32.xlu1 %v126_v10, 360 }
  0x24   :  { %184 = vbcast.lane.b32.xlu0 %v126_v10, 368  ;;  %188 = vbcast.lane.b32.xlu1 %v126_v10, 376  ;;  %v410_v10 = vunpack.c.3.s8 %v397_v40  ;;  %v4903_v40 = vmov 0 }
  0x25   :  { %v4904_v40 = vsel %vm3322_vm2, 4294967295, %v4903_v40 }
  0x26   :  { %v437_v31 = vpack.c.b16 %v410_v10, %v410_v10 }
  0x28   :  { %195 = vbcast.lane.b32.xlu0 %v193_v17, 256  ;;  %199 = vbcast.lane.b32.xlu1 %v193_v17, 264  ;;  %v438_v50 = vpack.c.b8 %v437_v31, %v437_v31  ;;  %v446_v31 = vpack.c.b8 %v445_v8, %v445_v8 }
  0x2a   :  { %vm3284_vm8 = vnez %v438_v50  ;;  %vm3339_vm6 = vnez %v446_v31 }
  0x2b   :  { %v474_v29 = vsel %vm3284_vm8, 16843009, %v4830_v3 }
  0x2c   :  { %203 = vbcast.lane.b32.xlu0 %v193_v17, 272  ;;  %207 = vbcast.lane.b32.xlu1 %v193_v17, 280  ;;  %v490_v49 = vunpack.c.0.s8 %v474_v29 }
  0x2e   :  { %vm3360_vm10 = vcmp.ne.s32.totalorder %v490_v49, 0  ;;  %v3588_v49 = vld [vmem:[#allocation2 + $0x10] sm:$0xff] }
  0x30   :  { %211 = vbcast.lane.b32.xlu0 %v193_v17, 288  ;;  %215 = vbcast.lane.b32.xlu1 %v193_v17, 296 }
  0x34   :  { %219 = vbcast.lane.b32.xlu0 %v193_v17, 304  ;;  %223 = vbcast.lane.b32.xlu1 %v193_v17, 312 }
  0x38   :  { %227 = vbcast.lane.b32.xlu0 %v193_v17, 320  ;;  %231 = vbcast.lane.b32.xlu1 %v193_v17, 328 }
  0x3c   :  { %235 = vbcast.lane.b32.xlu0 %v193_v17, 336  ;;  %239 = vbcast.lane.b32.xlu1 %v193_v17, 344 }
  0x40   :  { %243 = vbcast.lane.b32.xlu0 %v193_v17, 352  ;;  %247 = vbcast.lane.b32.xlu1 %v193_v17, 360 }
  0x44   :  { %251 = vbcast.lane.b32.xlu0 %v193_v17, 368  ;;  %255 = vbcast.lane.b32.xlu1 %v193_v17, 376 }
  0x7a   :  { %v129_v5 = vpop.permute.xlu0 %128  ;;  %v137_v6 = vpop.permute.xlu1 %136 }
  0x7b   :  { %v291_v11 = vadd.f32 %v3142_v12, %v129_v5  ;;  %v293_v13 = vadd.f32 %v3142_v12, %v137_v6  ;;  %v442_v6 = vpack.c.b8 %v441_v51, %v441_v51 }
  0x7d   :  { %v323_v21 = vmul.f32 0.01, %v291_v11  ;;  %v325_v22 = vmul.f32 0.01, %v293_v13  ;;  %vm3311_vm11 = vnez %v442_v6  ;;  %v478_v6 = vsel %vm3339_vm6, 16843009, %v4830_v3 }
  0x7e   :  { %v133_v26 = vpop.permute.xlu0 %132  ;;  %v141_v27 = vpop.permute.xlu1 %140  ;;  %v476_v50 = vsel %vm3311_vm11, 16843009, %v4830_v3  ;;  %v494_v31 = vunpack.c.0.s8 %v478_v6 }
  0x7f   :  { %v292_v33 = vadd.f32 %v3142_v12, %v133_v26  ;;  %v294_v34 = vadd.f32 %v3142_v12, %v141_v27  ;;  %v355_v35 = vmax.f32 %v291_v11, %v323_v21  ;;  %v357_v38 = vmax.f32 %v293_v13, %v325_v22 }
  0x80   :  { %v492_v5 = vunpack.c.0.s8 %v476_v50  ;;  %vm3403_vm0 = vcmp.ne.s32.totalorder %v494_v31, 0 }
  0x81   :  { %v324_v42 = vmul.f32 0.01, %v292_v33  ;;  %v326_v43 = vmul.f32 0.01, %v294_v34  ;;  %v3254_v44 = vsel %vm3202_vm12, %v355_v35, -1e+30 }
  0x82   :  { %4885 = vst [vmem:[#allocation5_spill] sm:$0xff] %v3254_v44  ;;  %607 = vmax.xlane.f32.xlu0 %v3254_v44  ;;  %v145_v46 = vpop.permute.xlu0 %144  ;;  %v149_v47 = vpop.permute.xlu1 %148  ;;  %v3270_v57 = vsel %vm3210_vm13, %v357_v38, -1e+30  ;;  %v489_v38 = vunpack.c.0.s8 %v473_v4  ;;  %v4913_v4 = vmov 0 }
  0x83   :  { %v295_v53 = vadd.f32 %v3142_v12, %v145_v46  ;;  %v356_v54 = vmax.f32 %v292_v33, %v324_v42  ;;  %v296_v55 = vadd.f32 %v3142_v12, %v149_v47  ;;  %4890 = vst [vmem:[#allocation6_spill] sm:$0xff] %v3270_v57  ;;  %v358_v58 = vmax.f32 %v294_v34, %v326_v43 }
  0x84   :  { %vm3345_vm8 = vcmp.ne.s32.totalorder %v489_v38, 0  ;;  %v4914_v4 = vsel %vm3360_vm10, 4294967295, %v4913_v4 }
  0x85   :  { %v327_v61 = vmul.f32 0.01, %v295_v53  ;;  %v3277_v62 = vsel %vm3214_vm14, %v356_v54, -1e+30  ;;  %v328_v63 = vmul.f32 0.01, %v296_v55 }
  0x86   :  { %4891 = vst [vmem:[#allocation7_spill] sm:$0xff] %v3277_v62  ;;  %611 = vmax.xlane.f32.xlu0 %v3270_v57  ;;  %609 = vmax.xlane.f32.xlu1 %v3277_v62  ;;  %v153_v1 = vpop.permute.xlu0 %152  ;;  %v157_v2 = vpop.permute.xlu1 %156  ;;  %v3292_v14 = vsel %vm3222_vm1, %v358_v58, -1e+30  ;;  %v4910_v56 = vsel %vm3345_vm8, 4294967295, %v4909_v56  ;;  %v477_v58 = vsel %vm461_vm5, 16843009, %v4830_v3 }
  0x87   :  { %v297_v9 = vadd.f32 %v3142_v12, %v153_v1  ;;  %v359_v10 = vmax.f32 %v295_v53, %v327_v61  ;;  %v298_v11 = vadd.f32 %v3142_v12, %v157_v2  ;;  %v360_v13 = vmax.f32 %v296_v55, %v328_v63  ;;  %4894 = vst [vmem:[#allocation8_spill] sm:$0xff] %v3292_v14  ;;  %v3688_v3 = vld [vmem:[#allocation2 + $0x60] sm:$0xff]  ;;  %v3876_v57 = vld [vmem:[#allocation2 + $0xe8] sm:$0xff] }
  0x88   :  { %v491_v61 = vunpack.c.0.s8 %v475_v39  ;;  %v493_v20 = vunpack.c.0.s8 %v477_v58  ;;  %vm3383_vm5 = vcmp.ne.s32.totalorder %v492_v5, 0  ;;  %5007 = vst [vmem:[#allocation37_spill] sm:$0xff] %v3876_v57 }
  0x89   :  { %v329_v21 = vmul.f32 0.01, %v297_v9  ;;  %v3300_v22 = vsel %vm3230_vm3, %v359_v10, -1e+30  ;;  %v330_v24 = vmul.f32 0.01, %v298_v11 }
  0x8a   :  { %4897 = vst [vmem:[#allocation9_spill] sm:$0xff] %v3300_v22  ;;  %613 = vmax.xlane.f32.xlu0 %v3292_v14  ;;  %615 = vmax.xlane.f32.xlu1 %v3300_v22  ;;  %v161_v25 = vpop.permute.xlu0 %160  ;;  %v3306_v26 = vsel %vm3238_vm4, %v360_v13, -1e+30  ;;  %v165_v27 = vpop.permute.xlu1 %164  ;;  %vm3374_vm11 = vcmp.ne.s32.totalorder %v491_v61, 0  ;;  %v4920_v30 = vsel %vm3383_vm5, 4294967295, %v4919_v30  ;;  %vm3394_vm6 = vcmp.ne.s32.totalorder %v493_v20, 0 }
  0x8b   :  { %4898 = vst [vmem:[#allocation10_spill] sm:$0xff] %v3306_v26  ;;  %v299_v32 = vadd.f32 %v3142_v12, %v161_v25  ;;  %v361_v33 = vmax.f32 %v297_v9, %v329_v21  ;;  %v300_v34 = vadd.f32 %v3142_v12, %v165_v27  ;;  %v362_v35 = vmax.f32 %v298_v11, %v330_v24  ;;  %v3853_v22 = vld [vmem:[#allocation2 + $0xd8] sm:$0xff] }
  0x8c   :  { %v4916_v25 = vmov 0 }
  0x8d   :  { %v331_v41 = vmul.f32 0.01, %v299_v32  ;;  %v3328_v42 = vsel %vm3261_vm7, %v361_v33, -1e+30  ;;  %v332_v43 = vmul.f32 0.01, %v300_v34 }
  0x8e   :  { %4905 = vst [vmem:[#allocation11_spill] sm:$0xff] %v3328_v42  ;;  %619 = vmax.xlane.f32.xlu1 %v3328_v42  ;;  %v169_v45 = vpop.permute.xlu0 %168  ;;  %617 = vmax.xlane.f32.xlu0 %v3306_v26  ;;  %v3334_v46 = vsel %vm3294_vm9, %v362_v35, -1e+30  ;;  %v173_v47 = vpop.permute.xlu1 %172  ;;  %v4917_v25 = vsel %vm3374_vm11, 4294967295, %v4916_v25 }
  0x8f   :  { %4906 = vst [vmem:[#allocation12_spill] sm:$0xff] %v3334_v46  ;;  %v301_v52 = vadd.f32 %v3142_v12, %v169_v45  ;;  %v363_v53 = vmax.f32 %v299_v32, %v331_v41  ;;  %v302_v54 = vadd.f32 %v3142_v12, %v173_v47  ;;  %v364_v55 = vmax.f32 %v300_v34, %v332_v43  ;;  %v2834_v45 = vld [vmem:[%s4820_s2 + $0x8] sm:$0xff]  }
  0x91   :  { %v333_v59 = vmul.f32 0.01, %v301_v52  ;;  %v3352_v60 = vsel %vm3317_vm15, %v363_v53, -1e+30  ;;  %v334_v63 = vmul.f32 0.01, %v302_v54 }
  0x92   :  { %4911 = vst [vmem:[#allocation13_spill] sm:$0xff] %v3352_v60  ;;  %623 = vmax.xlane.f32.xlu1 %v3352_v60  ;;  %v177_v0 = vpop.permute.xlu0 %176  ;;  %621 = vmax.xlane.f32.xlu0 %v3334_v46  ;;  %v181_v1 = vpop.permute.xlu1 %180  ;;  %v3358_v2 = vsel %vm3322_vm2, %v364_v55, -1e+30  ;;  %v3830_v60 = vld [vmem:[#allocation2 + $0xc8] sm:$0xff] }
  0x93   :  { %4912 = vst [vmem:[#allocation14_spill] sm:$0xff] %v3358_v2  ;;  %v303_v8 = vadd.f32 %v3142_v12, %v177_v0  ;;  %v365_v9 = vmax.f32 %v301_v52, %v333_v59  ;;  %v304_v10 = vadd.f32 %v3142_v12, %v181_v1  ;;  %v366_v11 = vmax.f32 %v302_v54, %v334_v63 }
  0x94   :  { %v4832_v54 = vmov 0.0  }
  0x95   :  { %v335_v13 = vmul.f32 0.01, %v303_v8  ;;  %v3371_v19 = vsel %vm3345_vm8, %v365_v9, -1e+30  ;;  %v336_v21 = vmul.f32 0.01, %v304_v10 }
  0x96   :  { %4915 = vst [vmem:[#allocation15_spill] sm:$0xff] %v3371_v19  ;;  %627 = vmax.xlane.f32.xlu1 %v3371_v19  ;;  %v185_v24 = vpop.permute.xlu0 %184  ;;  %625 = vmax.xlane.f32.xlu0 %v3358_v2  ;;  %v189_v27 = vpop.permute.xlu1 %188  ;;  %v3381_v29 = vsel %vm3360_vm10, %v366_v11, -1e+30 }
  0x97   :  { %4918 = vst [vmem:[#allocation16_spill] sm:$0xff] %v3381_v29  ;;  %v305_v32 = vadd.f32 %v3142_v12, %v185_v24  ;;  %v367_v33 = vmax.f32 %v303_v8, %v335_v13  ;;  %v306_v34 = vadd.f32 %v3142_v12, %v189_v27  ;;  %v368_v35 = vmax.f32 %v304_v10, %v336_v21 }
  0x99   :  { %v337_v38 = vmul.f32 0.01, %v305_v32  ;;  %v3391_v39 = vsel %vm3374_vm11, %v367_v33, -1e+30  ;;  %v338_v41 = vmul.f32 0.01, %v306_v34 }
  0x9a   :  { %4921 = vst [vmem:[#allocation17_spill] sm:$0xff] %v3391_v39  ;;  %631 = vmax.xlane.f32.xlu1 %v3391_v39  ;;  %v196_v43 = vpop.permute.xlu0 %195  ;;  %629 = vmax.xlane.f32.xlu0 %v3381_v29  ;;  %v200_v47 = vpop.permute.xlu1 %199  ;;  %v3401_v12 = vsel %vm3383_vm5, %v368_v35, -1e+30  ;;  %vm4927_vm11 = vcmask 7168   ;;  %v3807_v29 = vld [vmem:[#allocation2 + $0xb8] sm:$0xff] }
  0x9b   :  { %4924 = vst [vmem:[#allocation18_spill] sm:$0xff] %v3401_v12  ;;  %v307_v50 = vadd.f32 %v3144_v15, %v196_v43  ;;  %v369_v51 = vmax.f32 %v305_v32, %v337_v38  ;;  %v308_v52 = vadd.f32 %v3144_v15, %v200_v47  ;;  %v370_v53 = vmax.f32 %v306_v34, %v338_v41  ;;  %vm4928_vm10 = vmmov %vm4927_vm11 }
  0x9c   :  { %57 = vst.msk [vmem:[#allocation3] sm:$0xff] %vm4927_vm11, %v4832_v54  ;;  %vm4929_vm5 = vmmov %vm4928_vm10 }
  0x9d   :  { %58 = vst.msk [vmem:[#allocation3 + $0x8] sm:$0xff] %vm4928_vm10, %v4832_v54  ;;  %vm4930_vm8 = vmmov %vm4929_vm5  ;;  %v339_v55 = vmul.f32 0.01, %v307_v50  ;;  %v3475_v58 = vsel %vm3394_vm6, %v369_v51, -1e+30 }
  0x9e   :  { %59 = vst.msk [vmem:[#allocation3 + $0x10] sm:$0xff] %vm4929_vm5, %v4832_v54  ;;  %vm4931_vm2 = vmmov %vm4929_vm5  ;;  %v340_v59 = vmul.f32 0.01, %v308_v52  ;;  %635 = vmax.xlane.f32.xlu1 %v3475_v58  ;;  %v204_v61 = vpop.permute.xlu0 %203  ;;  %633 = vmax.xlane.f32.xlu0 %v3401_v12  ;;  %v208_v63 = vpop.permute.xlu1 %207  ;;  %v3481_v0 = vsel %vm3403_vm0, %v370_v53, -1e+30 }
  0x9f   :  { %60 = vst.msk [vmem:[#allocation3 + $0x18] sm:$0xff] %vm4930_vm8, %v4832_v54  ;;  %vm4932_vm15 = vmmov %vm4931_vm2  ;;  %v309_v1 = vadd.f32 %v3144_v15, %v204_v61  ;;  %v371_v5 = vmax.f32 %v307_v50, %v339_v55  ;;  %v310_v6 = vadd.f32 %v3144_v15, %v208_v63 }
  0xa0   :  { %61 = vst.msk [vmem:[#allocation3 + $0x20] sm:$0xff] %vm4931_vm2, %v4832_v54  ;;  %vm4933_vm9 = vmmov %vm4931_vm2  ;;  %v372_v8 = vmax.f32 %v308_v52, %v340_v59 }
  0xa1   :  { %62 = vst.msk [vmem:[#allocation3 + $0x28] sm:$0xff] %vm4932_vm15, %v4832_v54  ;;  %vm4934_vm11 = vmmov %vm4931_vm2  ;;  %v341_v9 = vmul.f32 0.01, %v309_v1  ;;  %v3487_v10 = vsel %vm3202_vm12, %v371_v5, -1e+30  ;;  %vm4965_vm12 = vnez %v4896_v16 }
  0xa2   :  { %63 = vst.msk [vmem:[#allocation3 + $0x30] sm:$0xff] %vm4933_vm9, %v4832_v54  ;;  %vm4935_vm10 = vmmov %vm4931_vm2  ;;  %v342_v11 = vmul.f32 0.01, %v310_v6  ;;  %639 = vmax.xlane.f32.xlu1 %v3487_v10  ;;  %v212_v13 = vpop.permute.xlu0 %211  ;;  %637 = vmax.xlane.f32.xlu0 %v3481_v0  ;;  %v216_v20 = vpop.permute.xlu1 %215  ;;  %v3493_v21 = vsel %vm3214_vm14, %v372_v8, -1e+30  ;;  %vm4969_vm14 = vnez %v4904_v40 }
  0xa3   :  { %64 = vst.msk [vmem:[#allocation3 + $0x38] sm:$0xff] %vm4934_vm11, %v4832_v54  ;;  %vm4936_vm5 = vmmov %vm4931_vm2  ;;  %v311_v24 = vadd.f32 %v3144_v15, %v212_v13  ;;  %v373_v27 = vmax.f32 %v309_v1, %v341_v9  ;;  %v312_v31 = vadd.f32 %v3144_v15, %v216_v20 }
  0xa4   :  { %65 = vst.msk [vmem:[#allocation3 + $0x40] sm:$0xff] %vm4935_vm10, %v4832_v54  ;;  %vm4937_vm8 = vmmov %vm4931_vm2  ;;  %v374_v32 = vmax.f32 %v310_v6, %v342_v11 }
  0xa5   :  { %66 = vst.msk [vmem:[#allocation3 + $0x48] sm:$0xff] %vm4936_vm5, %v4832_v54  ;;  %vm4938_vm15 = vmmov %vm4931_vm2  ;;  %v343_v7 = vmul.f32 0.01, %v311_v24  ;;  %v3499_v33 = vsel %vm3210_vm13, %v373_v27, -1e+30  ;;  %vm4967_vm13 = vnez %v4902_v37 }
  0xa6   :  { %67 = vst.msk [vmem:[#allocation3 + $0x50] sm:$0xff] %vm4937_vm8, %v4832_v54  ;;  %vm4939_vm9 = vmmov %vm4931_vm2  ;;  %v344_v34 = vmul.f32 0.01, %v312_v31  ;;  %643 = vmax.xlane.f32.xlu1 %v3499_v33  ;;  %v220_v35 = vpop.permute.xlu0 %219  ;;  %641 = vmax.xlane.f32.xlu0 %v3493_v21  ;;  %v224_v18 = vpop.permute.xlu1 %223  ;;  %v3505_v38 = vsel %vm3222_vm1, %v374_v32, -1e+30  ;;  %vm4971_vm1 = vnez %v4910_v56 }
  0xa7   :  { %68 = vst.msk [vmem:[#allocation3 + $0x58] sm:$0xff] %vm4931_vm2, %v4832_v54  ;;  %vm4940_vm11 = vmmov %vm4931_vm2  ;;  %v313_v41 = vadd.f32 %v3144_v15, %v220_v35  ;;  %v375_v43 = vmax.f32 %v311_v24, %v343_v7  ;;  %v314_v47 = vadd.f32 %v3144_v15, %v224_v18 }
  0xa8   :  { %69 = vst.msk [vmem:[#allocation3 + $0x60] sm:$0xff] %vm4938_vm15, %v4832_v54  ;;  %vm4941_vm10 = vmmov %vm4931_vm2  ;;  %v376_v50 = vmax.f32 %v312_v31, %v344_v34 }
  0xa9   :  { %70 = vst.msk [vmem:[#allocation3 + $0x68] sm:$0xff] %vm4939_vm9, %v4832_v54  ;;  %vm4942_vm5 = vmmov %vm4931_vm2  ;;  %v345_v17 = vmul.f32 0.01, %v313_v41  ;;  %v3511_v51 = vsel %vm3230_vm3, %v375_v43, -1e+30  ;;  %vm4973_vm3 = vnez %v4914_v4 }
  0xaa   :  { %71 = vst.msk [vmem:[#allocation3 + $0x70] sm:$0xff] %vm4940_vm11, %v4832_v54  ;;  %vm4943_vm8 = vmmov %vm4931_vm2  ;;  %v346_v52 = vmul.f32 0.01, %v314_v47  ;;  %647 = vmax.xlane.f32.xlu1 %v3511_v51  ;;  %v228_v53 = vpop.permute.xlu0 %227  ;;  %645 = vmax.xlane.f32.xlu0 %v3505_v38  ;;  %v232_v23 = vpop.permute.xlu1 %231  ;;  %v3517_v55 = vsel %vm3238_vm4, %v376_v50, -1e+30  ;;  %vm4975_vm4 = vnez %v4917_v25 }
  0xab   :  { %72 = vst.msk [vmem:[#allocation3 + $0x78] sm:$0xff] %vm4941_vm10, %v4832_v54  ;;  %vm4944_vm15 = vmmov %vm4931_vm2  ;;  %v315_v59 = vadd.f32 %v3144_v15, %v228_v53  ;;  %v377_v61 = vmax.f32 %v313_v41, %v345_v17  ;;  %v316_v63 = vadd.f32 %v3144_v15, %v232_v23 }
  0xac   :  { %73 = vst.msk [vmem:[#allocation3 + $0x80] sm:$0xff] %vm4942_vm5, %v4832_v54  ;;  %vm4945_vm9 = vmmov %vm4931_vm2  ;;  %v378_v1 = vmax.f32 %v314_v47, %v346_v52 }
  0xad   :  { %74 = vst.msk [vmem:[#allocation3 + $0x88] sm:$0xff] %vm4943_vm8, %v4832_v54  ;;  %vm4946_vm11 = vmmov %vm4931_vm2  ;;  %v347_v28 = vmul.f32 0.01, %v315_v59  ;;  %v3523_v5 = vsel %vm3261_vm7, %v377_v61, -1e+30  ;;  %vm4977_vm7 = vnez %v4920_v30  ;;  %v2833_v30 = vld [vmem:[%s4820_s2] sm:$0xff]  }
  0xae   :  { %75 = vst.msk [vmem:[#allocation3 + $0x90] sm:$0xff] %vm4931_vm2, %v4832_v54  ;;  %vm4947_vm10 = vmmov %vm4931_vm2  ;;  %v348_v6 = vmul.f32 0.01, %v316_v63  ;;  %651 = vmax.xlane.f32.xlu1 %v3523_v5  ;;  %v236_v8 = vpop.permute.xlu0 %235  ;;  %649 = vmax.xlane.f32.xlu0 %v3517_v55  ;;  %v240_v36 = vpop.permute.xlu1 %239  ;;  %v3529_v9 = vsel %vm4965_vm12, %v378_v1, -1e+30 }
  0xaf   :  { %76 = vst.msk [vmem:[#allocation3 + $0x98] sm:$0xff] %vm4944_vm15, %v4832_v54  ;;  %vm4948_vm5 = vmmov %vm4931_vm2  ;;  %v317_v11 = vadd.f32 %v3144_v15, %v236_v8  ;;  %v379_v13 = vmax.f32 %v315_v59, %v347_v28  ;;  %v318_v20 = vadd.f32 %v3144_v15, %v240_v36  ;;  %2763 = vmatprep.subr.bf16.mxu0 %v2833_v30  ;;  %v3586_v36 = vld [vmem:[#allocation2 + $0x8] sm:$0xff] }
  0xb0   :  { %77 = vst.msk [vmem:[#allocation3 + $0xa0] sm:$0xff] %vm4945_vm9, %v4832_v54  ;;  %vm4949_vm8 = vmmov %vm4931_vm2  ;;  %v380_v24 = vmax.f32 %v316_v63, %v348_v6  ;;  %v3581_v6 = vld [vmem:[#allocation2] sm:$0xff]  ;;  %2764 = vmatpush3.bf16.msra.mxu0 %v2833_v30  ;;  %v3650_v30 = vld [vmem:[#allocation2 + $0x38] sm:$0xff] }
  0xb1   :  { %78 = vst.msk [vmem:[#allocation3 + $0xa8] sm:$0xff] %vm4946_vm11, %v4832_v54  ;;  %vm4950_vm15 = vmmov %vm4931_vm2  ;;  %v349_v48 = vmul.f32 0.01, %v317_v11  ;;  %v3535_v27 = vsel %vm4967_vm13, %v379_v13, -1e+30  ;;  %2765 = vmatprep.subr.bf16.mxu0 %v2834_v45  ;;  %v3709_v13 = vld [vmem:[#allocation2 + $0x70] sm:$0xff] }
  0xb2   :  { %79 = vst.msk [vmem:[#allocation3 + $0xb0] sm:$0xff] %vm4947_vm10, %v4832_v54  ;;  %vm4951_vm9 = vmmov %vm4931_vm2  ;;  %v350_v31 = vmul.f32 0.01, %v318_v20  ;;  %655 = vmax.xlane.f32.xlu1 %v3535_v27  ;;  %v244_v32 = vpop.permute.xlu0 %243  ;;  %653 = vmax.xlane.f32.xlu0 %v3529_v9  ;;  %v248_v16 = vpop.permute.xlu1 %247  ;;  %v3541_v7 = vsel %vm4969_vm14, %v380_v24, -1e+30 }
  0xb3   :  { %80 = vst.msk [vmem:[#allocation3 + $0xb8] sm:$0xff] %vm4948_vm5, %v4832_v54  ;;  %vm4952_vm11 = vmmov %vm4931_vm2  ;;  %v319_v34 = vadd.f32 %v3144_v15, %v244_v32  ;;  %v381_v35 = vmax.f32 %v317_v11, %v349_v48  ;;  %v320_v18 = vadd.f32 %v3144_v15, %v248_v16 }
  0xb4   :  { %81 = vst.msk [vmem:[#allocation3 + $0xc0] sm:$0xff] %vm4949_vm8, %v4832_v54  ;;  %vm4953_vm10 = vmmov %vm4931_vm2  ;;  %v382_v41 = vmax.f32 %v318_v20, %v350_v31  ;;  %2766 = vmatpush3.bf16.msra.mxu0 %v2834_v45  ;;  %v2835_v20 = vld [vmem:[%s4820_s2 + $0x10] sm:$0xff]   ;;  %v3601_v31 = vld [vmem:[#allocation2 + $0x18] sm:$0xff] }
  0xb5   :  { %82 = vst.msk [vmem:[#allocation3 + $0xc8] sm:$0xff] %vm4931_vm2, %v4832_v54  ;;  %vm4954_vm5 = vmmov %vm4931_vm2  ;;  %v351_v37 = vmul.f32 0.01, %v319_v34  ;;  %v3547_v43 = vsel %vm4971_vm1, %v381_v35, -1e+30  ;;  %2767 = vmatprep.subr.bf16.mxu0 %v2835_v20  ;;  %v3690_v45 = vld [vmem:[#allocation2 + $0x58] sm:$0xff] }
  0xb6   :  { %83 = vst.msk [vmem:[#allocation3 + $0xd0] sm:$0xff] %vm4950_vm15, %v4832_v54  ;;  %vm4955_vm8 = vmmov %vm4931_vm2  ;;  %v352_v47 = vmul.f32 0.01, %v320_v18  ;;  %659 = vmax.xlane.f32.xlu1 %v3547_v43  ;;  %v252_v50 = vpop.permute.xlu0 %251  ;;  %657 = vmax.xlane.f32.xlu0 %v3541_v7  ;;  %v256_v40 = vpop.permute.xlu1 %255  ;;  %v3553_v17 = vsel %vm4973_vm3, %v382_v41, -1e+30 }
  0xb7   :  { %84 = vst.msk [vmem:[#allocation3 + $0xd8] sm:$0xff] %vm4951_vm9, %v4832_v54  ;;  %4956 = vst [vmem:[#allocation19_spill] sm:$0xff] %v3475_v58  ;;  %v321_v52 = vadd.f32 %v3144_v15, %v252_v50  ;;  %v383_v53 = vmax.f32 %v319_v34, %v351_v37  ;;  %v322_v23 = vadd.f32 %v3144_v15, %v256_v40  ;;  %v3609_v34 = vld [vmem:[#allocation2 + $0x20] sm:$0xff]  ;;  %v3628_v40 = vld [vmem:[#allocation2 + $0x30] sm:$0xff] }
  0xb8   :  { %85 = vst.msk [vmem:[#allocation3 + $0xe0] sm:$0xff] %vm4952_vm11, %v4832_v54  ;;  %4957 = vst [vmem:[#allocation20_spill] sm:$0xff] %v3481_v0  ;;  %v384_v59 = vmax.f32 %v320_v18, %v352_v47  ;;  %2768 = vmatpush3.bf16.msra.mxu0 %v2835_v20  ;;  %v2836_v18 = vld [vmem:[%s4820_s2 + $0x18] sm:$0xff]   ;;  %v3786_v0 = vld [vmem:[#allocation2 + $0xa8] sm:$0xff] }
  0xb9   :  { %86 = vst.msk [vmem:[#allocation3 + $0xe8] sm:$0xff] %vm4953_vm10, %v4832_v54  ;;  %4958 = vst [vmem:[#allocation21_spill] sm:$0xff] %v3487_v10  ;;  %v353_v56 = vmul.f32 0.01, %v321_v52  ;;  %v3559_v61 = vsel %vm4975_vm4, %v383_v53, -1e+30  ;;  %2769 = vmatprep.subr.bf16.mxu0 %v2836_v18 }
  0xba   :  { %87 = vst.msk [vmem:[#allocation3 + $0xf0] sm:$0xff] %vm4954_vm5, %v4832_v54  ;;  %4959 = vst [vmem:[#allocation22_spill] sm:$0xff] %v3493_v21  ;;  %v354_v63 = vmul.f32 0.01, %v322_v23  ;;  %663 = vmax.xlane.f32.xlu1 %v3559_v61  ;;  %661 = vmax.xlane.f32.xlu0 %v3553_v17  ;;  %v3565_v4 = vsel %vm4977_vm7, %v384_v59, -1e+30 }
  0xbb   :  { %88 = vst.msk [vmem:[#allocation3 + $0xf8] sm:$0xff] %vm4955_vm8, %v4832_v54  ;;  %4960 = vst [vmem:[#allocation23_spill] sm:$0xff] %v3499_v33  ;;  %v385_v1 = vmax.f32 %v321_v52, %v353_v56  ;;  %v3630_v52 = vld [vmem:[#allocation2 + $0x28] sm:$0xff]  ;;  %v3784_v33 = vld [vmem:[#allocation2 + $0xb0] sm:$0xff] }
  0xbc   :  { %4961 = vst [vmem:[#allocation24_spill] sm:$0xff] %v3505_v38  ;;  %4962 = vst [vmem:[#allocation25_spill] sm:$0xff] %v3511_v51  ;;  %v386_v28 = vmax.f32 %v322_v23, %v354_v63  ;;  %2770 = vmatpush3.bf16.msra.mxu0 %v2836_v18  ;;  %v2837_v23 = vld [vmem:[%s4820_s2 + $0x20] sm:$0xff]   ;;  %v3711_v54 = vld [vmem:[#allocation2 + $0x68] sm:$0xff] }
  0xbd   :  { %4963 = vst [vmem:[#allocation26_spill] sm:$0xff] %v3517_v55  ;;  %4964 = vst [vmem:[#allocation27_spill] sm:$0xff] %v3523_v5  ;;  %v3569_v15 = vsel %vm3394_vm6, %v385_v1, -1e+30  ;;  %2771 = vmatprep.subr.bf16.mxu0 %v2837_v23  ;;  %v3763_v55 = vld [vmem:[#allocation2 + $0xa0] sm:$0xff]  ;;  %v3765_v5 = vld [vmem:[#allocation2 + $0x98] sm:$0xff] }
  0xbe   :  { %4966 = vst [vmem:[#allocation28_spill] sm:$0xff] %v3529_v9  ;;  %4968 = vst [vmem:[#allocation29_spill] sm:$0xff] %v3535_v27  ;;  %667 = vmax.xlane.f32.xlu1 %v3569_v15  ;;  %665 = vmax.xlane.f32.xlu0 %v3565_v4  ;;  %v3575_v25 = vsel %vm3403_vm0, %v386_v28, -1e+30  ;;  %v3648_v28 = vld [vmem:[#allocation2 + $0x40] sm:$0xff] }
  0xbf   :  { %4970 = vst [vmem:[#allocation30_spill] sm:$0xff] %v3541_v7  ;;  %4972 = vst [vmem:[#allocation31_spill] sm:$0xff] %v3547_v43  ;;  %v3745_v7 = vld [vmem:[#allocation2 + $0x90] sm:$0xff]  ;;  %v3747_v43 = vld [vmem:[#allocation2 + $0x88] sm:$0xff] }
  0xc0   :  { %4974 = vst [vmem:[#allocation32_spill] sm:$0xff] %v3553_v17  ;;  %4976 = vst [vmem:[#allocation33_spill] sm:$0xff] %v3559_v61  ;;  %2772 = vmatpush3.bf16.msra.mxu0 %v2837_v23  ;;  %v3805_v58 = vld [vmem:[#allocation2 + $0xc0] sm:$0xff] }
  0xc1   :  { %4978 = vst [vmem:[#allocation34_spill] sm:$0xff] %v3565_v4  ;;  %4979 = vst [vmem:[#allocation35_spill] sm:$0xff] %v3569_v15  ;;  %v3727_v4 = vld [vmem:[#allocation2 + $0x80] sm:$0xff]  ;;  %v3729_v15 = vld [vmem:[#allocation2 + $0x78] sm:$0xff] }
  0xc2   :  { %4980 = vst [vmem:[#allocation36_spill] sm:$0xff] %v3575_v25  ;;  %669 = vmax.xlane.f32.xlu0 %v3575_v25  ;;  %vm4981_vm0 = vmmov %vm4931_vm2 }
  0xc3   :  { %vm4982_vm6 = vmmov %vm4981_vm0 }
  0xc4   :  { %vm4983_vm2 = vmmov %vm4981_vm0 }
  0xc5   :  { %vm4984_vm15 = vmmov %vm4981_vm0 }
  0xc6   :  { %vm4985_vm9 = vmmov %vm4981_vm0 }
  0xc7   :  { %vm4986_vm11 = vmmov %vm4981_vm0 }
  0xc8   :  { %vm4987_vm10 = vmmov %vm4981_vm0 }
  0xc9   :  { %vm4988_vm5 = vmmov %vm4981_vm0 }
  0xca   :  { %vm4989_vm8 = vmmov %vm4981_vm0 }
  0xcb   :  { %vm4990_vm12 = vmmov %vm4981_vm0 }
  0xcc   :  { %vm4991_vm13 = vmmov %vm4981_vm0 }
  0xcd   :  { %vm4992_vm14 = vmmov %vm4981_vm0 }
  0xce   :  { %vm4993_vm1 = vmmov %vm4981_vm0 }
  0xcf   :  { %vm4994_vm3 = vmmov %vm4981_vm0 }
  0xd0   :  { %vm4995_vm4 = vmmov %vm4981_vm0 }
  0xd1   :  { %vm4996_vm7 = vmmov %vm4981_vm0 }
 0x10f   :  { %v608_v8 = vpop.xlane.xlu0 %607 }
 0x110   :  { %v3591_v11 = vmax.f32 %v3581_v6, %v608_v8  ;;  %v2838_v8 = vld [vmem:[%s4820_s2 + $0x28] sm:$0xff]  }
 0x111   :  { %2773 = vmatprep.subr.bf16.mxu0 %v2838_v8 }
 0x112   :  { %1875 = vst.msk [vmem:[#allocation2] sm:$0xff] %vm4981_vm0, %v3591_v11  ;;  %801 = vperm.xlu1 %2831, %v3591_v11   ;;  %2774 = vmatpush3.bf16.msra.mxu0 %v2838_v8 }
 0x113   :  { %v610_v24 = vpop.xlane.xlu1 %609  ;;  %v612_v48 = vpop.xlane.xlu0 %611 }
 0x114   :  { %v3604_v32 = vmax.f32 %v3586_v36, %v610_v24  ;;  %v3607_v16 = vmax.f32 %v3588_v49, %v612_v48 }
 0x116   :  { %1876 = vst.msk [vmem:[#allocation2 + $0x8] sm:$0xff] %vm4982_vm6, %v3604_v32  ;;  %806 = vperm.xlu0 %2832, %v3604_v32   ;;  %811 = vperm.xlu1 %2831, %v3607_v16   ;;  %vm4997_vm6 = vmmov %vm4981_vm0 }
 0x117   :  { %1877 = vst.msk [vmem:[#allocation2 + $0x10] sm:$0xff] %vm4983_vm2, %v3607_v16  ;;  %v616_v41 = vpop.xlane.xlu1 %615  ;;  %v614_v37 = vpop.xlane.xlu0 %613  ;;  %vm4998_vm2 = vmmov %vm4981_vm0 }
 0x118   :  { %v3623_v47 = vmax.f32 %v3609_v34, %v616_v41  ;;  %v3626_v50 = vmax.f32 %v3601_v31, %v614_v37  ;;  %v3668_v41 = vld [vmem:[#allocation2 + $0x50] sm:$0xff]  ;;  %v3670_v37 = vld [vmem:[#allocation2 + $0x48] sm:$0xff] }
 0x11a   :  { %1879 = vst.msk [vmem:[#allocation2 + $0x20] sm:$0xff] %vm4984_vm15, %v3623_v47  ;;  %816 = vperm.xlu1 %2831, %v3626_v50   ;;  %vm4999_vm15 = vmmov %vm4981_vm0 }
 0x11b   :  { %1878 = vst.msk [vmem:[#allocation2 + $0x18] sm:$0xff] %vm4985_vm9, %v3626_v50  ;;  %v620_v59 = vpop.xlane.xlu1 %619  ;;  %v618_v56 = vpop.xlane.xlu0 %617  ;;  %vm5000_vm9 = vmmov %vm4981_vm0 }
 0x11c   :  { %v3643_v63 = vmax.f32 %v3628_v40, %v620_v59  ;;  %v3646_v1 = vmax.f32 %v3630_v52, %v618_v56  ;;  %v2839_v59 = vld [vmem:[%s4820_s2 + $0x30] sm:$0xff]  }
 0x11d   :  { %2775 = vmatprep.subr.bf16.mxu0 %v2839_v59 }
 0x11e   :  { %1881 = vst.msk [vmem:[#allocation2 + $0x30] sm:$0xff] %vm4986_vm11, %v3643_v63  ;;  %821 = vperm.xlu1 %2831, %v3623_v47   ;;  %2776 = vmatpush3.bf16.msra.mxu0 %v2839_v59  ;;  %vm5001_vm11 = vmmov %vm4981_vm0 }
 0x11f   :  { %1880 = vst.msk [vmem:[#allocation2 + $0x28] sm:$0xff] %vm4987_vm10, %v3646_v1  ;;  %v624_v20 = vpop.xlane.xlu1 %623  ;;  %v622_v24 = vpop.xlane.xlu0 %621  ;;  %vm5002_vm10 = vmmov %vm4981_vm0 }
 0x120   :  { %v3663_v48 = vmax.f32 %v3648_v28, %v624_v20  ;;  %v3666_v18 = vmax.f32 %v3650_v30, %v622_v24 }
 0x122   :  { %1883 = vst.msk [vmem:[#allocation2 + $0x40] sm:$0xff] %vm4988_vm5, %v3663_v48  ;;  %826 = vperm.xlu1 %2831, %v3646_v1   ;;  %vm5003_vm5 = vmmov %vm4981_vm0 }
 0x123   :  { %1882 = vst.msk [vmem:[#allocation2 + $0x38] sm:$0xff] %vm4989_vm8, %v3666_v18  ;;  %v628_v56 = vpop.xlane.xlu1 %627  ;;  %v626_v20 = vpop.xlane.xlu0 %625  ;;  %vm5004_vm8 = vmmov %vm4981_vm0 }
 0x124   :  { %v3683_v24 = vmax.f32 %v3668_v41, %v628_v56  ;;  %v3686_v8 = vmax.f32 %v3670_v37, %v626_v20  ;;  %v2840_v20 = vld [vmem:[%s4820_s2 + $0x38] sm:$0xff]  }
 0x125   :  { %2777 = vmatprep.subr.bf16.mxu0 %v2840_v20 }
 0x126   :  { %1885 = vst.msk [vmem:[#allocation2 + $0x50] sm:$0xff] %vm4990_vm12, %v3683_v24  ;;  %851 = vperm.xlu0 %2832, %v3683_v24   ;;  %831 = vperm.xlu1 %2831, %v3643_v63   ;;  %vm5005_vm12 = vmmov %vm4981_vm0 }
 0x127   :  { %1884 = vst.msk [vmem:[#allocation2 + $0x48] sm:$0xff] %vm4991_vm13, %v3686_v8  ;;  %v632_v23 = vpop.xlane.xlu1 %631  ;;  %v630_v53 = vpop.xlane.xlu0 %629  ;;  %2778 = vmatpush3.bf16.msra.mxu0 %v2840_v20  ;;  %vm5006_vm13 = vmmov %vm4981_vm0 }
 0x128   :  { %v3704_v59 = vmax.f32 %v3688_v3, %v632_v23  ;;  %v3707_v35 = vmax.f32 %v3690_v45, %v630_v53 }
 0x12a   :  { %1887 = vst.msk [vmem:[#allocation2 + $0x60] sm:$0xff] %vm4992_vm14, %v3704_v59  ;;  %861 = vperm.xlu0 %2832, %v3704_v59   ;;  %836 = vperm.xlu1 %2831, %v3666_v18   ;;  %vm5008_vm14 = vmmov %vm4981_vm0 }
 0x12b   :  { %1886 = vst.msk [vmem:[#allocation2 + $0x58] sm:$0xff] %vm4993_vm1, %v3707_v35  ;;  %v636_v53 = vpop.xlane.xlu1 %635  ;;  %v634_v56 = vpop.xlane.xlu0 %633  ;;  %vm5009_vm1 = vmmov %vm4981_vm0 }
 0x12c   :  { %v3722_v25 = vmax.f32 %v3709_v13, %v636_v53  ;;  %v3725_v20 = vmax.f32 %v3711_v54, %v634_v56 }
 0x12e   :  { %1889 = vst.msk [vmem:[#allocation2 + $0x70] sm:$0xff] %vm4994_vm3, %v3722_v25  ;;  %871 = vperm.xlu0 %2832, %v3722_v25   ;;  %841 = vperm.xlu1 %2831, %v3663_v48   ;;  %vm89_vm3 = vcmask 130048  }
 0x12f   :  { %1888 = vst.msk [vmem:[#allocation2 + $0x68] sm:$0xff] %vm4995_vm4, %v3725_v20  ;;  %v640_v53 = vpop.xlane.xlu1 %639  ;;  %v638_v56 = vpop.xlane.xlu0 %637  ;;  %vm5011_vm4 = vmmov %vm4981_vm0 }
 0x130   :  { %v3740_v17 = vmax.f32 %v3727_v4, %v640_v53  ;;  %v3743_v61 = vmax.f32 %v3729_v15, %v638_v56 }
 0x132   :  { %1891 = vst.msk [vmem:[#allocation2 + $0x80] sm:$0xff] %vm4996_vm7, %v3740_v17  ;;  %881 = vperm.xlu0 %2832, %v3740_v17   ;;  %846 = vperm.xlu1 %2831, %v3686_v8   ;;  %vm5012_vm7 = vmmov %vm4981_vm0 }
 0x133   :  { %1890 = vst.msk [vmem:[#allocation2 + $0x78] sm:$0xff] %vm4981_vm0, %v3743_v61  ;;  %v644_v53 = vpop.xlane.xlu1 %643  ;;  %v642_v56 = vpop.xlane.xlu0 %641 }
 0x134   :  { %v3758_v9 = vmax.f32 %v3745_v7, %v644_v53  ;;  %v3761_v27 = vmax.f32 %v3747_v43, %v642_v56  ;;  %v2841_v53 = vld [vmem:[%s4820_s2 + $0x40] sm:$0xff]  }
 0x135   :  { %2795 = vmatprep.subr.bf16.mxu1 %v2841_v53 }
 0x136   :  { %1893 = vst.msk [vmem:[#allocation2 + $0x90] sm:$0xff] %vm4997_vm6, %v3758_v9  ;;  %891 = vperm.xlu0 %2832, %v3758_v9   ;;  %856 = vperm.xlu1 %2831, %v3707_v35  }
 0x137   :  { %1892 = vst.msk [vmem:[#allocation2 + $0x88] sm:$0xff] %vm4998_vm2, %v3761_v27  ;;  %v648_v56 = vpop.xlane.xlu1 %647  ;;  %v646_v38 = vpop.xlane.xlu0 %645  ;;  %2796 = vmatpush3.bf16.msra.mxu1 %v2841_v53 }
 0x138   :  { %v3779_v51 = vmax.f32 %v3763_v55, %v648_v56  ;;  %v3782_v21 = vmax.f32 %v3765_v5, %v646_v38  ;;  %v2842_v38 = vld [vmem:[%s4820_s2 + $0x48] sm:$0xff]  }
 0x139   :  { %2797 = vmatprep.subr.bf16.mxu1 %v2842_v38 }
 0x13a   :  { %1895 = vst.msk [vmem:[#allocation2 + $0xa0] sm:$0xff] %vm4999_vm15, %v3779_v51  ;;  %901 = vperm.xlu0 %2832, %v3779_v51   ;;  %866 = vperm.xlu1 %2831, %v3725_v20  }
 0x13b   :  { %1894 = vst.msk [vmem:[#allocation2 + $0x98] sm:$0xff] %vm5000_vm9, %v3782_v21  ;;  %v652_v23 = vpop.xlane.xlu1 %651  ;;  %v650_v10 = vpop.xlane.xlu0 %649  ;;  %2798 = vmatpush3.bf16.msra.mxu1 %v2842_v38  ;;  %v704_v38 = vsub.f32 %v3586_v36, %v3604_v32  ;;  %v3851_v36 = vld [vmem:[#allocation2 + $0xe0] sm:$0xff] }
 0x13c   :  { %v3800_v53 = vmax.f32 %v3784_v33, %v652_v23  ;;  %v3803_v12 = vmax.f32 %v3786_v0, %v650_v10  ;;  %v2843_v10 = vld [vmem:[%s4820_s2 + $0x50] sm:$0xff]  }
 0x13d   :  { %2799 = vmatprep.subr.bf16.mxu1 %v2843_v10  ;;  %v3828_v23 = vld [vmem:[#allocation2 + $0xd0] sm:$0xff]  ;;  %v737_v32 = vmul.f32 1.442695, %v704_v38  ;;  %v709_v38 = vsub.f32 %v3628_v40, %v3643_v63  ;;  %v2846_v63 = vld [vmem:[%s4820_s2 + $0x68] sm:$0xff]  }
 0x13e   :  { %1897 = vst.msk [vmem:[#allocation2 + $0xb0] sm:$0xff] %vm5001_vm11, %v3800_v53  ;;  %911 = vperm.xlu0 %2832, %v3800_v53   ;;  %876 = vperm.xlu1 %2831, %v3743_v61  }
 0x13f   :  { %1896 = vst.msk [vmem:[#allocation2 + $0xa8] sm:$0xff] %vm5002_vm10, %v3803_v12  ;;  %v656_v56 = vpop.xlane.xlu1 %655  ;;  %v654_v39 = vpop.xlane.xlu0 %653  ;;  %2800 = vmatpush3.bf16.msra.mxu1 %v2843_v10  ;;  %2849 = vpow2.f32 %v737_v32  ;;  %v747_v32 = vmul.f32 1.442695, %v709_v38  ;;  %v5013_v38 = vsub.f32 %v3581_v6, %v3591_v11  ;;  %v715_v6 = vsub.f32 %v3688_v3, %v3704_v59 }
 0x140   :  { %v3823_v2 = vmax.f32 %v3805_v58, %v656_v56  ;;  %v3826_v19 = vmax.f32 %v3807_v29, %v654_v39  ;;  %v2844_v39 = vld [vmem:[%s4820_s2 + $0x58] sm:$0xff]   ;;  %v707_v56 = vsub.f32 %v3609_v34, %v3623_v47  ;;  %v3874_v34 = vld [vmem:[#allocation2 + $0xf0] sm:$0xff]  ;;  %v5015_v3 = vsub.f32 %v3601_v31, %v3626_v50 }
 0x141   :  { %2801 = vmatprep.subr.bf16.mxu1 %v2844_v39  ;;  %v721_v50 = vsub.f32 %v3745_v7, %v3758_v9  ;;  %v5018_v7 = vsub.f32 %v3670_v37, %v3686_v8 }
 0x142   :  { %1899 = vst.msk [vmem:[#allocation2 + $0xc0] sm:$0xff] %vm5003_vm5, %v3823_v2  ;;  %921 = vperm.xlu0 %2832, %v3823_v2   ;;  %886 = vperm.xlu1 %2831, %v3761_v27   ;;  %v743_v47 = vmul.f32 1.442695, %v707_v56  ;;  %v711_v56 = vsub.f32 %v3648_v28, %v3663_v48  ;;  %v727_v8 = vsub.f32 %v3805_v58, %v3823_v2 }
 0x143   :  { %1898 = vst.msk [vmem:[#allocation2 + $0xb8] sm:$0xff] %vm5004_vm8, %v3826_v19  ;;  %v660_v10 = vpop.xlane.xlu1 %659  ;;  %v658_v46 = vpop.xlane.xlu0 %657  ;;  %2802 = vmatpush3.bf16.msra.mxu1 %v2844_v39  ;;  %v5021_v58 = vsub.f32 %v3729_v15, %v3743_v61 }
 0x144   :  { %v3846_v42 = vmax.f32 %v3828_v23, %v660_v10  ;;  %v3849_v26 = vmax.f32 %v3830_v60, %v658_v46  ;;  %v2845_v46 = vld [vmem:[%s4820_s2 + $0x60] sm:$0xff]   ;;  %2851 = vpow2.f32 %v743_v47  ;;  %v3961_v47 = vld [vmem:[#allocation2 + $0xf8] sm:$0xff] }
 0x145   :  { %2803 = vmatprep.subr.bf16.mxu1 %v2845_v46  ;;  %2853 = vpow2.f32 %v747_v32 }
 0x146   :  { %1901 = vst.msk [vmem:[#allocation2 + $0xd0] sm:$0xff] %vm5005_vm12, %v3846_v42  ;;  %931 = vperm.xlu0 %2832, %v3846_v42   ;;  %896 = vperm.xlu1 %2831, %v3782_v21  }
 0x147   :  { %1900 = vst.msk [vmem:[#allocation2 + $0xc8] sm:$0xff] %vm5006_vm13, %v3849_v26  ;;  %v664_v39 = vpop.xlane.xlu1 %663  ;;  %v662_v10 = vpop.xlane.xlu0 %661  ;;  %2804 = vmatpush3.bf16.msra.mxu1 %v2845_v46 }
 0x148   :  { %v3869_v14 = vmax.f32 %v3851_v36, %v664_v39  ;;  %v3872_v62 = vmax.f32 %v3853_v22, %v662_v10  ;;  %v5010_v10 = vmov 0.0   ;;  %2805 = vmatprep.subr.bf16.mxu1 %v2846_v63 }
 0x149   :  { %91 = vst.msk [vmem:[#allocation4 + $0x8] sm:$0xff] %vm89_vm3, %v5010_v10  ;;  %90 = vst.msk [vmem:[#allocation4] sm:$0xff] %vm89_vm3, %v5010_v10  ;;  %v3979_v44 = vpop.eup %2849 }
 0x14a   :  { %1903 = vst.msk [vmem:[#allocation2 + $0xe0] sm:$0xff] %vm5008_vm14, %v3869_v14  ;;  %941 = vperm.xlu0 %2832, %v3869_v14   ;;  %906 = vperm.xlu1 %2831, %v3803_v12  }
 0x14b   :  { %1902 = vst.msk [vmem:[#allocation2 + $0xd8] sm:$0xff] %vm5009_vm1, %v3872_v62  ;;  %v668_v46 = vpop.xlane.xlu1 %667  ;;  %v666_v39 = vpop.xlane.xlu0 %665  ;;  %2806 = vmatpush3.bf16.msra.mxu1 %v2846_v63  ;;  %v713_v63 = vsub.f32 %v3668_v41, %v3683_v24  ;;  %v2848_v41 = vld [vmem:[%s4820_s2 + $0x78] sm:$0xff]  }
 0x14c   :  { %92 = vst.msk [vmem:[#allocation4 + $0x10] sm:$0xff] %vm89_vm3, %v5010_v10  ;;  %93 = vst.msk [vmem:[#allocation4 + $0x18] sm:$0xff] %vm89_vm3, %v5010_v10  ;;  %v3956_v28 = vmax.f32 %v3874_v34, %v668_v46  ;;  %v3959_v48 = vmax.f32 %v3876_v57, %v666_v39  ;;  %v2847_v46 = vld [vmem:[%s4820_s2 + $0x70] sm:$0xff]   ;;  %v751_v39 = vmul.f32 1.442695, %v711_v56  ;;  %v5014_v56 = vsub.f32 %v3588_v49, %v3607_v16 }
 0x14d   :  { %94 = vst.msk [vmem:[#allocation4 + $0x20] sm:$0xff] %vm89_vm3, %v5010_v10  ;;  %95 = vst.msk [vmem:[#allocation4 + $0x28] sm:$0xff] %vm89_vm3, %v5010_v10  ;;  %2807 = vmatprep.subr.bf16.mxu1 %v2847_v46  ;;  %v735_v57 = vmul.f32 1.442695, %v5013_v38  ;;  %v755_v24 = vmul.f32 1.442695, %v713_v63  ;;  %v719_v16 = vsub.f32 %v3727_v4, %v3740_v17  ;;  %v5017_v17 = vsub.f32 %v3650_v30, %v3666_v18 }
 0x14e   :  { %96 = vst.msk [vmem:[#allocation4 + $0x30] sm:$0xff] %vm89_vm3, %v5010_v10  ;;  %97 = vst.msk [vmem:[#allocation4 + $0x38] sm:$0xff] %vm89_vm3, %v5010_v10  ;;  %951 = vperm.xlu0 %2832, %v3956_v28   ;;  %916 = vperm.xlu1 %2831, %v3826_v19   ;;  %2855 = vpow2.f32 %v751_v39  ;;  %v3995_v11 = vpop.eup %2851  ;;  %v739_v38 = vmul.f32 1.442695, %v5014_v56  ;;  %v717_v39 = vsub.f32 %v3709_v13, %v3722_v25 }
 0x14f   :  { %98 = vst.msk [vmem:[#allocation4 + $0x40] sm:$0xff] %vm89_vm3, %v5010_v10  ;;  %99 = vst.msk [vmem:[#allocation4 + $0x48] sm:$0xff] %vm89_vm3, %v5010_v10  ;;  %2808 = vmatpush3.bf16.msra.mxu1 %v2847_v46  ;;  %2857 = vpow2.f32 %v735_v57  ;;  %v759_v46 = vmul.f32 1.442695, %v715_v6  ;;  %v4004_v63 = vpop.eup %2853  ;;  %v741_v57 = vmul.f32 1.442695, %v5015_v3  ;;  %v5016_v25 = vsub.f32 %v3630_v52, %v3646_v1 }
 0x150   :  { %100 = vst.msk [vmem:[#allocation4 + $0x50] sm:$0xff] %vm89_vm3, %v5010_v10  ;;  %101 = vst.msk [vmem:[#allocation4 + $0x58] sm:$0xff] %vm89_vm3, %v5010_v10  ;;  %2809 = vmatprep.subr.bf16.mxu1 %v2848_v41  ;;  %2859 = vpow2.f32 %v755_v24  ;;  %v763_v49 = vmul.f32 1.442695, %v717_v39  ;;  %v767_v31 = vmul.f32 1.442695, %v719_v16  ;;  %v723_v1 = vsub.f32 %v3763_v55, %v3779_v51 }
 0x151   :  { %102 = vst.msk [vmem:[#allocation4 + $0x60] sm:$0xff] %vm89_vm3, %v5010_v10  ;;  %103 = vst.msk [vmem:[#allocation4 + $0x68] sm:$0xff] %vm89_vm3, %v5010_v10  ;;  %2861 = vpow2.f32 %v739_v38  ;;  %v745_v13 = vmul.f32 1.442695, %v5016_v25  ;;  %v749_v4 = vmul.f32 1.442695, %v5017_v17  ;;  %v725_v18 = vsub.f32 %v3784_v33, %v3800_v53 }
 0x152   :  { %104 = vst.msk [vmem:[#allocation4 + $0x70] sm:$0xff] %vm89_vm3, %v5010_v10  ;;  %105 = vst.msk [vmem:[#allocation4 + $0x78] sm:$0xff] %vm89_vm3, %v5010_v10  ;;  %1287 = vperm.xlu0 %2832, %v3979_v44   ;;  %926 = vperm.xlu1 %2831, %v3849_v26   ;;  %2863 = vpow2.f32 %v759_v46  ;;  %v771_v52 = vmul.f32 1.442695, %v721_v50  ;;  %v753_v6 = vmul.f32 1.442695, %v5018_v7  ;;  %v5019_v55 = vsub.f32 %v3690_v45, %v3707_v35 }
 0x153   :  { %106 = vst.msk [vmem:[#allocation4 + $0x80] sm:$0xff] %vm89_vm3, %v5010_v10  ;;  %107 = vst.msk [vmem:[#allocation4 + $0x88] sm:$0xff] %vm89_vm3, %v5010_v10  ;;  %2810 = vmatpush3.bf16.msra.mxu1 %v2848_v41  ;;  %2865 = vpow2.f32 %v741_v57  ;;  %v775_v30 = vmul.f32 1.442695, %v723_v1  ;;  %v779_v37 = vmul.f32 1.442695, %v725_v18  ;;  %v5020_v53 = vsub.f32 %v3711_v54, %v3725_v20 }
 0x154   :  { %108 = vst.msk [vmem:[#allocation4 + $0x90] sm:$0xff] %vm89_vm3, %v5010_v10  ;;  %109 = vst.msk [vmem:[#allocation4 + $0x98] sm:$0xff] %vm89_vm3, %v5010_v10  ;;  %2867 = vpow2.f32 %v763_v49  ;;  %v757_v38 = vmul.f32 1.442695, %v5019_v55  ;;  %v783_v35 = vmul.f32 1.442695, %v727_v8  ;;  %v729_v45 = vsub.f32 %v3828_v23, %v3846_v42 }
 0x155   :  { %110 = vst.msk [vmem:[#allocation4 + $0xa0] sm:$0xff] %vm89_vm3, %v5010_v10  ;;  %111 = vst.msk [vmem:[#allocation4 + $0xa8] sm:$0xff] %vm89_vm3, %v5010_v10  ;;  %2869 = vpow2.f32 %v745_v13  ;;  %v761_v39 = vmul.f32 1.442695, %v5020_v53  ;;  %v765_v57 = vmul.f32 1.442695, %v5021_v58  ;;  %v731_v20 = vsub.f32 %v3851_v36, %v3869_v14 }
 0x156   :  { %112 = vst.msk [vmem:[#allocation4 + $0xb0] sm:$0xff] %vm89_vm3, %v5010_v10  ;;  %113 = vst.msk [vmem:[#allocation4 + $0xb8] sm:$0xff] %vm89_vm3, %v5010_v10  ;;  %1302 = vperm.xlu0 %2832, %v3995_v11   ;;  %936 = vperm.xlu1 %2831, %v3872_v62   ;;  %2871 = vpow2.f32 %v767_v31  ;;  %v787_v54 = vmul.f32 1.442695, %v729_v45  ;;  %v5022_v23 = vsub.f32 %v3747_v43, %v3761_v27  ;;  %v5032_v45 = vld [vmem:[#allocation7_spill] sm:$0xff] }
 0x157   :  { %114 = vst.msk [vmem:[#allocation4 + $0xc0] sm:$0xff] %vm89_vm3, %v5010_v10  ;;  %115 = vst.msk [vmem:[#allocation4 + $0xc8] sm:$0xff] %vm89_vm3, %v5010_v10  ;;  %2873 = vpow2.f32 %v749_v4  ;;  %v791_v61 = vmul.f32 1.442695, %v731_v20  ;;  %v733_v15 = vsub.f32 %v3874_v34, %v3956_v28  ;;  %v5023_v36 = vsub.f32 %v3765_v5, %v3782_v21 }
 0x158   :  { %116 = vst.msk [vmem:[#allocation4 + $0xd0] sm:$0xff] %vm89_vm3, %v5010_v10  ;;  %117 = vst.msk [vmem:[#allocation4 + $0xd8] sm:$0xff] %vm89_vm3, %v5010_v10  ;;  %v4013_v59 = vpop.eup %2855  ;;  %2875 = vpow2.f32 %v771_v52  ;;  %v769_v16 = vmul.f32 1.442695, %v5022_v23  ;;  %v5024_v34 = vsub.f32 %v3786_v0, %v3803_v12  ;;  %v5025_v50 = vsub.f32 %v3807_v29, %v3826_v19  ;;  %v5033_v23 = vld [vmem:[#allocation8_spill] sm:$0xff] }
 0x159   :  { %118 = vst.msk [vmem:[#allocation4 + $0xe0] sm:$0xff] %vm89_vm3, %v5010_v10  ;;  %119 = vst.msk [vmem:[#allocation4 + $0xe8] sm:$0xff] %vm89_vm3, %v5010_v10  ;;  %2877 = vpow2.f32 %v753_v6  ;;  %v773_v13 = vmul.f32 1.442695, %v5023_v36  ;;  %v795_v27 = vmul.f32 1.442695, %v733_v15  ;;  %v5026_v12 = vsub.f32 %v3830_v60, %v3849_v26 }
 0x15a   :  { %120 = vst.msk [vmem:[#allocation4 + $0xf0] sm:$0xff] %vm89_vm3, %v5010_v10  ;;  %121 = vst.msk [vmem:[#allocation4 + $0xf8] sm:$0xff] %vm89_vm3, %v5010_v10  ;;  %v670_v10 = vpop.xlane.xlu0 %669  ;;  %1312 = vperm.xlu0 %2832, %v4004_v63   ;;  %946 = vperm.xlu1 %2831, %v3959_v48   ;;  %2879 = vpow2.f32 %v775_v30  ;;  %v777_v21 = vmul.f32 1.442695, %v5024_v34  ;;  %v781_v17 = vmul.f32 1.442695, %v5025_v50  ;;  %v5027_v19 = vsub.f32 %v3853_v22, %v3872_v62 }
 0x15b   :  { %1905 = vst.msk [vmem:[#allocation2 + $0xf0] sm:$0xff] %vm5011_vm4, %v3956_v28  ;;  %v3977_v40 = vmax.f32 %v3961_v47, %v670_v10  ;;  %v4022_v10 = vpop.eup %2857  ;;  %2881 = vpow2.f32 %v757_v38  ;;  %v785_v0 = vmul.f32 1.442695, %v5026_v12  ;;  %v5028_v26 = vld [vmem:[#allocation37_spill] sm:$0xff]  ;;  %v5035_v50 = vld [vmem:[#allocation10_spill] sm:$0xff] }
 0x15c   :  { %1904 = vst.msk [vmem:[#allocation2 + $0xe8] sm:$0xff] %vm5012_vm7, %v3959_v48  ;;  %v4024_v41 = vpop.eup %2859  ;;  %2883 = vpow2.f32 %v779_v37  ;;  %v789_v29 = vmul.f32 1.442695, %v5027_v19  ;;  %v5029_v60 = vsub.f32 %v5028_v26, %v3959_v48  ;;  %v5030_v38 = vld [vmem:[#allocation5_spill] sm:$0xff] }
 0x15d   :  { %v734_v32 = vsub.f32 %v3961_v47, %v3977_v40  ;;  %1906 = vst.msk [vmem:[#allocation2 + $0xf8] sm:$0xff] %vm4981_vm0, %v3977_v40  ;;  %v4033_v24 = vpop.eup %2861  ;;  %2885 = vpow2.f32 %v761_v39  ;;  %v5031_v39 = vld [vmem:[#allocation6_spill] sm:$0xff] }
 0x15e   :  { %1322 = vperm.xlu0 %2832, %v4013_v59   ;;  %956 = vperm.xlu1 %2831, %v3977_v40   ;;  %v4035_v9 = vpop.eup %2863  ;;  %2887 = vpow2.f32 %v783_v35  ;;  %v793_v30 = vmul.f32 1.442695, %v5029_v60  ;;  %v5036_v60 = vld [vmem:[#allocation11_spill] sm:$0xff] }
 0x15f   :  { %v4044_v56 = vpop.eup %2865  ;;  %2889 = vpow2.f32 %v765_v57 }
 0x160   :  { %v4046_v51 = vpop.eup %2867  ;;  %2891 = vpow2.f32 %v787_v54 }
 0x161   :  { %v4055_v46 = vpop.eup %2869  ;;  %2893 = vpow2.f32 %v769_v16 }
 0x162   :  { %1332 = vperm.xlu0 %2832, %v4024_v41   ;;  %1282 = vperm.xlu1 %2831, %v4022_v10   ;;  %v4057_v33 = vpop.eup %2871  ;;  %2895 = vpow2.f32 %v791_v61 }
 0x163   :  { %v4066_v3 = vpop.eup %2873  ;;  %2897 = vpow2.f32 %v773_v13  ;;  %v5034_v13 = vld [vmem:[#allocation9_spill] sm:$0xff] }
 0x164   :  { %v4068_v2 = vpop.eup %2875  ;;  %2899 = vpow2.f32 %v795_v27 }
 0x165   :  { %v4077_v49 = vpop.eup %2877  ;;  %2901 = vpow2.f32 %v777_v21 }
 0x166   :  { %1342 = vperm.xlu0 %2832, %v4035_v9   ;;  %1292 = vperm.xlu1 %2831, %v4033_v24   ;;  %v4079_v42 = vpop.eup %2879  ;;  %2903 = vpow2.f32 %v781_v17 }
 0x167   :  { %v4088_v25 = vpop.eup %2881  ;;  %2905 = vpow2.f32 %v785_v0 }
 0x168   :  { %v4090_v14 = vpop.eup %2883  ;;  %2907 = vpow2.f32 %v789_v29 }
 0x169   :  { %v4097_v43 = vpop.eup %2885  ;;  %2909 = vpow2.f32 %v793_v30 }
 0x16a   :  { %1352 = vperm.xlu0 %2832, %v4046_v51   ;;  %1297 = vperm.xlu1 %2831, %v4044_v56   ;;  %v4099_v31 = vpop.eup %2887 }
 0x16b   :  { %v4106_v5 = vpop.eup %2889 }
 0x16c   :  { %v4108_v28 = vpop.eup %2891 }
 0x16d   :  { %v4115_v4 = vpop.eup %2893 }
 0x16e   :  { %1362 = vperm.xlu0 %2832, %v4057_v33   ;;  %1307 = vperm.xlu1 %2831, %v4055_v46   ;;  %v4117_v52 = vpop.eup %2895 }
 0x16f   :  { %v4124_v1 = vpop.eup %2897 }
 0x170   :  { %v4126_v7 = vpop.eup %2899 }
 0x171   :  { %v4133_v6 = vpop.eup %2901 }
 0x172   :  { %1372 = vperm.xlu0 %2832, %v4068_v2   ;;  %1317 = vperm.xlu1 %2831, %v4066_v3   ;;  %v4139_v18 = vpop.eup %2903 }
 0x173   :  { %v4143_v8 = vpop.eup %2905 }
 0x174   :  { %v4148_v57 = vpop.eup %2907 }
 0x175   :  { %v4152_v15 = vpop.eup %2909 }
 0x176   :  { %1382 = vperm.xlu0 %2832, %v4079_v42   ;;  %1327 = vperm.xlu1 %2831, %v4077_v49  }
 0x17a   :  { %1392 = vperm.xlu0 %2832, %v4090_v14   ;;  %1337 = vperm.xlu1 %2831, %v4088_v25  }
 0x17e   :  { %1402 = vperm.xlu0 %2832, %v4099_v31   ;;  %1347 = vperm.xlu1 %2831, %v4097_v43  }
 0x182   :  { %1412 = vperm.xlu0 %2832, %v4108_v28   ;;  %1357 = vperm.xlu1 %2831, %v4106_v5  }
 0x186   :  { %1422 = vperm.xlu0 %2832, %v4117_v52   ;;  %1367 = vperm.xlu1 %2831, %v4115_v4  }
 0x18a   :  { %1432 = vperm.xlu0 %2832, %v4126_v7   ;;  %1377 = vperm.xlu1 %2831, %v4124_v1  }
 0x18e   :  { %1387 = vperm.xlu1 %2831, %v4133_v6  }
 0x191   :  { %v802_v55 = vpop.permute.xlu1 %801 }
 0x192   :  { %v959_v37 = vsub.f32 %v5030_v38, %v802_v55  ;;  %1397 = vperm.xlu1 %2831, %v4139_v18  }
 0x194   :  { %v991_v53 = vmul.f32 1.442695, %v959_v37 }
 0x195   :  { %v812_v62 = vpop.permute.xlu1 %811  ;;  %v807_v22 = vpop.permute.xlu0 %806 }
 0x196   :  { %v961_v35 = vsub.f32 %v5031_v39, %v812_v62  ;;  %v960_v58 = vsub.f32 %v5032_v45, %v807_v22  ;;  %1407 = vperm.xlu1 %2831, %v4143_v8   ;;  %2911 = vpow2.f32 %v991_v53 }
 0x198   :  { %v993_v48 = vmul.f32 1.442695, %v960_v58  ;;  %v995_v54 = vmul.f32 1.442695, %v961_v35  ;;  %v5037_v35 = vld [vmem:[#allocation12_spill] sm:$0xff] }
 0x199   :  { %v817_v20 = vpop.permute.xlu1 %816 }
 0x19a   :  { %v962_v16 = vsub.f32 %v5033_v23, %v817_v20  ;;  %1417 = vperm.xlu1 %2831, %v4148_v57   ;;  %2913 = vpow2.f32 %v993_v48  ;;  %v5038_v20 = vld [vmem:[#allocation13_spill] sm:$0xff] }
 0x19b   :  { %2915 = vpow2.f32 %v995_v54 }
 0x19c   :  { %v997_v61 = vmul.f32 1.442695, %v962_v16 }
 0x19d   :  { %v822_v36 = vpop.permute.xlu1 %821 }
 0x19e   :  { %2917 = vpow2.f32 %v997_v61  ;;  %v963_v27 = vsub.f32 %v5034_v13, %v822_v36  ;;  %1427 = vperm.xlu1 %2831, %v4152_v15   ;;  %v5039_v36 = vld [vmem:[#allocation15_spill] sm:$0xff] }
 0x1a0   :  { %v999_v34 = vmul.f32 1.442695, %v963_v27  ;;  %v2912_v12 = vpop.eup %2911 }
 0x1a1   :  { %v827_v21 = vpop.permute.xlu1 %826 }
 0x1a2   :  { %v964_v17 = vsub.f32 %v5035_v50, %v827_v21  ;;  %2919 = vpow2.f32 %v999_v34 }
 0x1a4   :  { %v1001_v0 = vmul.f32 1.442695, %v964_v17  ;;  %v4157_v19 = vpop.eup %2913  ;;  %v5040_v17 = vld [vmem:[#allocation14_spill] sm:$0xff] }
 0x1a5   :  { %v832_v29 = vpop.permute.xlu1 %831  ;;  %v852_v26 = vpop.permute.xlu0 %851  ;;  %v1472_v55 = vpack.c.bf16 %v4157_v19, %v2912_v12 }
 0x1a6   :  { %2921 = vpow2.f32 %v1001_v0  ;;  %v965_v30 = vsub.f32 %v5036_v60, %v832_v29  ;;  %v2916_v38 = vpop.eup %2915  ;;  %v969_v13 = vsub.f32 %v5039_v36, %v852_v26  ;;  %v5041_v60 = vld [vmem:[#allocation17_spill] sm:$0xff] }
 0x1a7   :  { %2779 = vmatprep.mubr.bf16.mxu0 %v1472_v55 }
 0x1a8   :  { %v2918_v37 = vpop.eup %2917  ;;  %v1003_v62 = vmul.f32 1.442695, %v965_v30  ;;  %v1011_v29 = vmul.f32 1.442695, %v969_v13 }
 0x1a9   :  { %1119 = vadd.xlane.f32.xlu0 %v2912_v12  ;;  %v837_v22 = vpop.permute.xlu1 %836  ;;  %v862_v53 = vpop.permute.xlu0 %861  ;;  %v1473_v39 = vpack.c.bf16 %v2918_v37, %v2916_v38 }
 0x1aa   :  { %v966_v45 = vsub.f32 %v5037_v35, %v837_v22  ;;  %2923 = vpow2.f32 %v1003_v62  ;;  %v971_v30 = vsub.f32 %v5041_v60, %v862_v53  ;;  %v5042_v62 = vld [vmem:[#allocation16_spill] sm:$0xff]  ;;  %v5044_v53 = vld [vmem:[#allocation18_spill] sm:$0xff] }
 0x1ab   :  { %2780 = vmatmul.mubr.bf16.vlgmr.msra.gmra.mrb[0].mxu0 %v1473_v39 }
 0x1ac   :  { %v1005_v58 = vmul.f32 1.442695, %v966_v45  ;;  %v4163_v16 = vpop.eup %2919  ;;  %v1015_v35 = vmul.f32 1.442695, %v971_v30  ;;  %v5043_v45 = vld [vmem:[#allocation19_spill] sm:$0xff] }
 0x1ad   :  { %1123 = vadd.xlane.f32.xlu0 %v2916_v38  ;;  %v842_v48 = vpop.permute.xlu1 %841  ;;  %v872_v54 = vpop.permute.xlu0 %871 }
 0x1ae   :  { %2925 = vpow2.f32 %v1005_v58  ;;  %v967_v23 = vsub.f32 %v5038_v20, %v842_v48  ;;  %v973_v58 = vsub.f32 %v5043_v45, %v872_v54 }
 0x1b0   :  { %v2922_v61 = vpop.eup %2921  ;;  %v1007_v27 = vmul.f32 1.442695, %v967_v23  ;;  %v1019_v13 = vmul.f32 1.442695, %v973_v58 }
 0x1b1   :  { %1125 = vadd.xlane.f32.xlu0 %v2918_v37  ;;  %v847_v34 = vpop.permute.xlu1 %846  ;;  %v882_v21 = vpop.permute.xlu0 %881  ;;  %v1474_v50 = vpack.c.bf16 %v2922_v61, %v4163_v16 }
 0x1b2   :  { %v968_v12 = vsub.f32 %v5040_v17, %v847_v34  ;;  %2927 = vpow2.f32 %v1007_v27  ;;  %v5045_v27 = vld [vmem:[#allocation21_spill] sm:$0xff]  ;;  %v5046_v17 = vld [vmem:[#allocation20_spill] sm:$0xff] }
 0x1b3   :  { %2783 = vmatprep.mubr.bf16.mxu0 %v1474_v50  ;;  %v975_v34 = vsub.f32 %v5045_v27, %v882_v21 }
 0x1b4   :  { %v1009_v0 = vmul.f32 1.442695, %v968_v12  ;;  %v2924_v22 = vpop.eup %2923 }
 0x1b5   :  { %1129 = vadd.xlane.f32.xlu0 %v2922_v61  ;;  %v857_v55 = vpop.permute.xlu1 %856  ;;  %v892_v38 = vpop.permute.xlu0 %891  ;;  %v1023_v30 = vmul.f32 1.442695, %v975_v34 }
 0x1b6   :  { %2929 = vpow2.f32 %v1009_v0  ;;  %v970_v26 = vsub.f32 %v5042_v62, %v857_v55  ;;  %v5047_v55 = vld [vmem:[#allocation23_spill] sm:$0xff] }
 0x1b7   :  { %2931 = vpow2.f32 %v1011_v29  ;;  %v977_v62 = vsub.f32 %v5047_v55, %v892_v38  ;;  %v5052_v55 = vld [vmem:[#allocation26_spill] sm:$0xff] }
 0x1b8   :  { %v2926_v37 = vpop.eup %2925  ;;  %v1013_v39 = vmul.f32 1.442695, %v970_v26 }
 0x1b9   :  { %1133 = vadd.xlane.f32.xlu0 %v2926_v37  ;;  %v867_v48 = vpop.permute.xlu1 %866  ;;  %v902_v20 = vpop.permute.xlu0 %901  ;;  %v1475_v23 = vpack.c.bf16 %v2926_v37, %v2924_v22 }
 0x1ba   :  { %2933 = vpow2.f32 %v1013_v39  ;;  %v972_v36 = vsub.f32 %v5044_v53, %v867_v48  ;;  %v5048_v39 = vld [vmem:[#allocation22_spill] sm:$0xff]  ;;  %v5049_v53 = vld [vmem:[#allocation25_spill] sm:$0xff] }
 0x1bb   :  { %2784 = vmatmul.mubr.bf16.gmra.mrb[4].mxu0 %v1475_v23  ;;  %2935 = vpow2.f32 %v1015_v35  ;;  %v1027_v23 = vmul.f32 1.442695, %v977_v62 }
 0x1bc   :  { %v1017_v61 = vmul.f32 1.442695, %v972_v36  ;;  %v2928_v29 = vpop.eup %2927  ;;  %v979_v36 = vsub.f32 %v5049_v53, %v902_v20 }
 0x1bd   :  { %v877_v50 = vpop.permute.xlu1 %876  ;;  %v912_v0 = vpop.permute.xlu0 %911 }
 0x1be   :  { %2937 = vpow2.f32 %v1017_v61  ;;  %v974_v12 = vsub.f32 %v5046_v17, %v877_v50  ;;  %v1031_v17 = vmul.f32 1.442695, %v979_v36 }
 0x1bf   :  { %2939 = vpow2.f32 %v1019_v13  ;;  %v5050_v13 = vld [vmem:[#allocation24_spill] sm:$0xff] }
 0x1c0   :  { %v2930_v54 = vpop.eup %2929  ;;  %v1021_v60 = vmul.f32 1.442695, %v974_v12  ;;  %v5051_v12 = vld [vmem:[#allocation27_spill] sm:$0xff] }
 0x1c1   :  { %1137 = vadd.xlane.f32.xlu0 %v2930_v54  ;;  %v887_v26 = vpop.permute.xlu1 %886  ;;  %v1476_v37 = vpack.c.bf16 %v2930_v54, %v2928_v29  ;;  %v2932_v21 = vpop.eup %2931  ;;  %v981_v54 = vsub.f32 %v5051_v12, %v912_v0  ;;  %v5054_v0 = vld [vmem:[#allocation28_spill] sm:$0xff] }
 0x1c2   :  { %2941 = vpow2.f32 %v1021_v60  ;;  %v976_v35 = vsub.f32 %v5048_v39, %v887_v26  ;;  %1121 = vadd.xlane.f32.xlu1 %v4157_v19  ;;  %v922_v48 = vpop.permute.xlu0 %921 }
 0x1c3   :  { %2787 = vmatprep.mubr.bf16.mxu0 %v1476_v37  ;;  %2943 = vpow2.f32 %v1023_v30  ;;  %v1035_v39 = vmul.f32 1.442695, %v981_v54 }
 0x1c4   :  { %v2934_v45 = vpop.eup %2933  ;;  %v1025_v58 = vmul.f32 1.442695, %v976_v35  ;;  %v5053_v35 = vld [vmem:[#allocation29_spill] sm:$0xff] }
 0x1c5   :  { %1141 = vadd.xlane.f32.xlu0 %v2934_v45  ;;  %v897_v61 = vpop.permute.xlu1 %896  ;;  %v1477_v38 = vpack.c.bf16 %v2934_v45, %v2932_v21  ;;  %v2936_v34 = vpop.eup %2935  ;;  %v983_v45 = vsub.f32 %v5053_v35, %v922_v48  ;;  %v5056_v48 = vld [vmem:[#allocation30_spill] sm:$0xff] }
 0x1c6   :  { %2945 = vpow2.f32 %v1025_v58  ;;  %v978_v27 = vsub.f32 %v5050_v13, %v897_v61  ;;  %1127 = vadd.xlane.f32.xlu1 %v4163_v16  ;;  %v932_v20 = vpop.permute.xlu0 %931 }
 0x1c7   :  { %2788 = vmatmul.mubr.bf16.gmra.mrb[8].mxu0 %v1477_v38  ;;  %2947 = vpow2.f32 %v1027_v23  ;;  %v1039_v13 = vmul.f32 1.442695, %v983_v45 }
 0x1c8   :  { %v2938_v19 = vpop.eup %2937  ;;  %v1029_v50 = vmul.f32 1.442695, %v978_v27  ;;  %v5055_v27 = vld [vmem:[#allocation31_spill] sm:$0xff] }
 0x1c9   :  { %1145 = vadd.xlane.f32.xlu0 %v2938_v19  ;;  %v907_v60 = vpop.permute.xlu1 %906  ;;  %v1478_v30 = vpack.c.bf16 %v2938_v19, %v2936_v34  ;;  %v2940_v26 = vpop.eup %2939  ;;  %v985_v19 = vsub.f32 %v5055_v27, %v932_v20  ;;  %v5058_v20 = vld [vmem:[#allocation32_spill] sm:$0xff] }
 0x1ca   :  { %2949 = vpow2.f32 %v1029_v50  ;;  %v980_v62 = vsub.f32 %v5052_v55, %v907_v60  ;;  %1131 = vadd.xlane.f32.xlu1 %v2924_v22  ;;  %v942_v38 = vpop.permute.xlu0 %941  ;;  %v5057_v55 = vld [vmem:[#allocation33_spill] sm:$0xff] }
 0x1cb   :  { %2791 = vmatprep.mubr.bf16.mxu0 %v1478_v30  ;;  %2951 = vpow2.f32 %v1031_v17  ;;  %v1043_v30 = vmul.f32 1.442695, %v985_v19 }
 0x1cc   :  { %v2942_v37 = vpop.eup %2941  ;;  %v1033_v16 = vmul.f32 1.442695, %v980_v62  ;;  %v987_v62 = vsub.f32 %v5057_v55, %v942_v38  ;;  %v5060_v38 = vld [vmem:[#allocation34_spill] sm:$0xff] }
 0x1cd   :  { %1149 = vadd.xlane.f32.xlu0 %v2942_v37  ;;  %v917_v58 = vpop.permute.xlu1 %916  ;;  %v1479_v23 = vpack.c.bf16 %v2942_v37, %v2940_v26  ;;  %v2944_v36 = vpop.eup %2943 }
 0x1ce   :  { %2953 = vpow2.f32 %v1033_v16  ;;  %v982_v53 = vsub.f32 %v5054_v0, %v917_v58  ;;  %1135 = vadd.xlane.f32.xlu1 %v2928_v29  ;;  %v5059_v0 = vld [vmem:[#allocation35_spill] sm:$0xff] }
 0x1cf   :  { %2792 = vmatmul.mubr.bf16.gmra.mrb[12].mxu0 %v1479_v23  ;;  %2955 = vpow2.f32 %v1035_v39  ;;  %v952_v39 = vpop.permute.xlu0 %951  ;;  %v1047_v23 = vmul.f32 1.442695, %v987_v62 }
 0x1d0   :  { %v2946_v61 = vpop.eup %2945  ;;  %v1037_v22 = vmul.f32 1.442695, %v982_v53  ;;  %v989_v53 = vsub.f32 %v5059_v0, %v952_v39 }
 0x1d1   :  { %1153 = vadd.xlane.f32.xlu0 %v2946_v61  ;;  %v927_v50 = vpop.permute.xlu1 %926  ;;  %v1480_v17 = vpack.c.bf16 %v2946_v61, %v2944_v36  ;;  %v2948_v54 = vpop.eup %2947 }
 0x1d2   :  { %2957 = vpow2.f32 %v1037_v22  ;;  %v984_v12 = vsub.f32 %v5056_v48, %v927_v50  ;;  %1139 = vadd.xlane.f32.xlu1 %v2932_v21 }
 0x1d3   :  { %2811 = vmatprep.mubr.bf16.mxu1 %v1480_v17  ;;  %2959 = vpow2.f32 %v1039_v13 }
 0x1d4   :  { %v2950_v60 = vpop.eup %2949  ;;  %v1041_v29 = vmul.f32 1.442695, %v984_v12  ;;  %v4190_v12 = vpop.permute.xlu0 %1287 }
 0x1d5   :  { %1157 = vadd.xlane.f32.xlu0 %v2950_v60  ;;  %v937_v37 = vpop.permute.xlu1 %936  ;;  %v1481_v16 = vpack.c.bf16 %v2950_v60, %v2948_v54  ;;  %v2952_v45 = vpop.eup %2951  ;;  %v5061_v60 = vld [vmem:[#allocation36_spill] sm:$0xff] }
 0x1d6   :  { %2961 = vpow2.f32 %v1041_v29  ;;  %v986_v35 = vsub.f32 %v5058_v20, %v937_v37  ;;  %1143 = vadd.xlane.f32.xlu1 %v2936_v34  ;;  %v1051_v34 = vmul.f32 1.442695, %v989_v53 }
 0x1d7   :  { %2812 = vmatmul.mubr.bf16.vlgmr.msra.gmra.mrb[0].mxu1 %v1481_v16  ;;  %2963 = vpow2.f32 %v1043_v30 }
 0x1d8   :  { %v2954_v58 = vpop.eup %2953  ;;  %v1045_v21 = vmul.f32 1.442695, %v986_v35  ;;  %v4193_v39 = vpop.permute.xlu0 %1302 }
 0x1d9   :  { %1161 = vadd.xlane.f32.xlu0 %v2954_v58  ;;  %v947_v61 = vpop.permute.xlu1 %946  ;;  %v1482_v22 = vpack.c.bf16 %v2954_v58, %v2952_v45  ;;  %v2956_v27 = vpop.eup %2955 }
 0x1da   :  { %2965 = vpow2.f32 %v1045_v21  ;;  %v988_v13 = vsub.f32 %v5060_v38, %v947_v61  ;;  %1147 = vadd.xlane.f32.xlu1 %v2940_v26  ;;  %v797_v38 = vmul.f32 1.442695, %v734_v32  ;;  %v2204_v32 = vld [vmem:[#allocation2 + $0x30] sm:$0xff] }
 0x1db   :  { %2815 = vmatprep.mubr.bf16.mxu1 %v1482_v22  ;;  %2967 = vpow2.f32 %v1047_v23  ;;  %vm2236_vm9 = vcmp.gt.f32.partialorder %v2204_v32, -5e+29 }
 0x1dc   :  { %v2958_v19 = vpop.eup %2957  ;;  %v1049_v50 = vmul.f32 1.442695, %v988_v13  ;;  %v4195_v21 = vpop.permute.xlu0 %1312 }
 0x1dd   :  { %1165 = vadd.xlane.f32.xlu0 %v2958_v19  ;;  %v957_v17 = vpop.permute.xlu1 %956  ;;  %v1483_v48 = vpack.c.bf16 %v2958_v19, %v2956_v27  ;;  %v2960_v30 = vpop.eup %2959 }
 0x1de   :  { %2969 = vpow2.f32 %v1049_v50  ;;  %v990_v29 = vsub.f32 %v5061_v60, %v957_v17  ;;  %1151 = vadd.xlane.f32.xlu1 %v2944_v36  ;;  %v2200_v50 = vld [vmem:[#allocation2 + $0x10] sm:$0xff]  ;;  %v5062_v17 = vmov 0  }
 0x1df   :  { %2816 = vmatmul.mubr.bf16.gmra.mrb[4].mxu1 %v1483_v48  ;;  %2971 = vpow2.f32 %v1051_v34  ;;  %vm2232_vm2 = vcmp.gt.f32.partialorder %v2200_v50, -5e+29  ;;  %v2210_v50 = vld [vmem:[#allocation2 + $0x60] sm:$0xff] }
 0x1e0   :  { %v2962_v55 = vpop.eup %2961  ;;  %v1053_v62 = vmul.f32 1.442695, %v990_v29  ;;  %v4197_v53 = vpop.permute.xlu0 %1322  ;;  %v2202_v29 = vld [vmem:[#allocation2 + $0x20] sm:$0xff]  ;;  %v2264_v40 = vsel %vm2232_vm2, 1, %v5062_v17  ;;  %vm2242_vm13 = vcmp.gt.f32.partialorder %v2210_v50, -5e+29 }
 0x1e1   :  { %1169 = vadd.xlane.f32.xlu0 %v2962_v55  ;;  %v1484_v26 = vpack.c.bf16 %v2962_v55, %v2960_v30  ;;  %v2964_v37 = vpop.eup %2963  ;;  %v4199_v61 = vpop.permute.xlu1 %1282  ;;  %vm2234_vm15 = vcmp.gt.f32.partialorder %v2202_v29, -5e+29 }
 0x1e2   :  { %2973 = vpow2.f32 %v1053_v62  ;;  %1155 = vadd.xlane.f32.xlu1 %v2948_v54 }
 0x1e3   :  { %2819 = vmatprep.mubr.bf16.mxu1 %v1484_v26  ;;  %2975 = vpow2.f32 %v797_v38  ;;  %v2266_v26 = vsel %vm2234_vm15, 1, %v5062_v17 }
 0x1e4   :  { %v2966_v16 = vpop.eup %2965 }
 0x1e5   :  { %1173 = vadd.xlane.f32.xlu0 %v2966_v16  ;;  %v1485_v20 = vpack.c.bf16 %v2966_v16, %v2964_v37  ;;  %v2968_v35 = vpop.eup %2967  ;;  %v4203_v22 = vpop.permute.xlu1 %1292  ;;  %v2201_v16 = vld [vmem:[#allocation2 + $0x18] sm:$0xff] }
 0x1e6   :  { %1159 = vadd.xlane.f32.xlu1 %v2952_v45  ;;  %v4201_v45 = vpop.permute.xlu0 %1332  ;;  %vm2233_vm5 = vcmp.gt.f32.partialorder %v2201_v16, -5e+29  ;;  %v2274_v16 = vsel %vm2242_vm13, 1, %v5062_v17 }
 0x1e7   :  { %2820 = vmatmul.mubr.bf16.gmra.mrb[8].mxu1 %v1485_v20  ;;  %v2265_v38 = vsel %vm2233_vm5, 1, %v5062_v17 }
 0x1e8   :  { %v2970_v36 = vpop.eup %2969 }
 0x1e9   :  { %1177 = vadd.xlane.f32.xlu0 %v2970_v36  ;;  %v1486_v58 = vpack.c.bf16 %v2970_v36, %v2968_v35  ;;  %v2972_v23 = vpop.eup %2971  ;;  %v4210_v19 = vpop.permute.xlu1 %1297 }
 0x1ea   :  { %1163 = vadd.xlane.f32.xlu1 %v2956_v27  ;;  %v4208_v13 = vpop.permute.xlu0 %1342  ;;  %v2198_v27 = vld [vmem:[#allocation2] sm:$0xff] }
 0x1eb   :  { %2823 = vmatprep.mubr.bf16.mxu1 %v1486_v58  ;;  %vm2230_vm6 = vcmp.gt.f32.partialorder %v2198_v27, -5e+29 }
 0x1ec   :  { %v2974_v0 = vpop.eup %2973  ;;  %v2262_v48 = vsel %vm2230_vm6, 1, %v5062_v17 }
 0x1ed   :  { %1181 = vadd.xlane.f32.xlu0 %v2974_v0  ;;  %v1487_v54 = vpack.c.bf16 %v2974_v0, %v2972_v23  ;;  %v4215_v60 = vpop.permute.xlu1 %1307  ;;  %v4222_v62 = vpop.eup %2975  ;;  %v2203_v0 = vld [vmem:[#allocation2 + $0x28] sm:$0xff] }
 0x1ee   :  { %1167 = vadd.xlane.f32.xlu1 %v2960_v30  ;;  %v4212_v34 = vpop.permute.xlu0 %1352  ;;  %v2199_v30 = vld [vmem:[#allocation2 + $0x8] sm:$0xff]  ;;  %vm2235_vm12 = vcmp.gt.f32.partialorder %v2203_v0, -5e+29  ;;  %v2209_v0 = vld [vmem:[#allocation2 + $0x58] sm:$0xff] }
 0x1ef   :  { %2824 = vmatmul.mubr.bf16.gmra.mrb[12].mxu1 %v1487_v54  ;;  %vm2231_vm11 = vcmp.gt.f32.partialorder %v2199_v30, -5e+29  ;;  %v2267_v32 = vsel %vm2235_vm12, 1, %v5062_v17  ;;  %v2212_v30 = vld [vmem:[#allocation2 + $0x70] sm:$0xff]  ;;  %vm2241_vm0 = vcmp.gt.f32.partialorder %v2209_v0, -5e+29 }
 0x1f0   :  { %v2263_v36 = vsel %vm2231_vm11, 1, %v5062_v17  ;;  %vm2244_vm1 = vcmp.gt.f32.partialorder %v2212_v30, -5e+29  ;;  %v2273_v30 = vsel %vm2241_vm0, 1, %v5062_v17 }
 0x1f1   :  { %v4220_v55 = vpop.permute.xlu1 %1317 }
 0x1f2   :  { %1171 = vadd.xlane.f32.xlu1 %v2964_v37  ;;  %v4218_v47 = vpop.permute.xlu0 %1362  ;;  %v2206_v37 = vld [vmem:[#allocation2 + $0x40] sm:$0xff] }
 0x1f3   :  { %5063 = vst [vmem:[#allocation37_spill] sm:$0xff] %v4218_v47  ;;  %vm2238_vm10 = vcmp.gt.f32.partialorder %v2206_v37, -5e+29 }
 0x1f4   :  { %v2270_v54 = vsel %vm2238_vm10, 1, %v5062_v17 }
 0x1f5   :  { %v4230_v58 = vpop.permute.xlu1 %1327 }
 0x1f6   :  { %1175 = vadd.xlane.f32.xlu1 %v2968_v35  ;;  %v4226_v20 = vpop.permute.xlu0 %1372  ;;  %v2268_v35 = vsel %vm2236_vm9, 1, %v5062_v17 }
 0x1f7   :  { %5064 = vst [vmem:[#allocation5_spill] sm:$0xff] %v4226_v20 }
 0x1f9   :  { %v4236_v29 = vpop.permute.xlu1 %1337 }
 0x1fa   :  { %1179 = vadd.xlane.f32.xlu1 %v2972_v23  ;;  %v2208_v23 = vld [vmem:[#allocation2 + $0x50] sm:$0xff]  ;;  %v4234_v27 = vpop.permute.xlu0 %1382 }
 0x1fb   :  { %vm2240_vm8 = vcmp.gt.f32.partialorder %v2208_v23, -5e+29  ;;  %5065 = vst [vmem:[#allocation6_spill] sm:$0xff] %v4234_v27  ;;  %v2214_v23 = vld [vmem:[#allocation2 + $0x80] sm:$0xff]  ;;  %v2215_v27 = vld [vmem:[#allocation2 + $0x88] sm:$0xff] }
 0x1fc   :  { %vm2246_vm7 = vcmp.gt.f32.partialorder %v2214_v23, -5e+29  ;;  %vm2247_vm10 = vcmp.gt.f32.partialorder %v2215_v27, -5e+29 }
 0x1fe   :  { %v4240_v37 = vpop.permute.xlu0 %1392 }
 0x1ff   :  { %5066 = vst [vmem:[#allocation7_spill] sm:$0xff] %v4240_v37 }
 0x202   :  { %v4248_v50 = vpop.permute.xlu0 %1402 }
 0x203   :  { %2295 = vperm.xlu0 %2832, %v2262_v48   ;;  %v2205_v48 = vld [vmem:[#allocation2 + $0x38] sm:$0xff]  ;;  %5067 = vst [vmem:[#allocation8_spill] sm:$0xff] %v4248_v50  ;;  %v2220_v50 = vld [vmem:[#allocation2 + $0xb0] sm:$0xff] }
 0x204   :  { %vm2237_vm14 = vcmp.gt.f32.partialorder %v2205_v48, -5e+29  ;;  %v2216_v48 = vld [vmem:[#allocation2 + $0x90] sm:$0xff]  ;;  %vm2252_vm11 = vcmp.gt.f32.partialorder %v2220_v50, -5e+29 }
 0x205   :  { %vm2248_vm6 = vcmp.gt.f32.partialorder %v2216_v48, -5e+29 }
 0x206   :  { %v2280_v23 = vsel %vm2248_vm6, 1, %v5062_v17 }
 0x207   :  { %2301 = vperm.xlu0 %2832, %v2264_v40   ;;  %v2272_v40 = vsel %vm2240_vm8, 1, %v5062_v17 }
 0x20b   :  { %2307 = vperm.xlu0 %2832, %v2266_v26   ;;  %1437 = vperm.xlu1 %2831, %v4222_v62   ;;  %v2207_v26 = vld [vmem:[#allocation2 + $0x48] sm:$0xff] }
 0x20c   :  { %vm2239_vm4 = vcmp.gt.f32.partialorder %v2207_v26, -5e+29  ;;  %v2218_v26 = vld [vmem:[#allocation2 + $0xa0] sm:$0xff] }
 0x20d   :  { %vm2250_vm15 = vcmp.gt.f32.partialorder %v2218_v26, -5e+29  ;;  %v2279_v26 = vsel %vm2247_vm10, 1, %v5062_v17 }
 0x20f   :  { %2313 = vperm.xlu0 %2832, %v2268_v35   ;;  %2298 = vperm.xlu1 %2831, %v2263_v36   ;;  %v2269_v35 = vsel %vm2237_vm14, 1, %v5062_v17  ;;  %v4244_v36 = vpop.permute.xlu1 %1347 }
 0x213   :  { %2319 = vperm.xlu0 %2832, %v2270_v54   ;;  %2304 = vperm.xlu1 %2831, %v2265_v38   ;;  %v2276_v54 = vsel %vm2244_vm1, 1, %v5062_v17  ;;  %v2271_v38 = vsel %vm2239_vm4, 1, %v5062_v17  ;;  %vm5074_vm4 = vcmask 7168  }
 0x214   :  { %vm5075_vm0 = vmmov %vm5074_vm4 }
 0x215   :  { %vm5079_vm10 = vmmov %vm5075_vm0 }
 0x217   :  { %2325 = vperm.xlu0 %2832, %v2272_v40   ;;  %2310 = vperm.xlu1 %2831, %v2267_v32   ;;  %v2211_v40 = vld [vmem:[#allocation2 + $0x68] sm:$0xff]  ;;  %v4250_v32 = vpop.permute.xlu1 %1357 }
 0x218   :  { %vm2243_vm2 = vcmp.gt.f32.partialorder %v2211_v40, -5e+29 }
 0x219   :  { %v2275_v0 = vsel %vm2243_vm2, 1, %v5062_v17  ;;  %vm5076_vm2 = vmmov %vm5075_vm0 }
 0x21b   :  { %2331 = vperm.xlu0 %2832, %v2274_v16   ;;  %2316 = vperm.xlu1 %2831, %v2269_v35   ;;  %v2278_v16 = vsel %vm2246_vm7, 1, %v5062_v17  ;;  %v2213_v35 = vld [vmem:[#allocation2 + $0x78] sm:$0xff] }
 0x21c   :  { %vm2245_vm9 = vcmp.gt.f32.partialorder %v2213_v35, -5e+29  ;;  %v2224_v35 = vld [vmem:[#allocation2 + $0xd0] sm:$0xff] }
 0x21d   :  { %v2277_v48 = vsel %vm2245_vm9, 1, %v5062_v17  ;;  %vm2256_vm12 = vcmp.gt.f32.partialorder %v2224_v35, -5e+29  ;;  %vm5077_vm9 = vmmov %vm5075_vm0 }
 0x21f   :  { %2337 = vperm.xlu0 %2832, %v2276_v54   ;;  %2322 = vperm.xlu1 %2831, %v2271_v38   ;;  %v4254_v54 = vpop.permute.xlu0 %1412  ;;  %v4258_v38 = vpop.permute.xlu1 %1367 }
 0x220   :  { %5068 = vst [vmem:[#allocation9_spill] sm:$0xff] %v4254_v54  ;;  %5069 = vst [vmem:[#allocation10_spill] sm:$0xff] %v4258_v38  ;;  %v2217_v54 = vld [vmem:[#allocation2 + $0x98] sm:$0xff]  ;;  %v2226_v38 = vld [vmem:[#allocation2 + $0xe0] sm:$0xff] }
 0x221   :  { %vm2249_vm8 = vcmp.gt.f32.partialorder %v2217_v54, -5e+29  ;;  %vm2258_vm14 = vcmp.gt.f32.partialorder %v2226_v38, -5e+29 }
 0x222   :  { %v2281_v50 = vsel %vm2249_vm8, 1, %v5062_v17  ;;  %vm5081_vm8 = vmmov %vm5075_vm0 }
 0x223   :  { %2343 = vperm.xlu0 %2832, %v2278_v16   ;;  %2328 = vperm.xlu1 %2831, %v2273_v30   ;;  %v2282_v16 = vsel %vm2250_vm15, 1, %v5062_v17  ;;  %v4262_v40 = vpop.permute.xlu0 %1422  ;;  %v2222_v30 = vld [vmem:[#allocation2 + $0xc0] sm:$0xff]  ;;  %v4264_v37 = vpop.permute.xlu1 %1377 }
 0x224   :  { %5070 = vst [vmem:[#allocation11_spill] sm:$0xff] %v4262_v40  ;;  %5071 = vst [vmem:[#allocation12_spill] sm:$0xff] %v4264_v37  ;;  %vm2254_vm5 = vcmp.gt.f32.partialorder %v2222_v30, -5e+29  ;;  %v1057_v37 = vld [vmem:[#allocation3 + $0x10] sm:$0xff] }
 0x225   :  { %v2286_v27 = vsel %vm2254_vm5, 1, %v5062_v17  ;;  %v1089_v35 = vmul.f32 %v4033_v24, %v1057_v37  ;;  %vm5080_vm5 = vmmov %vm5075_vm0 }
 0x227   :  { %2349 = vperm.xlu0 %2832, %v2280_v23   ;;  %2334 = vperm.xlu1 %2831, %v2275_v0   ;;  %v2284_v23 = vsel %vm2252_vm11, 1, %v5062_v17  ;;  %v2219_v0 = vld [vmem:[#allocation2 + $0xa8] sm:$0xff]  ;;  %v4272_v40 = vpop.permute.xlu1 %1387  ;;  %vm5078_vm11 = vmmov %vm5075_vm0 }
 0x228   :  { %5073 = vst [vmem:[#allocation15_spill] sm:$0xff] %v4272_v40  ;;  %vm2251_vm13 = vcmp.gt.f32.partialorder %v2219_v0, -5e+29  ;;  %v2223_v40 = vld [vmem:[#allocation2 + $0xc8] sm:$0xff] }
 0x229   :  { %vm2255_vm7 = vcmp.gt.f32.partialorder %v2223_v40, -5e+29 }
 0x22b   :  { %2355 = vperm.xlu0 %2832, %v2282_v16   ;;  %2340 = vperm.xlu1 %2831, %v2277_v48   ;;  %v4268_v16 = vpop.permute.xlu0 %1432  ;;  %v1055_v48 = vld [vmem:[#allocation3] sm:$0xff] }
 0x22c   :  { %5072 = vst [vmem:[#allocation13_spill] sm:$0xff] %v4268_v16  ;;  %v1087_v30 = vmul.f32 %v4022_v10, %v1055_v48  ;;  %v2283_v16 = vsel %vm2251_vm13, 1, %v5062_v17  ;;  %v2290_v10 = vsel %vm2258_vm14, 1, %v5062_v17  ;;  %v1058_v48 = vld [vmem:[#allocation3 + $0x18] sm:$0xff]  ;;  %vm5083_vm13 = vmmov %vm5075_vm0 }
 0x22d   :  { %v1090_v38 = vmul.f32 %v4044_v56, %v1058_v48  ;;  %v1062_v56 = vld [vmem:[#allocation3 + $0x38] sm:$0xff]  ;;  %vm5084_vm14 = vmmov %vm5075_vm0 }
 0x22e   :  { %v1094_v48 = vmul.f32 %v4066_v3, %v1062_v56 }
 0x22f   :  { %2361 = vperm.xlu0 %2832, %v2284_v23   ;;  %2346 = vperm.xlu1 %2831, %v2279_v26   ;;  %v2221_v23 = vld [vmem:[#allocation2 + $0xb8] sm:$0xff]  ;;  %v2288_v26 = vsel %vm2256_vm12, 1, %v5062_v17  ;;  %vm5082_vm12 = vmmov %vm5075_vm0 }
 0x230   :  { %vm2253_vm1 = vcmp.gt.f32.partialorder %v2221_v23, -5e+29 }
 0x233   :  { %2367 = vperm.xlu0 %2832, %v2286_v27   ;;  %2352 = vperm.xlu1 %2831, %v2281_v50   ;;  %v4277_v27 = vpop.permute.xlu1 %1397  ;;  %v2285_v50 = vsel %vm2253_vm1, 1, %v5062_v17  ;;  %vm5085_vm1 = vmmov %vm5075_vm0 }
 0x236   :  { %v1120_v54 = vpop.xlane.xlu0 %1119 }
 0x237   :  { %v1183_v47 = vadd.f32 %v1120_v54, %v1087_v30  ;;  %2373 = vperm.xlu0 %2832, %v2288_v26   ;;  %2358 = vperm.xlu1 %2831, %v2283_v16   ;;  %v2225_v16 = vld [vmem:[#allocation2 + $0xd8] sm:$0xff]  ;;  %v1060_v30 = vld [vmem:[#allocation3 + $0x28] sm:$0xff]  ;;  %v4286_v24 = vpop.permute.xlu1 %1407 }
 0x238   :  { %vm2257_vm6 = vcmp.gt.f32.partialorder %v2225_v16, -5e+29  ;;  %v2227_v26 = vld [vmem:[#allocation2 + $0xe8] sm:$0xff]  ;;  %v1092_v40 = vmul.f32 %v4055_v46, %v1060_v30 }
 0x239   :  { %1216 = vst.msk [vmem:[#allocation3] sm:$0xff] %vm5074_vm4, %v1183_v47  ;;  %v2287_v47 = vsel %vm2255_vm7, 1, %v5062_v17  ;;  %vm2259_vm15 = vcmp.gt.f32.partialorder %v2227_v26, -5e+29  ;;  %v1064_v46 = vld [vmem:[#allocation3 + $0x48] sm:$0xff]  ;;  %vm5086_vm4 = vmmov %vm5075_vm0 }
 0x23a   :  { %v1124_v0 = vpop.xlane.xlu0 %1123  ;;  %vm5087_vm7 = vmmov %vm5075_vm0 }
 0x23b   :  { %v1185_v20 = vadd.f32 %v1124_v0, %v1089_v35  ;;  %2379 = vperm.xlu0 %2832, %v2290_v10   ;;  %2364 = vperm.xlu1 %2831, %v2285_v50   ;;  %v4291_v50 = vpop.permute.xlu1 %1417 }
 0x23d   :  { %1218 = vst.msk [vmem:[#allocation3 + $0x10] sm:$0xff] %vm5075_vm0, %v1185_v20  ;;  %v2289_v20 = vsel %vm2257_vm6, 1, %v5062_v17  ;;  %vm5088_vm6 = vmmov %vm5075_vm0 }
 0x23e   :  { %v1126_v23 = vpop.xlane.xlu0 %1125 }
 0x23f   :  { %v1186_v37 = vadd.f32 %v1126_v23, %v1090_v38  ;;  %2370 = vperm.xlu1 %2831, %v2287_v47   ;;  %v2291_v38 = vsel %vm2259_vm15, 1, %v5062_v17  ;;  %v4297_v30 = vpop.permute.xlu1 %1427  ;;  %vm5090_vm15 = vmmov %vm5075_vm0 }
 0x240   :  { %v1942_v54 = vld [vmem:[#allocation3] sm:$0xff] }
 0x241   :  { %2977 = vrcp.f32 %v1942_v54  ;;  %1219 = vst.msk [vmem:[#allocation3 + $0x18] sm:$0xff] %vm5076_vm2, %v1186_v37  ;;  %v1056_v37 = vld [vmem:[#allocation3 + $0x8] sm:$0xff]  ;;  %v1096_v54 = vmul.f32 %v4077_v49, %v1064_v46  ;;  %vm5089_vm2 = vmmov %vm5075_vm0 }
 0x242   :  { %v1130_v35 = vpop.xlane.xlu0 %1129  ;;  %v1068_v49 = vld [vmem:[#allocation3 + $0x68] sm:$0xff] }
 0x243   :  { %v1188_v0 = vadd.f32 %v1130_v35, %v1092_v40  ;;  %2376 = vperm.xlu1 %2831, %v2289_v20   ;;  %v1088_v40 = vmul.f32 %v3979_v44, %v1056_v37  ;;  %v1066_v35 = vld [vmem:[#allocation3 + $0x58] sm:$0xff]  ;;  %v1061_v44 = vld [vmem:[#allocation3 + $0x30] sm:$0xff]  ;;  %v1100_v37 = vmul.f32 %v4097_v43, %v1068_v49 }
 0x244   :  { %v1944_v10 = vld [vmem:[#allocation3 + $0x10] sm:$0xff] }
 0x245   :  { %2979 = vrcp.f32 %v1944_v10  ;;  %1221 = vst.msk [vmem:[#allocation3 + $0x28] sm:$0xff] %vm5077_vm9, %v1188_v0  ;;  %v1059_v0 = vld [vmem:[#allocation3 + $0x20] sm:$0xff]  ;;  %vm5091_vm9 = vmmov %vm5075_vm0 }
 0x246   :  { %v1134_v16 = vpop.xlane.xlu0 %1133 }
 0x247   :  { %v1190_v23 = vadd.f32 %v1134_v16, %v1094_v48  ;;  %2382 = vperm.xlu1 %2831, %v2291_v38   ;;  %v1098_v48 = vmul.f32 %v4088_v25, %v1066_v35  ;;  %v1091_v38 = vmul.f32 %v3995_v11, %v1059_v0  ;;  %v1070_v25 = vld [vmem:[#allocation3 + $0x78] sm:$0xff] }
 0x248   :  { %v1945_v0 = vld [vmem:[#allocation3 + $0x18] sm:$0xff] }
 0x249   :  { %1223 = vst.msk [vmem:[#allocation3 + $0x38] sm:$0xff] %vm5078_vm11, %v1190_v23  ;;  %vm5092_vm11 = vmmov %vm5075_vm0 }
 0x24b   :  { %v2978_v47 = vpop.eup %2977 }
 0x24c   :  { %2008 = vperm.xlu0 %2832, %v2978_v47  }
 0x24e   :  { %v1138_v26 = vpop.xlane.xlu0 %1137 }
 0x24f   :  { %v2980_v3 = vpop.eup %2979  ;;  %v1192_v20 = vadd.f32 %v1138_v26, %v1096_v54  ;;  %v1122_v56 = vpop.xlane.xlu1 %1121  ;;  %v1093_v26 = vmul.f32 %v4004_v63, %v1061_v44  ;;  %v1947_v44 = vld [vmem:[#allocation3 + $0x28] sm:$0xff] }
 0x250   :  { %v1184_v10 = vadd.f32 %v1122_v56, %v1088_v40  ;;  %2018 = vperm.xlu0 %2832, %v2980_v3   ;;  %v1063_v3 = vld [vmem:[#allocation3 + $0x40] sm:$0xff]  ;;  %v1102_v56 = vmul.f32 %v4106_v5, %v1070_v25 }
 0x251   :  { %1225 = vst.msk [vmem:[#allocation3 + $0x48] sm:$0xff] %vm5079_vm10, %v1192_v20  ;;  %vm5093_vm10 = vmmov %vm5075_vm0 }
 0x252   :  { %1217 = vst.msk [vmem:[#allocation3 + $0x8] sm:$0xff] %vm5080_vm5, %v1184_v10  ;;  %v1142_v16 = vpop.xlane.xlu0 %1141  ;;  %v1095_v10 = vmul.f32 %v4013_v59, %v1063_v3  ;;  %v1949_v3 = vld [vmem:[#allocation3 + $0x38] sm:$0xff]  ;;  %vm5094_vm5 = vmmov %vm5075_vm0 }
 0x253   :  { %v1194_v23 = vadd.f32 %v1142_v16, %v1098_v48  ;;  %v1128_v46 = vpop.xlane.xlu1 %1127  ;;  %v1072_v48 = vld [vmem:[#allocation3 + $0x88] sm:$0xff] }
 0x254   :  { %v1187_v47 = vadd.f32 %v1128_v46, %v1091_v38  ;;  %v1065_v38 = vld [vmem:[#allocation3 + $0x50] sm:$0xff]  ;;  %v1104_v46 = vmul.f32 %v4115_v4, %v1072_v48 }
 0x255   :  { %1227 = vst.msk [vmem:[#allocation3 + $0x58] sm:$0xff] %vm5081_vm8, %v1194_v23  ;;  %vm5095_vm8 = vmmov %vm5075_vm0 }
 0x256   :  { %1220 = vst.msk [vmem:[#allocation3 + $0x20] sm:$0xff] %vm5082_vm12, %v1187_v47  ;;  %v1146_v54 = vpop.xlane.xlu0 %1145  ;;  %v1097_v47 = vmul.f32 %v4024_v41, %v1065_v38  ;;  %v1078_v38 = vld [vmem:[#allocation3 + $0xb8] sm:$0xff]  ;;  %vm5096_vm12 = vmmov %vm5075_vm0 }
 0x257   :  { %v1196_v40 = vadd.f32 %v1146_v54, %v1100_v37  ;;  %v1132_v35 = vpop.xlane.xlu1 %1131  ;;  %v1074_v37 = vld [vmem:[#allocation3 + $0x98] sm:$0xff] }
 0x258   :  { %v1189_v20 = vadd.f32 %v1132_v35, %v1093_v26  ;;  %v1067_v26 = vld [vmem:[#allocation3 + $0x60] sm:$0xff]  ;;  %v1106_v35 = vmul.f32 %v4124_v1, %v1074_v37 }
 0x259   :  { %v1943_v11 = vld [vmem:[#allocation3 + $0x8] sm:$0xff]  ;;  %1229 = vst.msk [vmem:[#allocation3 + $0x68] sm:$0xff] %vm5083_vm13, %v1196_v40  ;;  %vm5097_vm13 = vmmov %vm5075_vm0 }
 0x25a   :  { %2981 = vrcp.f32 %v1943_v11  ;;  %1222 = vst.msk [vmem:[#allocation3 + $0x30] sm:$0xff] %vm5084_vm14, %v1189_v20  ;;  %v1150_v43 = vpop.xlane.xlu0 %1149  ;;  %v1099_v20 = vmul.f32 %v4035_v9, %v1067_v26  ;;  %v1076_v11 = vld [vmem:[#allocation3 + $0xa8] sm:$0xff]  ;;  %vm5098_vm14 = vmmov %vm5075_vm0 }
 0x25b   :  { %v1198_v16 = vadd.f32 %v1150_v43, %v1102_v56  ;;  %v1136_v63 = vpop.xlane.xlu1 %1135  ;;  %2983 = vrcp.f32 %v1945_v0  ;;  %v1069_v0 = vld [vmem:[#allocation3 + $0x70] sm:$0xff]  ;;  %v1108_v1 = vmul.f32 %v4133_v6, %v1076_v11  ;;  %v1110_v6 = vmul.f32 %v4139_v18, %v1078_v38  ;;  %v1080_v26 = vld [vmem:[#allocation3 + $0xc8] sm:$0xff] }
 0x25c   :  { %v1191_v49 = vadd.f32 %v1136_v63, %v1095_v10  ;;  %v1101_v9 = vmul.f32 %v4046_v51, %v1069_v0  ;;  %v1112_v18 = vmul.f32 %v4143_v8, %v1080_v26  ;;  %v1082_v0 = vld [vmem:[#allocation3 + $0xd8] sm:$0xff] }
 0x25d   :  { %v1946_v23 = vld [vmem:[#allocation3 + $0x20] sm:$0xff]  ;;  %1231 = vst.msk [vmem:[#allocation3 + $0x78] sm:$0xff] %vm5085_vm1, %v1198_v16  ;;  %v1951_v16 = vld [vmem:[#allocation3 + $0x48] sm:$0xff]  ;;  %v1114_v8 = vmul.f32 %v4148_v57, %v1082_v0  ;;  %v1086_v26 = vld [vmem:[#allocation3 + $0xf8] sm:$0xff] }
 0x25e   :  { %2985 = vrcp.f32 %v1946_v23  ;;  %1224 = vst.msk [vmem:[#allocation3 + $0x40] sm:$0xff] %vm5086_vm4, %v1191_v49  ;;  %v1154_v5 = vpop.xlane.xlu0 %1153  ;;  %vm5099_vm1 = vmmov %vm5075_vm0  ;;  %v1248_v0 = vld [vmem:[#allocation4] sm:$0xff] }
 0x25f   :  { %v1200_v59 = vadd.f32 %v1154_v5, %v1104_v46  ;;  %v1140_v54 = vpop.xlane.xlu1 %1139  ;;  %2987 = vrcp.f32 %v1947_v44  ;;  %v1071_v44 = vld [vmem:[#allocation3 + $0x80] sm:$0xff]  ;;  %vm5100_vm4 = vmmov %vm5075_vm0 }
 0x260   :  { %v1193_v25 = vadd.f32 %v1140_v54, %v1097_v47  ;;  %v1103_v54 = vmul.f32 %v4057_v33, %v1071_v44 }
 0x261   :  { %v1948_v40 = vld [vmem:[#allocation3 + $0x30] sm:$0xff]  ;;  %1233 = vst.msk [vmem:[#allocation3 + $0x88] sm:$0xff] %vm5087_vm7, %v1200_v59  ;;  %v1953_v59 = vld [vmem:[#allocation3 + $0x58] sm:$0xff]  ;;  %vm5101_vm7 = vmmov %vm5075_vm0 }
 0x262   :  { %2989 = vrcp.f32 %v1948_v40  ;;  %1226 = vst.msk [vmem:[#allocation3 + $0x50] sm:$0xff] %vm5075_vm0, %v1193_v25  ;;  %v1158_v4 = vpop.xlane.xlu0 %1157 }
 0x263   :  { %v1202_v41 = vadd.f32 %v1158_v4, %v1106_v35  ;;  %v1144_v56 = vpop.xlane.xlu1 %1143  ;;  %2991 = vrcp.f32 %v1949_v3  ;;  %v1073_v3 = vld [vmem:[#allocation3 + $0x90] sm:$0xff] }
 0x264   :  { %v2982_v43 = vpop.eup %2981  ;;  %v1195_v10 = vadd.f32 %v1144_v56, %v1099_v20  ;;  %v1105_v56 = vmul.f32 %v4068_v2, %v1073_v3  ;;  %v1957_v38 = vld [vmem:[#allocation3 + $0x78] sm:$0xff]  ;;  %v1079_v3 = vld [vmem:[#allocation3 + $0xc0] sm:$0xff] }
 0x265   :  { %v1950_v48 = vld [vmem:[#allocation3 + $0x40] sm:$0xff]  ;;  %1235 = vst.msk [vmem:[#allocation3 + $0x98] sm:$0xff] %vm5088_vm6, %v1202_v41  ;;  %2013 = vperm.xlu1 %2831, %v2982_v43   ;;  %v2984_v49 = vpop.eup %2983  ;;  %v1955_v41 = vld [vmem:[#allocation3 + $0x68] sm:$0xff]  ;;  %vm5102_vm6 = vmmov %vm5075_vm0 }
 0x266   :  { %2993 = vrcp.f32 %v1950_v48  ;;  %1228 = vst.msk [vmem:[#allocation3 + $0x60] sm:$0xff] %vm5089_vm2, %v1195_v10  ;;  %v1162_v63 = vpop.xlane.xlu0 %1161  ;;  %vm5103_vm2 = vmmov %vm5075_vm0 }
 0x267   :  { %v1204_v23 = vadd.f32 %v1162_v63, %v1108_v1  ;;  %v1148_v46 = vpop.xlane.xlu1 %1147  ;;  %2995 = vrcp.f32 %v1951_v16  ;;  %v1075_v1 = vld [vmem:[#allocation3 + $0xa0] sm:$0xff] }
 0x268   :  { %v2986_v5 = vpop.eup %2985  ;;  %v1197_v47 = vadd.f32 %v1148_v46, %v1101_v9 }
 0x269   :  { %v1952_v37 = vld [vmem:[#allocation3 + $0x50] sm:$0xff]  ;;  %1237 = vst.msk [vmem:[#allocation3 + $0xa8] sm:$0xff] %vm5090_vm15, %v1204_v23  ;;  %2028 = vperm.xlu0 %2832, %v2986_v5   ;;  %2023 = vperm.xlu1 %2831, %v2984_v49   ;;  %v2988_v25 = vpop.eup %2987  ;;  %v1107_v49 = vmul.f32 %v4079_v42, %v1075_v1  ;;  %v1084_v23 = vld [vmem:[#allocation3 + $0xe8] sm:$0xff] }
 0x26a   :  { %2997 = vrcp.f32 %v1952_v37  ;;  %1230 = vst.msk [vmem:[#allocation3 + $0x70] sm:$0xff] %vm5091_vm9, %v1197_v47  ;;  %v1166_v51 = vpop.xlane.xlu0 %1165  ;;  %v1077_v47 = vld [vmem:[#allocation3 + $0xb0] sm:$0xff]  ;;  %v1116_v57 = vmul.f32 %v4152_v15, %v1084_v23  ;;  %v1118_v15 = vmul.f32 %v4222_v62, %v1086_v26 }
 0x26b   :  { %v1206_v40 = vadd.f32 %v1166_v51, %v1110_v6  ;;  %v1152_v35 = vpop.xlane.xlu1 %1151  ;;  %2999 = vrcp.f32 %v1953_v59  ;;  %v1959_v51 = vld [vmem:[#allocation3 + $0x88] sm:$0xff] }
 0x26c   :  { %v2990_v4 = vpop.eup %2989  ;;  %v1199_v20 = vadd.f32 %v1152_v35, %v1103_v54  ;;  %v1109_v54 = vmul.f32 %v4090_v14, %v1077_v47  ;;  %v1083_v47 = vld [vmem:[#allocation3 + $0xe0] sm:$0xff] }
 0x26d   :  { %v1954_v11 = vld [vmem:[#allocation3 + $0x60] sm:$0xff]  ;;  %1239 = vst.msk [vmem:[#allocation3 + $0xb8] sm:$0xff] %vm5092_vm11, %v1206_v40  ;;  %2038 = vperm.xlu0 %2832, %v2990_v4   ;;  %2033 = vperm.xlu1 %2831, %v2988_v25   ;;  %v2992_v43 = vpop.eup %2991 }
 0x26e   :  { %3001 = vrcp.f32 %v1954_v11  ;;  %1232 = vst.msk [vmem:[#allocation3 + $0x80] sm:$0xff] %vm5093_vm10, %v1199_v20  ;;  %v1170_v33 = vpop.xlane.xlu0 %1169 }
 0x26f   :  { %v1208_v10 = vadd.f32 %v1170_v33, %v1112_v18  ;;  %v1156_v48 = vpop.xlane.xlu1 %1155  ;;  %3003 = vrcp.f32 %v1955_v41  ;;  %v1250_v18 = vld [vmem:[#allocation4 + $0x10] sm:$0xff]  ;;  %v1961_v41 = vld [vmem:[#allocation3 + $0x98] sm:$0xff]  ;;  %v1111_v33 = vmul.f32 %v4099_v31, %v1079_v3 }
 0x270   :  { %v2994_v16 = vpop.eup %2993  ;;  %v1201_v63 = vadd.f32 %v1156_v48, %v1105_v56  ;;  %v1081_v48 = vld [vmem:[#allocation3 + $0xd0] sm:$0xff]  ;;  %v1963_v31 = vld [vmem:[#allocation3 + $0xa8] sm:$0xff] }
 0x271   :  { %v1956_v9 = vld [vmem:[#allocation3 + $0x70] sm:$0xff]  ;;  %1241 = vst.msk [vmem:[#allocation3 + $0xc8] sm:$0xff] %vm5094_vm5, %v1208_v10  ;;  %2048 = vperm.xlu0 %2832, %v2994_v16   ;;  %2043 = vperm.xlu1 %2831, %v2992_v43   ;;  %v2996_v46 = vpop.eup %2995  ;;  %v1251_v16 = vld [vmem:[#allocation4 + $0x18] sm:$0xff] }
 0x272   :  { %3005 = vrcp.f32 %v1956_v9  ;;  %1234 = vst.msk [vmem:[#allocation3 + $0x90] sm:$0xff] %vm5095_vm8, %v1201_v63  ;;  %v1174_v2 = vpop.xlane.xlu0 %1173  ;;  %v1249_v9 = vld [vmem:[#allocation4 + $0x8] sm:$0xff] }
 0x273   :  { %v1210_v44 = vadd.f32 %v1174_v2, %v1114_v8  ;;  %v1160_v5 = vpop.xlane.xlu1 %1159  ;;  %3007 = vrcp.f32 %v1957_v38  ;;  %v1442_v8 = vmul.f32 %v4203_v22, %v1250_v18  ;;  %v1440_v38 = vmul.f32 %v4199_v61, %v1248_v0  ;;  %v1254_v0 = vld [vmem:[#allocation4 + $0x30] sm:$0xff] }
 0x274   :  { %v2998_v37 = vpop.eup %2997  ;;  %v1203_v6 = vadd.f32 %v1160_v5, %v1107_v49  ;;  %v1113_v49 = vmul.f32 %v4108_v28, %v1081_v48  ;;  %v1965_v28 = vld [vmem:[#allocation3 + $0xb8] sm:$0xff] }
 0x275   :  { %v1958_v59 = vld [vmem:[#allocation3 + $0x80] sm:$0xff]  ;;  %1243 = vst.msk [vmem:[#allocation3 + $0xd8] sm:$0xff] %vm5096_vm12, %v1210_v44  ;;  %2058 = vperm.xlu0 %2832, %v2998_v37   ;;  %2053 = vperm.xlu1 %2831, %v2996_v46   ;;  %v3000_v25 = vpop.eup %2999  ;;  %v1443_v46 = vmul.f32 %v4210_v19, %v1251_v16 }
 0x276   :  { %3009 = vrcp.f32 %v1958_v59  ;;  %1236 = vst.msk [vmem:[#allocation3 + $0xa0] sm:$0xff] %vm5097_vm13, %v1203_v6  ;;  %v1178_v42 = vpop.xlane.xlu0 %1177  ;;  %v1441_v6 = vmul.f32 %v4190_v12, %v1249_v9  ;;  %v1115_v12 = vmul.f32 %v4117_v52, %v1083_v47  ;;  %v1446_v9 = vmul.f32 %v4195_v21, %v1254_v0 }
 0x277   :  { %v1212_v40 = vadd.f32 %v1178_v42, %v1116_v57  ;;  %v1164_v35 = vpop.xlane.xlu1 %1163  ;;  %3011 = vrcp.f32 %v1959_v51 }
 0x278   :  { %v3002_v4 = vpop.eup %3001  ;;  %v1205_v20 = vadd.f32 %v1164_v35, %v1109_v54  ;;  %v1085_v35 = vld [vmem:[#allocation3 + $0xf0] sm:$0xff] }
 0x279   :  { %v1960_v11 = vld [vmem:[#allocation3 + $0x90] sm:$0xff]  ;;  %1245 = vst.msk [vmem:[#allocation3 + $0xe8] sm:$0xff] %vm5098_vm14, %v1212_v40  ;;  %2068 = vperm.xlu0 %2832, %v3002_v4   ;;  %2063 = vperm.xlu1 %2831, %v3000_v25   ;;  %v3004_v56 = vpop.eup %3003  ;;  %v1117_v52 = vmul.f32 %v4126_v7, %v1085_v35  ;;  %v1259_v35 = vld [vmem:[#allocation4 + $0x58] sm:$0xff] }
 0x27a   :  { %3013 = vrcp.f32 %v1960_v11  ;;  %1238 = vst.msk [vmem:[#allocation3 + $0xb0] sm:$0xff] %vm5099_vm1, %v1205_v20  ;;  %v1182_v14 = vpop.xlane.xlu0 %1181  ;;  %v1967_v11 = vld [vmem:[#allocation3 + $0xc8] sm:$0xff] }
 0x27b   :  { %v1214_v43 = vadd.f32 %v1182_v14, %v1118_v15  ;;  %v1168_v10 = vpop.xlane.xlu1 %1167  ;;  %3015 = vrcp.f32 %v1961_v41 }
 0x27c   :  { %v3006_v1 = vpop.eup %3005  ;;  %v1207_v63 = vadd.f32 %v1168_v10, %v1111_v33 }
 0x27d   :  { %v1962_v62 = vld [vmem:[#allocation3 + $0xa0] sm:$0xff]  ;;  %1247 = vst.msk [vmem:[#allocation3 + $0xf8] sm:$0xff] %vm5100_vm4, %v1214_v43  ;;  %2078 = vperm.xlu0 %2832, %v3006_v1   ;;  %2073 = vperm.xlu1 %2831, %v3004_v56   ;;  %v3008_v23 = vpop.eup %3007  ;;  %v1969_v43 = vld [vmem:[#allocation3 + $0xd8] sm:$0xff] }
 0x27e   :  { %3017 = vrcp.f32 %v1962_v62  ;;  %1240 = vst.msk [vmem:[#allocation3 + $0xc0] sm:$0xff] %vm5101_vm7, %v1207_v63  ;;  %v2781_v2 = vpop.f32.mrb[0].mxu0  ;;  %v1252_v1 = vld [vmem:[#allocation4 + $0x20] sm:$0xff]  ;;  %v1255_v63 = vld [vmem:[#allocation4 + $0x38] sm:$0xff] }
 0x27f   :  { %v1812_v44 = vadd.f32 %v2781_v2, %v1442_v8  ;;  %v1602_v22 = vpop.f32.mrb[1].mxu0  ;;  %v1172_v5 = vpop.xlane.xlu1 %1171  ;;  %3019 = vrcp.f32 %v1963_v31  ;;  %v1253_v8 = vld [vmem:[#allocation4 + $0x28] sm:$0xff] }
 0x280   :  { %v3010_v37 = vpop.eup %3009  ;;  %v1810_v59 = vadd.f32 %v1602_v22, %v1440_v38  ;;  %v1209_v57 = vadd.f32 %v1172_v5, %v1113_v49  ;;  %v2782_v61 = vpop.f32.mrb[2].mxu0  ;;  %v1444_v38 = vmul.f32 %v4193_v39, %v1252_v1  ;;  %v1971_v31 = vld [vmem:[#allocation3 + $0xe8] sm:$0xff]  ;;  %v1445_v47 = vmul.f32 %v4215_v60, %v1253_v8 }
 0x281   :  { %v1964_v51 = vld [vmem:[#allocation3 + $0xb0] sm:$0xff]  ;;  %1845 = vst.msk [vmem:[#allocation4 + $0x10] sm:$0xff] %vm89_vm3, %v1812_v44  ;;  %v1813_v42 = vadd.f32 %v2782_v61, %v1443_v46  ;;  %v1605_v54 = vpop.f32.mrb[3].mxu0  ;;  %2088 = vperm.xlu0 %2832, %v3010_v37   ;;  %2083 = vperm.xlu1 %2831, %v3008_v23   ;;  %v3012_v25 = vpop.eup %3011  ;;  %v1447_v46 = vmul.f32 %v4220_v55, %v1255_v63 }
 0x282   :  { %3021 = vrcp.f32 %v1964_v51  ;;  %1843 = vst.msk [vmem:[#allocation4] sm:$0xff] %vm89_vm3, %v1810_v59  ;;  %v1811_v19 = vadd.f32 %v1605_v54, %v1441_v6  ;;  %v4355_v26 = vpop.permute.xlu0 %2295 }
 0x283   :  { %1242 = vst.msk [vmem:[#allocation3 + $0xd0] sm:$0xff] %vm5075_vm0, %v1209_v57  ;;  %v1176_v40 = vpop.xlane.xlu1 %1175  ;;  %3023 = vrcp.f32 %v1965_v28  ;;  %v1258_v28 = vld [vmem:[#allocation4 + $0x50] sm:$0xff]  ;;  %vm2390_vm11 = vcmp.eq.s32.totalorder %v4355_v26, 1 }
 0x284   :  { %1846 = vst.msk [vmem:[#allocation4 + $0x18] sm:$0xff] %vm89_vm3, %v1813_v42  ;;  %v3014_v3 = vpop.eup %3013  ;;  %1844 = vst.msk [vmem:[#allocation4 + $0x8] sm:$0xff] %vm89_vm3, %v1811_v19  ;;  %v1211_v4 = vadd.f32 %v1176_v40, %v1115_v12  ;;  %v1973_v42 = vld [vmem:[#allocation3 + $0xf8] sm:$0xff] }
 0x285   :  { %v1966_v20 = vld [vmem:[#allocation3 + $0xc0] sm:$0xff]  ;;  %2098 = vperm.xlu0 %2832, %v3014_v3   ;;  %2093 = vperm.xlu1 %2831, %v3012_v25   ;;  %v3016_v18 = vpop.eup %3015 }
 0x286   :  { %3025 = vrcp.f32 %v1966_v20  ;;  %1244 = vst.msk [vmem:[#allocation3 + $0xe0] sm:$0xff] %vm5102_vm6, %v1211_v4  ;;  %v4361_v15 = vpop.permute.xlu0 %2301  ;;  %v1256_v25 = vld [vmem:[#allocation4 + $0x40] sm:$0xff]  ;;  %v1450_v4 = vmul.f32 %v4201_v45, %v1258_v28  ;;  %v1257_v20 = vld [vmem:[#allocation4 + $0x48] sm:$0xff]  ;;  %v1267_v28 = vld [vmem:[#allocation4 + $0x98] sm:$0xff] }
 0x287   :  { %v1180_v41 = vpop.xlane.xlu1 %1179  ;;  %3027 = vrcp.f32 %v1967_v11  ;;  %v1448_v11 = vmul.f32 %v4197_v53, %v1256_v25  ;;  %v1262_v53 = vld [vmem:[#allocation4 + $0x70] sm:$0xff]  ;;  %v1265_v25 = vld [vmem:[#allocation4 + $0x88] sm:$0xff]  ;;  %vm2392_vm10 = vcmp.eq.s32.totalorder %v4361_v15, 1 }
 0x288   :  { %v3018_v14 = vpop.eup %3017  ;;  %v1213_v33 = vadd.f32 %v1180_v41, %v1117_v52  ;;  %v2228_v41 = vld [vmem:[#allocation2 + $0xf0] sm:$0xff] }
 0x289   :  { %2108 = vperm.xlu0 %2832, %v3018_v14   ;;  %2103 = vperm.xlu1 %2831, %v3016_v18   ;;  %v3020_v48 = vpop.eup %3019  ;;  %vm2260_vm15 = vcmp.gt.f32.partialorder %v2228_v41, -5e+29 }
 0x28a   :  { %v1968_v56 = vld [vmem:[#allocation3 + $0xd0] sm:$0xff]  ;;  %1246 = vst.msk [vmem:[#allocation3 + $0xf0] sm:$0xff] %vm5103_vm2, %v1213_v33  ;;  %v4365_v10 = vpop.permute.xlu0 %2307  ;;  %v1451_v33 = vmul.f32 %v4236_v29, %v1259_v35 }
 0x28b   :  { %3029 = vrcp.f32 %v1968_v56  ;;  %v4367_v16 = vpop.permute.xlu1 %1437  ;;  %vm2394_vm13 = vcmp.eq.s32.totalorder %v4365_v10, 1 }
 0x28c   :  { %v3022_v7 = vpop.eup %3021  ;;  %3031 = vrcp.f32 %v1969_v43 }
 0x28d   :  { %v1970_v62 = vld [vmem:[#allocation3 + $0xe0] sm:$0xff]  ;;  %2118 = vperm.xlu0 %2832, %v3022_v7   ;;  %2113 = vperm.xlu1 %2831, %v3020_v48   ;;  %v3024_v23 = vpop.eup %3023  ;;  %v1449_v48 = vmul.f32 %v4230_v58, %v1257_v20 }
 0x28e   :  { %3033 = vrcp.f32 %v1970_v62  ;;  %v2785_v2 = vpop.f32.mrb[4].mxu0  ;;  %v4371_v49 = vpop.permute.xlu0 %2313  ;;  %v2229_v62 = vld [vmem:[#allocation2 + $0xf8] sm:$0xff] }
 0x28f   :  { %v1816_v44 = vadd.f32 %v2785_v2, %v1446_v9  ;;  %v1618_v22 = vpop.f32.mrb[5].mxu0  ;;  %v4374_v5 = vpop.permute.xlu1 %2298  ;;  %3035 = vrcp.f32 %v1971_v31  ;;  %v1263_v31 = vld [vmem:[#allocation4 + $0x78] sm:$0xff]  ;;  %v2292_v2 = vsel %vm2260_vm15, 1, %v5062_v17  ;;  %vm2261_vm9 = vcmp.gt.f32.partialorder %v2229_v62, -5e+29 }
 0x290   :  { %v3026_v21 = vpop.eup %3025  ;;  %v1814_v37 = vadd.f32 %v1618_v22, %v1444_v38  ;;  %v2786_v6 = vpop.f32.mrb[6].mxu0  ;;  %v1260_v38 = vld [vmem:[#allocation4 + $0x60] sm:$0xff]  ;;  %vm2391_vm12 = vcmp.eq.s32.totalorder %v4374_v5, 1  ;;  %vm2396_vm1 = vcmp.eq.s32.totalorder %v4371_v49, 1 }
 0x291   :  { %v1972_v59 = vld [vmem:[#allocation3 + $0xf0] sm:$0xff]  ;;  %1849 = vst.msk [vmem:[#allocation4 + $0x30] sm:$0xff] %vm89_vm3, %v1816_v44  ;;  %v1817_v39 = vadd.f32 %v2786_v6, %v1447_v46  ;;  %v1621_v57 = vpop.f32.mrb[7].mxu0  ;;  %2128 = vperm.xlu0 %2832, %v3026_v21   ;;  %2123 = vperm.xlu1 %2831, %v3024_v23   ;;  %v3028_v51 = vpop.eup %3027  ;;  %v1454_v23 = vmul.f32 %v4212_v34, %v1262_v53  ;;  %v1261_v46 = vld [vmem:[#allocation4 + $0x68] sm:$0xff]  ;;  %v2293_v34 = vsel %vm2261_vm9, 1, %v5062_v17  ;;  %v5105_v17 = vld [vmem:[#allocation37_spill] sm:$0xff] }
 0x292   :  { %3037 = vrcp.f32 %v1972_v59  ;;  %1847 = vst.msk [vmem:[#allocation4 + $0x20] sm:$0xff] %vm89_vm3, %v1814_v37  ;;  %v1815_v55 = vadd.f32 %v1621_v57, %v1445_v47  ;;  %v4379_v61 = vpop.permute.xlu0 %2319  ;;  %v1452_v44 = vmul.f32 %v4208_v13, %v1260_v38  ;;  %v1455_v21 = vmul.f32 %v4250_v32, %v1263_v31  ;;  %v1266_v13 = vld [vmem:[#allocation4 + $0x90] sm:$0xff]  ;;  %v1269_v31 = vld [vmem:[#allocation4 + $0xa8] sm:$0xff] }
 0x293   :  { %1850 = vst.msk [vmem:[#allocation4 + $0x38] sm:$0xff] %vm89_vm3, %v1817_v39  ;;  %v4382_v60 = vpop.permute.xlu1 %2304  ;;  %3039 = vrcp.f32 %v1973_v42  ;;  %v1453_v59 = vmul.f32 %v4244_v36, %v1261_v46  ;;  %v5104_v36 = vld [vmem:[#allocation5_spill] sm:$0xff]  ;;  %v5108_v38 = vld [vmem:[#allocation7_spill] sm:$0xff]  ;;  %vm2398_vm7 = vcmp.eq.s32.totalorder %v4379_v61, 1 }
 0x294   :  { %1848 = vst.msk [vmem:[#allocation4 + $0x28] sm:$0xff] %vm89_vm3, %v1815_v55  ;;  %vm2393_vm14 = vcmp.eq.s32.totalorder %v4382_v60, 1 }
 0x295   :  { %v3030_v54 = vpop.eup %3029  ;;  %2133 = vperm.xlu1 %2831, %v3028_v51  }
 0x296   :  { %2138 = vperm.xlu0 %2832, %v3030_v54   ;;  %v4385_v19 = vpop.permute.xlu0 %2325  ;;  %v3032_v12 = vpop.eup %3031  ;;  %v1264_v54 = vld [vmem:[#allocation4 + $0x80] sm:$0xff] }
 0x297   :  { %v4387_v3 = vpop.permute.xlu1 %2310  ;;  %v1456_v35 = vmul.f32 %v5105_v17, %v1264_v54  ;;  %v1272_v54 = vld [vmem:[#allocation4 + $0xc0] sm:$0xff]  ;;  %vm2400_vm6 = vcmp.eq.s32.totalorder %v4385_v19, 1 }
 0x298   :  { %v3034_v40 = vpop.eup %3033  ;;  %vm2395_vm4 = vcmp.eq.s32.totalorder %v4387_v3, 1 }
 0x299   :  { %2143 = vperm.xlu1 %2831, %v3032_v12   ;;  %v3036_v14 = vpop.eup %3035  ;;  %v1458_v12 = vmul.f32 %v5104_v36, %v1266_v13 }
 0x29a   :  { %2148 = vperm.xlu0 %2832, %v3034_v40   ;;  %v2789_v52 = vpop.f32.mrb[8].mxu0  ;;  %v4391_v18 = vpop.permute.xlu0 %2331 }
 0x29b   :  { %v1820_v56 = vadd.f32 %v2789_v52, %v1450_v4  ;;  %v1634_v0 = vpop.f32.mrb[9].mxu0  ;;  %v4397_v9 = vpop.permute.xlu1 %2316  ;;  %vm2402_vm2 = vcmp.eq.s32.totalorder %v4391_v18, 1 }
 0x29c   :  { %v3038_v43 = vpop.eup %3037  ;;  %v1818_v1 = vadd.f32 %v1634_v0, %v1448_v11  ;;  %v2790_v7 = vpop.f32.mrb[10].mxu0  ;;  %v5106_v11 = vld [vmem:[#allocation12_spill] sm:$0xff]  ;;  %vm2397_vm0 = vcmp.eq.s32.totalorder %v4397_v9, 1 }
 0x29d   :  { %1853 = vst.msk [vmem:[#allocation4 + $0x50] sm:$0xff] %vm89_vm3, %v1820_v56  ;;  %v1821_v45 = vadd.f32 %v2790_v7, %v1451_v33  ;;  %v1637_v63 = vpop.f32.mrb[11].mxu0  ;;  %2153 = vperm.xlu1 %2831, %v3036_v14   ;;  %v3040_v58 = vpop.eup %3039  ;;  %v1459_v52 = vmul.f32 %v5106_v11, %v1267_v28  ;;  %v5107_v33 = vld [vmem:[#allocation10_spill] sm:$0xff]  ;;  %v1270_v7 = vld [vmem:[#allocation4 + $0xb0] sm:$0xff]  ;;  %v5111_v28 = vld [vmem:[#allocation9_spill] sm:$0xff] }
 0x29e   :  { %2158 = vperm.xlu0 %2832, %v3038_v43   ;;  %1851 = vst.msk [vmem:[#allocation4 + $0x40] sm:$0xff] %vm89_vm3, %v1818_v1  ;;  %v1819_v29 = vadd.f32 %v1637_v63, %v1449_v48  ;;  %v4399_v8 = vpop.permute.xlu0 %2337  ;;  %v1457_v56 = vmul.f32 %v5107_v33, %v1265_v25  ;;  %v1268_v63 = vld [vmem:[#allocation4 + $0xa0] sm:$0xff]  ;;  %v5112_v25 = vld [vmem:[#allocation8_spill] sm:$0xff] }
 0x29f   :  { %1854 = vst.msk [vmem:[#allocation4 + $0x58] sm:$0xff] %vm89_vm3, %v1821_v45  ;;  %v4410_v39 = vpop.permute.xlu1 %2322  ;;  %v1464_v17 = vmul.f32 %v5112_v25, %v1272_v54  ;;  %vm2404_vm9 = vcmp.eq.s32.totalorder %v4399_v8, 1 }
 0x2a0   :  { %1852 = vst.msk [vmem:[#allocation4 + $0x48] sm:$0xff] %vm89_vm3, %v1819_v29  ;;  %v1271_v29 = vld [vmem:[#allocation4 + $0xb8] sm:$0xff]  ;;  %vm2399_vm15 = vcmp.eq.s32.totalorder %v4410_v39, 1 }
 0x2a1   :  { %2163 = vperm.xlu1 %2831, %v3040_v58   ;;  %v1462_v58 = vmul.f32 %v5108_v38, %v1270_v7 }
 0x2a2   :  { %2385 = vperm.xlu0 %2832, %v2292_v2   ;;  %v2793_v22 = vpop.f32.mrb[12].mxu0  ;;  %v4407_v37 = vpop.permute.xlu0 %2343  ;;  %v5109_v2 = vld [vmem:[#allocation6_spill] sm:$0xff] }
 0x2a3   :  { %v1824_v47 = vadd.f32 %v2793_v22, %v1454_v23  ;;  %v1650_v6 = vpop.f32.mrb[13].mxu0  ;;  %v4421_v4 = vpop.permute.xlu1 %2328  ;;  %v1460_v23 = vmul.f32 %v5109_v2, %v1268_v63  ;;  %v5113_v63 = vld [vmem:[#allocation13_spill] sm:$0xff] }
 0x2a4   :  { %v1822_v57 = vadd.f32 %v1650_v6, %v1452_v44  ;;  %v2794_v55 = vpop.f32.mrb[14].mxu0  ;;  %v1463_v44 = vmul.f32 %v4277_v27, %v1271_v29  ;;  %v1275_v27 = vld [vmem:[#allocation4 + $0xd8] sm:$0xff]  ;;  %v1277_v29 = vld [vmem:[#allocation4 + $0xe8] sm:$0xff] }
 0x2a5   :  { %1857 = vst.msk [vmem:[#allocation4 + $0x70] sm:$0xff] %vm89_vm3, %v1824_v47  ;;  %v1825_v51 = vadd.f32 %v2794_v55, %v1455_v21  ;;  %v1653_v42 = vpop.f32.mrb[15].mxu0  ;;  %2388 = vperm.xlu1 %2831, %v2293_v34   ;;  %v5110_v47 = vld [vmem:[#allocation15_spill] sm:$0xff] }
 0x2a6   :  { %1855 = vst.msk [vmem:[#allocation4 + $0x60] sm:$0xff] %vm89_vm3, %v1822_v57  ;;  %v1823_v32 = vadd.f32 %v1653_v42, %v1453_v59  ;;  %v4418_v40 = vpop.permute.xlu0 %2349  ;;  %v1461_v6 = vmul.f32 %v5110_v47, %v1269_v31  ;;  %v1274_v42 = vld [vmem:[#allocation4 + $0xd0] sm:$0xff] }
 0x2a7   :  { %1858 = vst.msk [vmem:[#allocation4 + $0x78] sm:$0xff] %vm89_vm3, %v1825_v51  ;;  %v4430_v62 = vpop.permute.xlu1 %2334  ;;  %v1466_v36 = vmul.f32 %v5111_v28, %v1274_v42 }
 0x2a8   :  { %1856 = vst.msk [vmem:[#allocation4 + $0x68] sm:$0xff] %vm89_vm3, %v1823_v32 }
 0x2aa   :  { %v2813_v20 = vpop.f32.mrb[0].mxu1  ;;  %v4427_v53 = vpop.permute.xlu0 %2355 }
 0x2ab   :  { %v1828_v41 = vadd.f32 %v2813_v20, %v1458_v12  ;;  %v1747_v14 = vpop.f32.mrb[1].mxu1  ;;  %v4440_v13 = vpop.permute.xlu1 %2340  ;;  %v1273_v12 = vld [vmem:[#allocation4 + $0xc8] sm:$0xff]  ;;  %v1467_v20 = vmul.f32 %v4291_v50, %v1275_v27  ;;  %v1279_v50 = vld [vmem:[#allocation4 + $0xf8] sm:$0xff] }
 0x2ac   :  { %v1826_v0 = vadd.f32 %v1747_v14, %v1456_v35  ;;  %v2814_v43 = vpop.f32.mrb[2].mxu1  ;;  %v1465_v14 = vmul.f32 %v4286_v24, %v1273_v12 }
 0x2ad   :  { %1861 = vst.msk [vmem:[#allocation4 + $0x90] sm:$0xff] %vm89_vm3, %v1828_v41  ;;  %v1829_v48 = vadd.f32 %v2814_v43, %v1459_v52  ;;  %v1750_v1 = vpop.f32.mrb[3].mxu1 }
 0x2ae   :  { %1859 = vst.msk [vmem:[#allocation4 + $0x80] sm:$0xff] %vm89_vm3, %v1826_v0  ;;  %v1827_v45 = vadd.f32 %v1750_v1, %v1457_v56  ;;  %v4437_v55 = vpop.permute.xlu0 %2361  ;;  %v1278_v1 = vld [vmem:[#allocation4 + $0xf0] sm:$0xff] }
 0x2af   :  { %1862 = vst.msk [vmem:[#allocation4 + $0x98] sm:$0xff] %vm89_vm3, %v1829_v48  ;;  %v4451_v33 = vpop.permute.xlu1 %2346  ;;  %v1470_v24 = vmul.f32 %v5113_v63, %v1278_v1 }
 0x2b0   :  { %1860 = vst.msk [vmem:[#allocation4 + $0x88] sm:$0xff] %vm89_vm3, %v1827_v45  ;;  %v1276_v45 = vld [vmem:[#allocation4 + $0xe0] sm:$0xff] }
 0x2b2   :  { %v2817_v46 = vpop.f32.mrb[4].mxu1  ;;  %v4448_v11 = vpop.permute.xlu0 %2367 }
 0x2b3   :  { %v1832_v22 = vadd.f32 %v2817_v46, %v1462_v58  ;;  %v1763_v21 = vpop.f32.mrb[5].mxu1  ;;  %v5114_v58 = vld [vmem:[#allocation11_spill] sm:$0xff]  ;;  %v4461_v2 = vpop.permute.xlu1 %2352  ;;  %v1471_v46 = vmul.f32 %v4367_v16, %v1279_v50  ;;  %v1910_v16 = vld [vmem:[#allocation4] sm:$0xff] }
 0x2b4   :  { %v1830_v59 = vadd.f32 %v1763_v21, %v1460_v23  ;;  %v2818_v57 = vpop.f32.mrb[6].mxu1  ;;  %v1468_v31 = vmul.f32 %v5114_v58, %v1276_v45  ;;  %v1469_v21 = vmul.f32 %v4297_v30, %v1277_v29  ;;  %v1911_v45 = vld [vmem:[#allocation4 + $0x8] sm:$0xff]  ;;  %v1913_v29 = vld [vmem:[#allocation4 + $0x18] sm:$0xff] }
 0x2b5   :  { %1865 = vst.msk [vmem:[#allocation4 + $0xb0] sm:$0xff] %vm89_vm3, %v1832_v22  ;;  %v1833_v34 = vadd.f32 %v2818_v57, %v1463_v44  ;;  %v1766_v51 = vpop.f32.mrb[7].mxu1 }
 0x2b6   :  { %1863 = vst.msk [vmem:[#allocation4 + $0xa0] sm:$0xff] %vm89_vm3, %v1830_v59  ;;  %v1831_v32 = vadd.f32 %v1766_v51, %v1461_v6  ;;  %v4458_v38 = vpop.permute.xlu0 %2373 }
 0x2b7   :  { %1866 = vst.msk [vmem:[#allocation4 + $0xb8] sm:$0xff] %vm89_vm3, %v1833_v34  ;;  %v4470_v42 = vpop.permute.xlu1 %2358 }
 0x2b8   :  { %1864 = vst.msk [vmem:[#allocation4 + $0xa8] sm:$0xff] %vm89_vm3, %v1831_v32 }
 0x2ba   :  { %v2821_v35 = vpop.f32.mrb[8].mxu1  ;;  %v4467_v51 = vpop.permute.xlu0 %2379 }
 0x2bb   :  { %v1836_v52 = vadd.f32 %v2821_v35, %v1466_v36  ;;  %v1779_v41 = vpop.f32.mrb[9].mxu1  ;;  %v4474_v54 = vpop.permute.xlu1 %2364  ;;  %v1912_v36 = vld [vmem:[#allocation4 + $0x10] sm:$0xff] }
 0x2bc   :  { %v1834_v56 = vadd.f32 %v1779_v41, %v1464_v17  ;;  %v2822_v0 = vpop.f32.mrb[10].mxu1 }
 0x2bd   :  { %1869 = vst.msk [vmem:[#allocation4 + $0xd0] sm:$0xff] %vm89_vm3, %v1836_v52  ;;  %v1837_v43 = vadd.f32 %v2822_v0, %v1467_v20  ;;  %v1782_v48 = vpop.f32.mrb[11].mxu1 }
 0x2be   :  { %1867 = vst.msk [vmem:[#allocation4 + $0xc0] sm:$0xff] %vm89_vm3, %v1834_v56  ;;  %v1835_v7 = vadd.f32 %v1782_v48, %v1465_v14 }
 0x2bf   :  { %1870 = vst.msk [vmem:[#allocation4 + $0xd8] sm:$0xff] %vm89_vm3, %v1837_v43  ;;  %v4477_v52 = vpop.permute.xlu1 %2370 }
 0x2c0   :  { %1868 = vst.msk [vmem:[#allocation4 + $0xc8] sm:$0xff] %vm89_vm3, %v1835_v7 }
 0x2c2   :  { %v2825_v23 = vpop.f32.mrb[12].mxu1 }
 0x2c3   :  { %v1840_v44 = vadd.f32 %v2825_v23, %v1470_v24  ;;  %v1795_v22 = vpop.f32.mrb[13].mxu1  ;;  %v4479_v14 = vpop.permute.xlu1 %2376 }
 0x2c4   :  { %v1838_v47 = vadd.f32 %v1795_v22, %v1468_v31  ;;  %v2826_v6 = vpop.f32.mrb[14].mxu1  ;;  %v1914_v31 = vld [vmem:[#allocation4 + $0x20] sm:$0xff] }
 0x2c5   :  { %1873 = vst.msk [vmem:[#allocation4 + $0xf0] sm:$0xff] %vm89_vm3, %v1840_v44  ;;  %v1841_v59 = vadd.f32 %v2826_v6, %v1471_v46  ;;  %v1798_v57 = vpop.f32.mrb[15].mxu1  ;;  %v1915_v6 = vld [vmem:[#allocation4 + $0x28] sm:$0xff] }
 0x2c6   :  { %1871 = vst.msk [vmem:[#allocation4 + $0xe0] sm:$0xff] %vm89_vm3, %v1838_v47  ;;  %v1839_v34 = vadd.f32 %v1798_v57, %v1469_v21  ;;  %v1916_v57 = vld [vmem:[#allocation4 + $0x30] sm:$0xff] }
 0x2c7   :  { %1874 = vst.msk [vmem:[#allocation4 + $0xf8] sm:$0xff] %vm89_vm3, %v1841_v59  ;;  %v4481_v0 = vpop.permute.xlu1 %2382 }
 0x2c8   :  { %1872 = vst.msk [vmem:[#allocation4 + $0xe8] sm:$0xff] %vm89_vm3, %v1839_v34 }
 0x2cb   :  { %v2009_v32 = vpop.permute.xlu0 %2008 }
 0x2cc   :  { %v2166_v30 = vmul.f32 %v2009_v32, %v1910_v16 }
 0x2ce   :  { %v2422_v27 = vsel %vm2390_vm11, %v2166_v30, 0.0  ;;  %vm2401_vm11 = vcmp.eq.s32.totalorder %v4421_v4, 1 }
 0x2cf   :  { %v2486_v28 = vmin.f32 %v2422_v27, 0.0  ;;  %v2019_v12 = vpop.permute.xlu0 %2018  ;;  %vm2454_vm5 = vcmp.gt.f32.partialorder %v2422_v27, 0.0 }
 0x2d0   :  { %v2168_v25 = vmul.f32 %v2019_v12, %v1912_v36  ;;  %v1917_v12 = vld [vmem:[#allocation4 + $0x38] sm:$0xff] }
 0x2d1   :  { %v2518_v17 = vmul.f32 1.442695, %v2486_v28 }
 0x2d2   :  { %v2424_v35 = vsel %vm2392_vm10, %v2168_v25, 0.0 }
 0x2d3   :  { %3041 = vpow2.f32 %v2518_v17  ;;  %v2488_v20 = vmin.f32 %v2424_v35, 0.0  ;;  %vm2456_vm8 = vcmp.gt.f32.partialorder %v2424_v35, 0.0  ;;  %v1918_v17 = vld [vmem:[#allocation4 + $0x40] sm:$0xff] }
 0x2d5   :  { %v2522_v41 = vmul.f32 1.442695, %v2488_v20 }
 0x2d7   :  { %3043 = vpow2.f32 %v2522_v41 }
 0x2dd   :  { %v3042_v26 = vpop.eup %3041 }
 0x2de   :  { %v2699_v56 = vadd.f32 -1.0, %v3042_v26 }
 0x2e0   :  { %v2614_v43 = vsel %vm2454_vm5, %v2422_v27, %v2699_v56  ;;  %vm2403_vm5 = vcmp.eq.s32.totalorder %v4430_v62, 1 }
 0x2e1   :  { %v3044_v48 = vpop.eup %3043  ;;  %2646 = vst.msk [vmem:[%s4821_s4] sm:$0xff] %vm89_vm3, %v2614_v43 }
 0x2e2   :  { %v2701_v15 = vadd.f32 -1.0, %v3044_v48 }
 0x2e4   :  { %v2616_v1 = vsel %vm2456_vm8, %v2424_v35, %v2701_v15  ;;  %v2014_v7 = vpop.permute.xlu1 %2013  ;;  %v1919_v15 = vld [vmem:[#allocation4 + $0x48] sm:$0xff]  ;;  %vm2405_vm8 = vcmp.eq.s32.totalorder %v4440_v13, 1 }
 0x2e5   :  { %2648 = vst.msk [vmem:[%s4821_s4 + $0x10] sm:$0xff] %vm89_vm3, %v2616_v1  ;;  %v2167_v50 = vmul.f32 %v2014_v7, %v1911_v45  ;;  %v1920_v7 = vld [vmem:[#allocation4 + $0x50] sm:$0xff] }
 0x2e7   :  { %v4492_v63 = vsel %vm2391_vm12, %v2167_v50, 0.0 }
 0x2e8   :  { %v2487_v24 = vmin.f32 %v4492_v63, 0.0  ;;  %v2024_v58 = vpop.permute.xlu1 %2023  ;;  %v2029_v23 = vpop.permute.xlu0 %2028  ;;  %vm2455_vm10 = vcmp.gt.f32.partialorder %v4492_v63, 0.0 }
 0x2e9   :  { %v2169_v46 = vmul.f32 %v2024_v58, %v1913_v29  ;;  %v2170_v44 = vmul.f32 %v2029_v23, %v1914_v31 }
 0x2ea   :  { %v2520_v22 = vmul.f32 1.442695, %v2487_v24 }
 0x2eb   :  { %v4497_v21 = vsel %vm2393_vm14, %v2169_v46, 0.0  ;;  %v4499_v47 = vsel %vm2394_vm13, %v2170_v44, 0.0  ;;  %v1921_v44 = vld [vmem:[#allocation4 + $0x58] sm:$0xff]  ;;  %vm2406_vm13 = vcmp.eq.s32.totalorder %v4407_v37, 1 }
 0x2ec   :  { %3045 = vpow2.f32 %v2520_v22  ;;  %v2489_v5 = vmin.f32 %v4497_v21, 0.0  ;;  %v2034_v59 = vpop.permute.xlu1 %2033  ;;  %v2039_v34 = vpop.permute.xlu0 %2038  ;;  %v2490_v16 = vmin.f32 %v4499_v47, 0.0  ;;  %vm2457_vm12 = vcmp.gt.f32.partialorder %v4497_v21, 0.0 }
 0x2ed   :  { %v2171_v32 = vmul.f32 %v2034_v59, %v1915_v6  ;;  %v2172_v30 = vmul.f32 %v2039_v34, %v1916_v57  ;;  %v1922_v57 = vld [vmem:[#allocation4 + $0x60] sm:$0xff]  ;;  %vm2458_vm14 = vcmp.gt.f32.partialorder %v4499_v47, 0.0 }
 0x2ee   :  { %v2524_v10 = vmul.f32 1.442695, %v2489_v5  ;;  %v2526_v60 = vmul.f32 1.442695, %v2490_v16 }
 0x2ef   :  { %v4505_v27 = vsel %vm2395_vm4, %v2171_v32, 0.0  ;;  %v4507_v28 = vsel %vm2396_vm1, %v2172_v30, 0.0  ;;  %vm2407_vm1 = vcmp.eq.s32.totalorder %v4451_v33, 1 }
 0x2f0   :  { %3047 = vpow2.f32 %v2524_v10  ;;  %v2491_v36 = vmin.f32 %v4505_v27, 0.0  ;;  %v2044_v25 = vpop.permute.xlu1 %2043  ;;  %v2049_v35 = vpop.permute.xlu0 %2048  ;;  %v2492_v20 = vmin.f32 %v4507_v28, 0.0  ;;  %vm2459_vm4 = vcmp.gt.f32.partialorder %v4505_v27, 0.0 }
 0x2f1   :  { %3049 = vpow2.f32 %v2526_v60  ;;  %v2173_v41 = vmul.f32 %v2044_v25, %v1917_v12  ;;  %v2174_v49 = vmul.f32 %v2049_v35, %v1918_v17  ;;  %v1923_v25 = vld [vmem:[#allocation4 + $0x68] sm:$0xff] }
 0x2f2   :  { %v2528_v3 = vmul.f32 1.442695, %v2491_v36  ;;  %v2530_v26 = vmul.f32 1.442695, %v2492_v20 }
 0x2f3   :  { %v4513_v56 = vsel %vm2397_vm0, %v2173_v41, 0.0  ;;  %v4515_v43 = vsel %vm2398_vm7, %v2174_v49, 0.0  ;;  %vm2408_vm7 = vcmp.eq.s32.totalorder %v4418_v40, 1  ;;  %vm2460_vm0 = vcmp.gt.f32.partialorder %v4507_v28, 0.0 }
 0x2f4   :  { %3051 = vpow2.f32 %v2528_v3  ;;  %v2493_v48 = vmin.f32 %v4513_v56, 0.0  ;;  %v2054_v1 = vpop.permute.xlu1 %2053  ;;  %v2059_v45 = vpop.permute.xlu0 %2058  ;;  %v2494_v50 = vmin.f32 %v4515_v43, 0.0 }
 0x2f5   :  { %3053 = vpow2.f32 %v2530_v26  ;;  %v2175_v24 = vmul.f32 %v2054_v1, %v1919_v15  ;;  %v2176_v61 = vmul.f32 %v2059_v45, %v1920_v7 }
 0x2f6   :  { %v3046_v29 = vpop.eup %3045  ;;  %v2532_v9 = vmul.f32 1.442695, %v2493_v48  ;;  %v2534_v31 = vmul.f32 1.442695, %v2494_v50  ;;  %v1925_v50 = vld [vmem:[#allocation4 + $0x78] sm:$0xff] }
 0x2f7   :  { %v2700_v58 = vadd.f32 -1.0, %v3046_v29  ;;  %v4522_v23 = vsel %vm2399_vm15, %v2175_v24, 0.0  ;;  %v4524_v46 = vsel %vm2400_vm6, %v2176_v61, 0.0  ;;  %vm2409_vm6 = vcmp.eq.s32.totalorder %v4461_v2, 1 }
 0x2f8   :  { %3055 = vpow2.f32 %v2532_v9  ;;  %v2495_v19 = vmin.f32 %v4522_v23, 0.0  ;;  %v2064_v22 = vpop.permute.xlu1 %2063  ;;  %v2069_v5 = vpop.permute.xlu0 %2068  ;;  %v2496_v6 = vmin.f32 %v4524_v46, 0.0  ;;  %vm2410_vm15 = vcmp.eq.s32.totalorder %v4427_v53, 1 }
 0x2f9   :  { %v2615_v39 = vsel %vm2455_vm10, %v4492_v63, %v2700_v58  ;;  %3057 = vpow2.f32 %v2534_v31  ;;  %v2177_v59 = vmul.f32 %v2064_v22, %v1921_v44  ;;  %v2178_v32 = vmul.f32 %v2069_v5, %v1922_v57  ;;  %v1926_v44 = vld [vmem:[#allocation4 + $0x80] sm:$0xff] }
 0x2fa   :  { %v3048_v34 = vpop.eup %3047  ;;  %2647 = vst.msk [vmem:[%s4821_s4 + $0x8] sm:$0xff] %vm89_vm3, %v2615_v39  ;;  %v2536_v16 = vmul.f32 1.442695, %v2495_v19  ;;  %v2538_v10 = vmul.f32 1.442695, %v2496_v6  ;;  %vm2463_vm10 = vcmp.gt.f32.partialorder %v4522_v23, 0.0 }
 0x2fb   :  { %v3050_v30 = vpop.eup %3049  ;;  %v2702_v63 = vadd.f32 -1.0, %v3048_v34  ;;  %v4541_v60 = vsel %vm2401_vm11, %v2177_v59, 0.0  ;;  %v4549_v41 = vsel %vm2402_vm2, %v2178_v32, 0.0  ;;  %vm2461_vm2 = vcmp.gt.f32.partialorder %v4513_v56, 0.0  ;;  %v1927_v34 = vld [vmem:[#allocation4 + $0x88] sm:$0xff] }
 0x2fc   :  { %v2703_v36 = vadd.f32 -1.0, %v3050_v30  ;;  %3059 = vpow2.f32 %v2536_v16  ;;  %v2497_v12 = vmin.f32 %v4541_v60, 0.0  ;;  %v2074_v17 = vpop.permute.xlu1 %2073  ;;  %v2079_v35 = vpop.permute.xlu0 %2078  ;;  %v2498_v48 = vmin.f32 %v4549_v41, 0.0 }
 0x2fd   :  { %v2617_v20 = vsel %vm2457_vm12, %v4497_v21, %v2702_v63  ;;  %3061 = vpow2.f32 %v2538_v10  ;;  %v2179_v4 = vmul.f32 %v2074_v17, %v1923_v25  ;;  %v1924_v21 = vld [vmem:[#allocation4 + $0x70] sm:$0xff]  ;;  %vm2411_vm11 = vcmp.eq.s32.totalorder %v4470_v42, 1 }
 0x2fe   :  { %v3052_v49 = vpop.eup %3051  ;;  %2649 = vst.msk [vmem:[%s4821_s4 + $0x18] sm:$0xff] %vm89_vm3, %v2617_v20  ;;  %v2618_v3 = vsel %vm2458_vm14, %v4499_v47, %v2703_v36  ;;  %v2540_v26 = vmul.f32 1.442695, %v2497_v12  ;;  %v2180_v7 = vmul.f32 %v2079_v35, %v1924_v21  ;;  %v2542_v45 = vmul.f32 1.442695, %v2498_v48  ;;  %v1928_v12 = vld [vmem:[#allocation4 + $0x90] sm:$0xff] }
 0x2ff   :  { %v3054_v15 = vpop.eup %3053  ;;  %2650 = vst.msk [vmem:[%s4821_s4 + $0x20] sm:$0xff] %vm89_vm3, %v2618_v3  ;;  %v2704_v18 = vadd.f32 -1.0, %v3052_v49  ;;  %v4565_v1 = vsel %vm2403_vm5, %v2179_v4, 0.0  ;;  %vm2412_vm5 = vcmp.eq.s32.totalorder %v4437_v55, 1  ;;  %v1929_v49 = vld [vmem:[#allocation4 + $0x98] sm:$0xff]  ;;  %vm2413_vm12 = vcmp.eq.s32.totalorder %v4474_v54, 1 }
 0x300   :  { %v2705_v47 = vadd.f32 -1.0, %v3054_v15  ;;  %3063 = vpow2.f32 %v2540_v26  ;;  %v2084_v24 = vpop.permute.xlu1 %2083  ;;  %v2089_v61 = vpop.permute.xlu0 %2088  ;;  %v2499_v9 = vmin.f32 %v4565_v1, 0.0  ;;  %v4573_v62 = vsel %vm2404_vm9, %v2180_v7, 0.0 }
 0x301   :  { %v2619_v29 = vsel %vm2459_vm4, %v4505_v27, %v2704_v18  ;;  %v2181_v58 = vmul.f32 %v2084_v24, %v1925_v50  ;;  %3065 = vpow2.f32 %v2542_v45  ;;  %v2500_v27 = vmin.f32 %v4573_v62, 0.0 }
 0x302   :  { %v3056_v31 = vpop.eup %3055  ;;  %2651 = vst.msk [vmem:[%s4821_s4 + $0x28] sm:$0xff] %vm89_vm3, %v2619_v29  ;;  %v2620_v19 = vsel %vm2460_vm0, %v4507_v28, %v2705_v47  ;;  %v2544_v5 = vmul.f32 1.442695, %v2499_v9  ;;  %v2182_v6 = vmul.f32 %v2089_v61, %v1926_v44  ;;  %vm2462_vm9 = vcmp.gt.f32.partialorder %v4515_v43, 0.0  ;;  %v1931_v9 = vld [vmem:[#allocation4 + $0xa8] sm:$0xff] }
 0x303   :  { %v3058_v8 = vpop.eup %3057  ;;  %2652 = vst.msk [vmem:[%s4821_s4 + $0x30] sm:$0xff] %vm89_vm3, %v2620_v19  ;;  %v2706_v22 = vadd.f32 -1.0, %v3056_v31  ;;  %v4589_v39 = vsel %vm2405_vm8, %v2181_v58, 0.0  ;;  %v2546_v59 = vmul.f32 1.442695, %v2500_v27  ;;  %vm2464_vm8 = vcmp.gt.f32.partialorder %v4524_v46, 0.0 }
 0x304   :  { %v2707_v28 = vadd.f32 -1.0, %v3058_v8  ;;  %v2501_v57 = vmin.f32 %v4589_v39, 0.0  ;;  %v2094_v16 = vpop.permute.xlu1 %2093  ;;  %v2099_v32 = vpop.permute.xlu0 %2098  ;;  %3067 = vpow2.f32 %v2544_v5  ;;  %v4599_v13 = vsel %vm2406_vm13, %v2182_v6, 0.0  ;;  %v1932_v5 = vld [vmem:[#allocation4 + $0xb0] sm:$0xff] }
 0x305   :  { %v2621_v30 = vsel %vm2461_vm2, %v4513_v56, %v2706_v22  ;;  %v2183_v63 = vmul.f32 %v2094_v16, %v1927_v34  ;;  %3069 = vpow2.f32 %v2546_v59  ;;  %v2502_v17 = vmin.f32 %v4599_v13, 0.0  ;;  %v1933_v16 = vld [vmem:[#allocation4 + $0xb8] sm:$0xff] }
 0x306   :  { %v3060_v10 = vpop.eup %3059  ;;  %2653 = vst.msk [vmem:[%s4821_s4 + $0x38] sm:$0xff] %vm89_vm3, %v2621_v30  ;;  %v2622_v36 = vsel %vm2462_vm9, %v4515_v43, %v2707_v28  ;;  %v2548_v56 = vmul.f32 1.442695, %v2501_v57  ;;  %v2184_v20 = vmul.f32 %v2099_v32, %v1928_v12  ;;  %vm2465_vm13 = vcmp.gt.f32.partialorder %v4541_v60, 0.0 }
 0x307   :  { %v3062_v25 = vpop.eup %3061  ;;  %2654 = vst.msk [vmem:[%s4821_s4 + $0x40] sm:$0xff] %vm89_vm3, %v2622_v36  ;;  %v2708_v37 = vadd.f32 -1.0, %v3060_v10  ;;  %v4615_v35 = vsel %vm2407_vm1, %v2183_v63, 0.0  ;;  %v2550_v21 = vmul.f32 1.442695, %v2502_v17  ;;  %vm2414_vm14 = vcmp.eq.s32.totalorder %v4448_v11, 1 }
 0x308   :  { %v2709_v43 = vadd.f32 -1.0, %v3062_v25  ;;  %3071 = vpow2.f32 %v2548_v56  ;;  %v2503_v4 = vmin.f32 %v4615_v35, 0.0  ;;  %v2104_v3 = vpop.permute.xlu1 %2103  ;;  %v2109_v26 = vpop.permute.xlu0 %2108  ;;  %v4625_v33 = vsel %vm2408_vm7, %v2184_v20, 0.0 }
 0x309   :  { %v2623_v48 = vsel %vm2463_vm10, %v4522_v23, %v2708_v37  ;;  %v2185_v15 = vmul.f32 %v2104_v3, %v1929_v49  ;;  %v2504_v45 = vmin.f32 %v4625_v33, 0.0  ;;  %v1930_v23 = vld [vmem:[#allocation4 + $0xa0] sm:$0xff]  ;;  %3073 = vpow2.f32 %v2550_v21  ;;  %v1935_v49 = vld [vmem:[#allocation4 + $0xc8] sm:$0xff]  ;;  %v1936_v3 = vld [vmem:[#allocation4 + $0xd0] sm:$0xff] }
 0x30a   :  { %v3064_v18 = vpop.eup %3063  ;;  %2655 = vst.msk [vmem:[%s4821_s4 + $0x48] sm:$0xff] %vm89_vm3, %v2623_v48  ;;  %v2624_v7 = vsel %vm2464_vm8, %v4524_v46, %v2709_v43  ;;  %v2552_v47 = vmul.f32 1.442695, %v2503_v4  ;;  %v2186_v24 = vmul.f32 %v2109_v26, %v1930_v23  ;;  %vm2466_vm1 = vcmp.gt.f32.partialorder %v4549_v41, 0.0 }
 0x30b   :  { %2656 = vst.msk [vmem:[%s4821_s4 + $0x50] sm:$0xff] %vm89_vm3, %v2624_v7  ;;  %v2710_v40 = vadd.f32 -1.0, %v3064_v18  ;;  %v4640_v50 = vsel %vm2409_vm6, %v2185_v15, 0.0  ;;  %v3066_v61 = vpop.eup %3065  ;;  %v2554_v46 = vmul.f32 1.442695, %v2504_v45  ;;  %vm2415_vm4 = vcmp.eq.s32.totalorder %v4477_v52, 1 }
 0x30c   :  { %3075 = vpow2.f32 %v2552_v47  ;;  %v2505_v29 = vmin.f32 %v4640_v50, 0.0  ;;  %v2114_v58 = vpop.permute.xlu1 %2113  ;;  %v2119_v31 = vpop.permute.xlu0 %2118  ;;  %v2711_v27 = vadd.f32 -1.0, %v3066_v61  ;;  %v4648_v2 = vsel %vm2410_vm15, %v2186_v24, 0.0 }
 0x30d   :  { %v2625_v19 = vsel %vm2465_vm13, %v4541_v60, %v2710_v40  ;;  %v2187_v44 = vmul.f32 %v2114_v58, %v1931_v9  ;;  %3077 = vpow2.f32 %v2554_v46  ;;  %v2506_v22 = vmin.f32 %v4648_v2, 0.0 }
 0x30e   :  { %2657 = vst.msk [vmem:[%s4821_s4 + $0x58] sm:$0xff] %vm89_vm3, %v2625_v19  ;;  %v2556_v8 = vmul.f32 1.442695, %v2505_v29  ;;  %v3068_v6 = vpop.eup %3067  ;;  %v2626_v53 = vsel %vm2466_vm1, %v4549_v41, %v2711_v27  ;;  %v2188_v28 = vmul.f32 %v2119_v31, %v1932_v5  ;;  %vm2416_vm7 = vcmp.eq.s32.totalorder %v4458_v38, 1 }
 0x30f   :  { %v4660_v60 = vsel %vm2411_vm11, %v2187_v44, 0.0  ;;  %v3070_v59 = vpop.eup %3069  ;;  %2658 = vst.msk [vmem:[%s4821_s4 + $0x60] sm:$0xff] %vm89_vm3, %v2626_v53  ;;  %vm2467_vm0 = vcmp.gt.f32.partialorder %v4565_v1, 0.0  ;;  %v2712_v57 = vadd.f32 -1.0, %v3068_v6  ;;  %v2558_v34 = vmul.f32 1.442695, %v2506_v22 }
 0x310   :  { %3079 = vpow2.f32 %v2556_v8  ;;  %v2124_v41 = vpop.permute.xlu1 %2123  ;;  %v2129_v32 = vpop.permute.xlu0 %2128  ;;  %v2713_v42 = vadd.f32 -1.0, %v3070_v59  ;;  %v2507_v30 = vmin.f32 %v4660_v60, 0.0  ;;  %v4671_v63 = vsel %vm2412_vm5, %v2188_v28, 0.0 }
 0x311   :  { %v2189_v10 = vmul.f32 %v2124_v41, %v1933_v16  ;;  %v2627_v56 = vsel %vm2467_vm0, %v4565_v1, %v2712_v57  ;;  %vm2468_vm6 = vcmp.gt.f32.partialorder %v4573_v62, 0.0  ;;  %3081 = vpow2.f32 %v2558_v34  ;;  %v1934_v1 = vld [vmem:[#allocation4 + $0xc0] sm:$0xff]  ;;  %v1939_v41 = vld [vmem:[#allocation4 + $0xe8] sm:$0xff] }
 0x312   :  { %v3072_v36 = vpop.eup %3071  ;;  %v2508_v12 = vmin.f32 %v4671_v63, 0.0  ;;  %vm2417_vm2 = vcmp.eq.s32.totalorder %v4479_v14, 1  ;;  %2659 = vst.msk [vmem:[%s4821_s4 + $0x68] sm:$0xff] %vm89_vm3, %v2627_v56  ;;  %v2628_v55 = vsel %vm2468_vm6, %v4573_v62, %v2713_v42  ;;  %v2560_v37 = vmul.f32 1.442695, %v2507_v30 }
 0x313   :  { %v2714_v25 = vadd.f32 -1.0, %v3072_v36  ;;  %v4684_v17 = vsel %vm2413_vm12, %v2189_v10, 0.0  ;;  %2660 = vst.msk [vmem:[%s4821_s4 + $0x70] sm:$0xff] %vm89_vm3, %v2628_v55  ;;  %vm2469_vm15 = vcmp.gt.f32.partialorder %v4589_v39, 0.0  ;;  %v2190_v4 = vmul.f32 %v2129_v32, %v1934_v1  ;;  %v3074_v48 = vpop.eup %3073 }
 0x314   :  { %v2562_v20 = vmul.f32 1.442695, %v2508_v12  ;;  %v2509_v43 = vmin.f32 %v4684_v17, 0.0  ;;  %v2134_v62 = vpop.permute.xlu1 %2133  ;;  %3083 = vpow2.f32 %v2560_v37  ;;  %v2715_v7 = vadd.f32 -1.0, %v3074_v48  ;;  %v1940_v12 = vld [vmem:[#allocation4 + $0xf0] sm:$0xff] }
 0x315   :  { %v2139_v26 = vpop.permute.xlu0 %2138  ;;  %v2629_v54 = vsel %vm2469_vm15, %v4589_v39, %v2714_v25  ;;  %v2191_v21 = vmul.f32 %v2134_v62, %v1935_v49  ;;  %v4699_v45 = vsel %vm2414_vm14, %v2190_v4, 0.0  ;;  %vm2470_vm9 = vcmp.gt.f32.partialorder %v4599_v13, 0.0  ;;  %v1941_v62 = vld [vmem:[#allocation4 + $0xf8] sm:$0xff] }
 0x316   :  { %v2192_v15 = vmul.f32 %v2139_v26, %v1936_v3  ;;  %v3076_v18 = vpop.eup %3075  ;;  %2661 = vst.msk [vmem:[%s4821_s4 + $0x78] sm:$0xff] %vm89_vm3, %v2629_v54  ;;  %3085 = vpow2.f32 %v2562_v20  ;;  %v2564_v47 = vmul.f32 1.442695, %v2509_v43  ;;  %v2510_v39 = vmin.f32 %v4699_v45, 0.0 }
 0x317   :  { %v2716_v23 = vadd.f32 -1.0, %v3076_v18  ;;  %v4705_v40 = vsel %vm2415_vm4, %v2191_v21, 0.0  ;;  %v3078_v24 = vpop.eup %3077  ;;  %v2630_v61 = vsel %vm2470_vm9, %v4599_v13, %v2715_v7  ;;  %vm2471_vm11 = vcmp.gt.f32.partialorder %v4615_v35, 0.0  ;;  %v1937_v13 = vld [vmem:[#allocation4 + $0xd8] sm:$0xff] }
 0x318   :  { %3087 = vpow2.f32 %v2564_v47  ;;  %v2511_v46 = vmin.f32 %v4705_v40, 0.0  ;;  %v2144_v11 = vpop.permute.xlu1 %2143  ;;  %2662 = vst.msk [vmem:[%s4821_s4 + $0x80] sm:$0xff] %vm89_vm3, %v2630_v61  ;;  %v2717_v52 = vadd.f32 -1.0, %v3078_v24  ;;  %v2566_v58 = vmul.f32 1.442695, %v2510_v39 }
 0x319   :  { %v2149_v29 = vpop.permute.xlu0 %2148  ;;  %v2631_v9 = vsel %vm2471_vm11, %v4615_v35, %v2716_v23  ;;  %v4717_v31 = vsel %vm2416_vm7, %v2192_v15, 0.0  ;;  %vm2472_vm10 = vcmp.gt.f32.partialorder %v4625_v33, 0.0  ;;  %v2193_v8 = vmul.f32 %v2144_v11, %v1937_v13  ;;  %v1938_v35 = vld [vmem:[#allocation4 + $0xe0] sm:$0xff] }
 0x31a   :  { %v3080_v19 = vpop.eup %3079  ;;  %2663 = vst.msk [vmem:[%s4821_s4 + $0x88] sm:$0xff] %vm89_vm3, %v2631_v9  ;;  %v2568_v27 = vmul.f32 1.442695, %v2511_v46  ;;  %v2512_v44 = vmin.f32 %v4717_v31, 0.0  ;;  %v2632_v22 = vsel %vm2472_vm10, %v4625_v33, %v2717_v52  ;;  %3089 = vpow2.f32 %v2566_v58 }
 0x31b   :  { %v2718_v5 = vadd.f32 -1.0, %v3080_v19  ;;  %v2194_v38 = vmul.f32 %v2149_v29, %v1938_v35  ;;  %v3082_v6 = vpop.eup %3081  ;;  %2664 = vst.msk [vmem:[%s4821_s4 + $0x90] sm:$0xff] %vm89_vm3, %v2632_v22  ;;  %vm2473_vm5 = vcmp.gt.f32.partialorder %v4640_v50, 0.0  ;;  %v4733_v28 = vsel %vm2417_vm2, %v2193_v8, 0.0 }
 0x31c   :  { %3091 = vpow2.f32 %v2568_v27  ;;  %v2570_v53 = vmul.f32 1.442695, %v2512_v44  ;;  %v2154_v59 = vpop.permute.xlu1 %2153  ;;  %vm2418_vm8 = vcmp.eq.s32.totalorder %v4467_v51, 1  ;;  %v2719_v34 = vadd.f32 -1.0, %v3082_v6 }
 0x31d   :  { %v2159_v57 = vpop.permute.xlu0 %2158  ;;  %v2633_v33 = vsel %vm2473_vm5, %v4640_v50, %v2718_v5  ;;  %v2513_v16 = vmin.f32 %v4733_v28, 0.0  ;;  %vm2474_vm12 = vcmp.gt.f32.partialorder %v4648_v2, 0.0  ;;  %v4743_v14 = vsel %vm2418_vm8, %v2194_v38, 0.0 }
 0x31e   :  { %2665 = vst.msk [vmem:[%s4821_s4 + $0x98] sm:$0xff] %vm89_vm3, %v2633_v33  ;;  %3093 = vpow2.f32 %v2570_v53  ;;  %v2195_v32 = vmul.f32 %v2154_v59, %v1939_v41  ;;  %v3084_v42 = vpop.eup %3083  ;;  %vm2419_vm13 = vcmp.eq.s32.totalorder %v4481_v0, 1  ;;  %v2634_v51 = vsel %vm2474_vm12, %v4648_v2, %v2719_v34 }
 0x31f   :  { %v2572_v50 = vmul.f32 1.442695, %v2513_v16  ;;  %v2514_v30 = vmin.f32 %v4743_v14, 0.0  ;;  %2666 = vst.msk [vmem:[%s4821_s4 + $0xa0] sm:$0xff] %vm89_vm3, %v2634_v51  ;;  %vm2475_vm14 = vcmp.gt.f32.partialorder %v4660_v60, 0.0  ;;  %v2720_v36 = vadd.f32 -1.0, %v3084_v42 }
 0x320   :  { %v3086_v10 = vpop.eup %3085  ;;  %v4753_v56 = vsel %vm2419_vm13, %v2195_v32, 0.0  ;;  %v2164_v55 = vpop.permute.xlu1 %2163  ;;  %v2196_v37 = vmul.f32 %v2159_v57, %v1940_v12  ;;  %vm2476_vm1 = vcmp.gt.f32.partialorder %v4671_v63, 0.0  ;;  %vm2477_vm7 = vcmp.gt.f32.partialorder %v4684_v17, 0.0 }
 0x321   :  { %v2386_v25 = vpop.permute.xlu0 %2385  ;;  %v2721_v0 = vadd.f32 -1.0, %v3086_v10  ;;  %3095 = vpow2.f32 %v2572_v50  ;;  %v2574_v2 = vmul.f32 1.442695, %v2514_v30  ;;  %v2635_v20 = vsel %vm2475_vm14, %v4660_v60, %v2720_v36 }
 0x322   :  { %v3088_v1 = vpop.eup %3087  ;;  %v2515_v43 = vmin.f32 %v4753_v56, 0.0  ;;  %vm2420_vm4 = vcmp.eq.s32.totalorder %v2386_v25, 1  ;;  %2667 = vst.msk [vmem:[%s4821_s4 + $0xa8] sm:$0xff] %vm89_vm3, %v2635_v20  ;;  %v2197_v26 = vmul.f32 %v2164_v55, %v1941_v62  ;;  %vm2478_vm6 = vcmp.gt.f32.partialorder %v4699_v45, 0.0 }
 0x323   :  { %v2636_v4 = vsel %vm2476_vm1, %v4671_v63, %v2721_v0  ;;  %v2722_v49 = vadd.f32 -1.0, %v3088_v1  ;;  %3097 = vpow2.f32 %v2574_v2  ;;  %v2452_v3 = vsel %vm2420_vm4, %v2196_v37, 0.0 }
 0x324   :  { %2668 = vst.msk [vmem:[%s4821_s4 + $0xb0] sm:$0xff] %vm89_vm3, %v2636_v4  ;;  %v2576_v60 = vmul.f32 1.442695, %v2515_v43  ;;  %v2516_v48 = vmin.f32 %v2452_v3, 0.0  ;;  %v2389_v54 = vpop.permute.xlu1 %2388  ;;  %v3090_v21 = vpop.eup %3089  ;;  %vm2479_vm2 = vcmp.gt.f32.partialorder %v4705_v40, 0.0  ;;  %vm2480_vm15 = vcmp.gt.f32.partialorder %v4717_v31, 0.0 }
 0x325   :  { %v2637_v15 = vsel %vm2477_vm7, %v4684_v17, %v2722_v49  ;;  %vm2421_vm0 = vcmp.eq.s32.totalorder %v2389_v54, 1  ;;  %v2723_v18 = vadd.f32 -1.0, %v3090_v21  ;;  %vm2481_vm9 = vcmp.gt.f32.partialorder %v4733_v28, 0.0 }
 0x326   :  { %v3092_v63 = vpop.eup %3091  ;;  %2669 = vst.msk [vmem:[%s4821_s4 + $0xb8] sm:$0xff] %vm89_vm3, %v2637_v15  ;;  %3099 = vpow2.f32 %v2576_v60  ;;  %v2578_v7 = vmul.f32 1.442695, %v2516_v48  ;;  %v2453_v47 = vsel %vm2421_vm0, %v2197_v26, 0.0  ;;  %vm2482_vm11 = vcmp.gt.f32.partialorder %v4743_v14, 0.0 }
 0x327   :  { %v2724_v23 = vadd.f32 -1.0, %v3092_v63  ;;  %v2517_v39 = vmin.f32 %v2453_v47, 0.0  ;;  %v2638_v61 = vsel %vm2478_vm6, %v4699_v45, %v2723_v18  ;;  %vm2483_vm10 = vcmp.gt.f32.partialorder %v4753_v56, 0.0 }
 0x328   :  { %v3094_v24 = vpop.eup %3093  ;;  %3101 = vpow2.f32 %v2578_v7  ;;  %2670 = vst.msk [vmem:[%s4821_s4 + $0xc0] sm:$0xff] %vm89_vm3, %v2638_v61  ;;  %vm2484_vm5 = vcmp.gt.f32.partialorder %v2452_v3, 0.0  ;;  %vm2485_vm8 = vcmp.gt.f32.partialorder %v2453_v47, 0.0 }
 0x329   :  { %v2639_v17 = vsel %vm2479_vm2, %v4705_v40, %v2724_v23  ;;  %v2725_v46 = vadd.f32 -1.0, %v3094_v24  ;;  %v2580_v11 = vmul.f32 1.442695, %v2517_v39 }
 0x32a   :  { %2671 = vst.msk [vmem:[%s4821_s4 + $0xc8] sm:$0xff] %vm89_vm3, %v2639_v17 }
 0x32b   :  { %v3096_v45 = vpop.eup %3095  ;;  %v2640_v29 = vsel %vm2480_vm15, %v4717_v31, %v2725_v46  ;;  %3103 = vpow2.f32 %v2580_v11 }
 0x32c   :  { %2672 = vst.msk [vmem:[%s4821_s4 + $0xd0] sm:$0xff] %vm89_vm3, %v2640_v29  ;;  %v2726_v9 = vadd.f32 -1.0, %v3096_v45 }
 0x32d   :  { %v3098_v40 = vpop.eup %3097 }
 0x32e   :  { %v2641_v52 = vsel %vm2481_vm9, %v4733_v28, %v2726_v9  ;;  %v2727_v58 = vadd.f32 -1.0, %v3098_v40 }
 0x32f   :  { %2673 = vst.msk [vmem:[%s4821_s4 + $0xd8] sm:$0xff] %vm89_vm3, %v2641_v52 }
 0x330   :  { %v3100_v31 = vpop.eup %3099  ;;  %v2642_v13 = vsel %vm2482_vm11, %v4743_v14, %v2727_v58 }
 0x331   :  { %2674 = vst.msk [vmem:[%s4821_s4 + $0xe0] sm:$0xff] %vm89_vm3, %v2642_v13  ;;  %v2728_v19 = vadd.f32 -1.0, %v3100_v31 }
 0x332   :  { %v3102_v27 = vpop.eup %3101 }
 0x333   :  { %v2643_v44 = vsel %vm2483_vm10, %v4753_v56, %v2728_v19  ;;  %v2729_v8 = vadd.f32 -1.0, %v3102_v27 }
 0x334   :  { %2675 = vst.msk [vmem:[%s4821_s4 + $0xe8] sm:$0xff] %vm89_vm3, %v2643_v44 }
 0x335   :  { %v3104_v35 = vpop.eup %3103  ;;  %v2644_v22 = vsel %vm2484_vm5, %v2452_v3, %v2729_v8 }
 0x336   :  { %2676 = vst.msk [vmem:[%s4821_s4 + $0xf0] sm:$0xff] %vm89_vm3, %v2644_v22  ;;  %v2730_v5 = vadd.f32 -1.0, %v3104_v35 }
 0x338   :  { %v2645_v38 = vsel %vm2485_vm8, %v2453_v47, %v2730_v5 }
 0x339   :  { %2677 = vst.msk [vmem:[%s4821_s4 + $0xf8] sm:$0xff] %vm89_vm3, %v2645_v38 }

</bundles_post_ra>
